<compile_context>
chip_gen: v7x
topology: tpu7x:2x2x1
jax: 0.10.0
libtpu: 0.0.40
codegen_flags: <defaults>
</compile_context>

<pallas_src>
import math

import jax
import jax.numpy as jnp
from jax import lax
from jax.experimental import pallas as pl
from jax.experimental.pallas import tpu as pltpu


def _round_up(x, m):
    return (x + m - 1) // m * m


# --------------------------------------------------------------------------
# Fused conv+BN forward: per-sample kernel, K*K shifted matmuls, f32 accumulate
# --------------------------------------------------------------------------
def slim_conv_bn(x_nchw, weight, gamma, beta, running_mean, running_var,
                 *, stride, eps=1e-5):
    """Forward of SlimConvBN (eval-mode BN).

    x_nchw : (N, inC, H, W) f32
    weight : (outC, inC, K, K)  (PyTorch Conv2d layout, bias=False)
    gamma/beta/running_mean/running_var : (outC,)
    padding = K // 2 (as in the module).
    """
    N, inC, H, W = x_nchw.shape
    outC, _, K, _ = weight.shape
    pad = K // 2
    OH = (H + 2 * pad - K) // stride + 1
    OW = (W + 2 * pad - K) // stride + 1
    Hp, Wp = H + 2 * pad, W + 2 * pad
    M_img = OH * OW

    # Lane-aligned channel padding (zeros -> exact arithmetic).
    C_p = _round_up(inC, 128)
    outC_p = _round_up(outC, 128)

    # ---- fold eval-mode BN (f32): scale into weights, bias stays ----
    scale = gamma / jnp.sqrt(running_var + eps)              # (outC,)
    bias = beta - running_mean * scale                       # (outC,)

    # ---- activation: NCHW f32 -> NHWC bf16, spatial + channel zero-pad ----
    # (cast + transpose + pad fuse into a single XLA pass over x)
    x = jnp.transpose(x_nchw, (0, 2, 3, 1)).astype(jnp.bfloat16)
    x = jnp.pad(x, ((0, 0), (pad, pad), (pad, pad), (0, C_p - inC)))

    # ---- weights: (outC, inC, K, K) -> (K, K, C_p, outC_p), folded, bf16 ----
    w = jnp.transpose(weight, (2, 3, 1, 0)) * scale[None, None, None, :]
    w = jnp.pad(w, ((0, 0), (0, 0), (0, C_p - inC), (0, outC_p - outC)))
    w = w.astype(jnp.bfloat16)

    b = jnp.pad(bias, (0, outC_p - outC)).reshape(1, outC_p).astype(jnp.float32)

    # ---- Pallas kernel: whole sample per grid step ----
    def kernel(x_ref, w_ref, b_ref, o_ref):
        # x_ref: (Hp, Wp, C_p) bf16 ; w_ref: (K, K, C_p, outC_p) bf16
        # b_ref: (1, outC_p) f32    ; o_ref: (OH*OW, outC_p) f32
        # BN bias is the accumulator init; accumulate f32 straight into o_ref.
        o_ref[...] = jnp.broadcast_to(b_ref[...], o_ref.shape)
        for kh in range(K):
            for kw in range(K):
                if stride == 1:
                    win = x_ref[pl.ds(kh, OH), pl.ds(kw, OW), :]
                else:
                    win = lax.slice(
                        x_ref[...],
                        (kh, kw, 0),
                        (kh + (OH - 1) * stride + 1,
                         kw + (OW - 1) * stride + 1, C_p),
                        (stride, stride, 1))
                o_ref[...] += jnp.dot(
                    win.reshape(M_img, C_p), w_ref[kh, kw],
                    preferred_element_type=jnp.float32)

    cost = pl.CostEstimate(
        flops=2 * N * M_img * K * K * C_p * outC_p,
        transcendentals=0,
        bytes_accessed=(x.size * 2 + w.size * 2 + b.size * 4
                        + N * M_img * outC_p * 4),
    )

    out = pl.pallas_call(
        kernel,
        out_shape=jax.ShapeDtypeStruct((N, M_img, outC_p), jnp.float32),
        grid_spec=pltpu.PrefetchScalarGridSpec(
            num_scalar_prefetch=0,
            grid=(N,),
            in_specs=[
                pl.BlockSpec((None, Hp, Wp, C_p), lambda n: (n, 0, 0, 0)),
                pl.BlockSpec((K, K, C_p, outC_p), lambda n: (0, 0, 0, 0)),
                pl.BlockSpec((1, outC_p), lambda n: (0, 0)),
            ],
            out_specs=pl.BlockSpec((None, M_img, outC_p), lambda n: (n, 0, 0)),
        ),
        compiler_params=pltpu.CompilerParams(
            dimension_semantics=("parallel",),
            vmem_limit_bytes=48 * 1024 * 1024,
        ),
        cost_estimate=cost,
    )(x, w, b)

    # Strip channel padding, restore NCHW for module-compatible output.
    # (The reshape is layout-free; slice+transpose fuse into one pass. In a
    #  full NHWC network both boundary transposes would be dropped.)
    out = out[:, :, :outC].reshape(N, OH, OW, outC)
    return jnp.transpose(out, (0, 3, 1, 2))


# --------------------------------------------------------------------------
# References for sanity checks
# --------------------------------------------------------------------------
def _reference_f32(x_nchw, weight, gamma, beta, mean, var, *, stride, eps=1e-5):
    K = weight.shape[-1]
    pad = K // 2
    y = lax.conv_general_dilated(
        x_nchw, weight, window_strides=(stride, stride),
        padding=[(pad, pad), (pad, pad)],
        dimension_numbers=("NCHW", "OIHW", "NCHW"))
    inv = gamma / jnp.sqrt(var + eps)
    return y * inv[None, :, None, None] + (beta - mean * inv)[None, :, None, None]


def _reference_bf16(x_nchw, weight, gamma, beta, mean, var, *, stride, eps=1e-5):
    # Same arithmetic the kernel performs: BN scale folded into weights in f32,
    # bf16 conv inputs, f32 accumulation, f32 bias add.
    K = weight.shape[-1]
    pad = K // 2
    inv = gamma / jnp.sqrt(var + eps)
    w_s = (weight * inv[:, None, None, None]).astype(jnp.bfloat16)
    y = lax.conv_general_dilated(
        x_nchw.astype(jnp.bfloat16), w_s,
        window_strides=(stride, stride),
        padding=[(pad, pad), (pad, pad)],
        dimension_numbers=("NCHW", "OIHW", "NCHW"),
        preferred_element_type=jnp.float32)
    return y + (beta - mean * inv)[None, :, None, None]


if __name__ == "__main__":
    # Small shapes consistent with the module: N=2, inC=4, H=W=16,
    # outC=8, kernel_size=3, stride=1.
    N, inC, H, W = 2, 4, 16, 16
    outC, K, stride = 8, 3, 1

    key = jax.random.PRNGKey(0)
    k_x, k_w, k_g, k_b, k_m, k_v = jax.random.split(key, 6)

    x = jax.random.normal(k_x, (N, inC, H, W), dtype=jnp.float32)

    # Deterministic parameter init (Conv2d kaiming-uniform-like bound)
    fan_in = inC * K * K
    bound = 1.0 / math.sqrt(fan_in)
    weight = jax.random.uniform(k_w, (outC, inC, K, K),
                                minval=-bound, maxval=bound, dtype=jnp.float32)
    gamma = 1.0 + 0.1 * jax.random.normal(k_g, (outC,), dtype=jnp.float32)
    beta = 0.1 * jax.random.normal(k_b, (outC,), dtype=jnp.float32)
    running_mean = 0.1 * jax.random.normal(k_m, (outC,), dtype=jnp.float32)
    running_var = jax.random.uniform(k_v, (outC,), minval=0.5, maxval=1.5,
                                     dtype=jnp.float32)

    out = slim_conv_bn(x, weight, gamma, beta, running_mean, running_var,
                       stride=stride)
    out = jax.block_until_ready(out)
    assert out.shape == (N, outC, H, W)

    # Tight check against a reference doing the identical bf16/f32 arithmetic.
    ref_bf16 = _reference_bf16(x, weight, gamma, beta, running_mean,
                               running_var, stride=stride)
    assert jnp.allclose(out, ref_bf16, atol=1e-4, rtol=1e-4), \
        "mismatch vs bf16-matched reference"

    # Loose check against the pure-f32 module semantics (bf16 input rounding).
    ref_f32 = _reference_f32(x, weight, gamma, beta, running_mean,
                             running_var, stride=stride)
    assert jnp.allclose(out, ref_f32, atol=5e-2, rtol=5e-2), \
        "mismatch vs f32 reference"

    print("KERNEL_OK")
</pallas_src>

<mosaic_0001>
module attributes {stable_mosaic.version = 11 : i64} {
  func.func @kernel(%arg0: i32, %arg1: memref<1x18x18x128xbf16, #tpu.memory_space<vmem>>, %arg2: memref<3x3x128x128xbf16, #tpu.memory_space<vmem>>, %arg3: memref<1x128xf32, #tpu.memory_space<vmem>>, %arg4: memref<1x256x128xf32, #tpu.memory_space<vmem>>) attributes {dimension_semantics = [#tpu.dimension_semantics<parallel>], iteration_bounds = array<i64: 2>, scalar_prefetch = 0 : i64, scratch_operands = 0 : i64, tpu.core_type = #tpu.core_type<tc>, window_params = [{transform_indices = @transform_0, window_bounds = array<i64: 1, 18, 18, 128>}, {pipeline_mode = #tpu.pipeline_mode<synchronous>, transform_indices = @transform_1, window_bounds = array<i64: 3, 3, 128, 128>}, {pipeline_mode = #tpu.pipeline_mode<synchronous>, transform_indices = @transform_2, window_bounds = array<i64: 1, 128>}, {transform_indices = @transform_3, window_bounds = array<i64: 1, 256, 128>}]} {
    %c0 = arith.constant 0 : index
    %c0_0 = arith.constant 0 : index
    %0 = vector.load %arg3[%c0, %c0_0] : memref<1x128xf32, #tpu.memory_space<vmem>>, vector<1x128xf32>
    %1 = vector.shape_cast %0 : vector<1x128xf32> to vector<1x128xf32>
    %2 = vector.broadcast %1 : vector<1x128xf32> to vector<256x128xf32>
    %c0_1 = arith.constant 0 : index
    %c0_2 = arith.constant 0 : index
    %c0_3 = arith.constant 0 : index
    %3 = vector.load %arg4[%c0_1, %c0_2, %c0_3] : memref<1x256x128xf32, #tpu.memory_space<vmem>>, vector<1x256x128xf32>
    %4 = vector.shape_cast %3 : vector<1x256x128xf32> to vector<256x128xf32>
    %5 = vector.shape_cast %2 : vector<256x128xf32> to vector<1x256x128xf32>
    tpu.vector_store %arg4[%c0_1, %c0_2, %c0_3], %5 {strides = array<i32>} : memref<1x256x128xf32, #tpu.memory_space<vmem>>, vector<1x256x128xf32>,
    %c0_4 = arith.constant 0 : index
    %c0_5 = arith.constant 0 : index
    %c0_6 = arith.constant 0 : index
    %c0_7 = arith.constant 0 : index
    %6 = vector.load %arg1[%c0_4, %c0_5, %c0_6, %c0_7] : memref<1x18x18x128xbf16, #tpu.memory_space<vmem>>, vector<1x16x16x128xbf16>
    %7 = vector.shape_cast %6 : vector<1x16x16x128xbf16> to vector<16x16x128xbf16>
    %c0_8 = arith.constant 0 : index
    %c0_9 = arith.constant 0 : index
    %c0_10 = arith.constant 0 : index
    %8 = vector.load %arg4[%c0_8, %c0_9, %c0_10] : memref<1x256x128xf32, #tpu.memory_space<vmem>>, vector<1x256x128xf32>
    %9 = vector.shape_cast %8 : vector<1x256x128xf32> to vector<256x128xf32>
    %10 = vector.shape_cast %7 : vector<16x16x128xbf16> to vector<256x128xbf16>
    %c0_11 = arith.constant 0 : index
    %c0_12 = arith.constant 0 : index
    %c0_13 = arith.constant 0 : index
    %c0_14 = arith.constant 0 : index
    %11 = vector.load %arg2[%c0_11, %c0_12, %c0_13, %c0_14] : memref<3x3x128x128xbf16, #tpu.memory_space<vmem>>, vector<1x1x128x128xbf16>
    %12 = vector.shape_cast %11 : vector<1x1x128x128xbf16> to vector<128x128xbf16>
    %cst = arith.constant dense<0.000000e+00> : vector<256x128xf32>
    %13 = tpu.matmul %10, %12, %cst {dimension_numbers = #tpu.dot_dimension_numbers<[1], [0], [0], [1], [0, 0, 1, 1], [], []>} : vector<256x128xbf16>, vector<128x128xbf16>, vector<256x128xf32> -> vector<256x128xf32>
    %14 = arith.addf %9, %13 : vector<256x128xf32>
    %c0_15 = arith.constant 0 : index
    %c0_16 = arith.constant 0 : index
    %c0_17 = arith.constant 0 : index
    %15 = vector.load %arg4[%c0_15, %c0_16, %c0_17] : memref<1x256x128xf32, #tpu.memory_space<vmem>>, vector<1x256x128xf32>
    %16 = vector.shape_cast %15 : vector<1x256x128xf32> to vector<256x128xf32>
    %17 = vector.shape_cast %14 : vector<256x128xf32> to vector<1x256x128xf32>
    tpu.vector_store %arg4[%c0_15, %c0_16, %c0_17], %17 {strides = array<i32>} : memref<1x256x128xf32, #tpu.memory_space<vmem>>, vector<1x256x128xf32>,
    %c0_18 = arith.constant 0 : index
    %c0_19 = arith.constant 0 : index
    %c1 = arith.constant 1 : index
    %c0_20 = arith.constant 0 : index
    %18 = vector.load %arg1[%c0_18, %c0_19, %c1, %c0_20] : memref<1x18x18x128xbf16, #tpu.memory_space<vmem>>, vector<1x16x16x128xbf16>
    %19 = vector.shape_cast %18 : vector<1x16x16x128xbf16> to vector<16x16x128xbf16>
    %c0_21 = arith.constant 0 : index
    %c0_22 = arith.constant 0 : index
    %c0_23 = arith.constant 0 : index
    %20 = vector.load %arg4[%c0_21, %c0_22, %c0_23] : memref<1x256x128xf32, #tpu.memory_space<vmem>>, vector<1x256x128xf32>
    %21 = vector.shape_cast %20 : vector<1x256x128xf32> to vector<256x128xf32>
    %22 = vector.shape_cast %19 : vector<16x16x128xbf16> to vector<256x128xbf16>
    %c0_24 = arith.constant 0 : index
    %c1_25 = arith.constant 1 : index
    %c0_26 = arith.constant 0 : index
    %c0_27 = arith.constant 0 : index
    %23 = vector.load %arg2[%c0_24, %c1_25, %c0_26, %c0_27] : memref<3x3x128x128xbf16, #tpu.memory_space<vmem>>, vector<1x1x128x128xbf16>
    %24 = vector.shape_cast %23 : vector<1x1x128x128xbf16> to vector<128x128xbf16>
    %cst_28 = arith.constant dense<0.000000e+00> : vector<256x128xf32>
    %25 = tpu.matmul %22, %24, %cst_28 {dimension_numbers = #tpu.dot_dimension_numbers<[1], [0], [0], [1], [0, 0, 1, 1], [], []>} : vector<256x128xbf16>, vector<128x128xbf16>, vector<256x128xf32> -> vector<256x128xf32>
    %26 = arith.addf %21, %25 : vector<256x128xf32>
    %c0_29 = arith.constant 0 : index
    %c0_30 = arith.constant 0 : index
    %c0_31 = arith.constant 0 : index
    %27 = vector.load %arg4[%c0_29, %c0_30, %c0_31] : memref<1x256x128xf32, #tpu.memory_space<vmem>>, vector<1x256x128xf32>
    %28 = vector.shape_cast %27 : vector<1x256x128xf32> to vector<256x128xf32>
    %29 = vector.shape_cast %26 : vector<256x128xf32> to vector<1x256x128xf32>
    tpu.vector_store %arg4[%c0_29, %c0_30, %c0_31], %29 {strides = array<i32>} : memref<1x256x128xf32, #tpu.memory_space<vmem>>, vector<1x256x128xf32>,
    %c0_32 = arith.constant 0 : index
    %c0_33 = arith.constant 0 : index
    %c2 = arith.constant 2 : index
    %c0_34 = arith.constant 0 : index
    %30 = vector.load %arg1[%c0_32, %c0_33, %c2, %c0_34] : memref<1x18x18x128xbf16, #tpu.memory_space<vmem>>, vector<1x16x16x128xbf16>
    %31 = vector.shape_cast %30 : vector<1x16x16x128xbf16> to vector<16x16x128xbf16>
    %c0_35 = arith.constant 0 : index
    %c0_36 = arith.constant 0 : index
    %c0_37 = arith.constant 0 : index
    %32 = vector.load %arg4[%c0_35, %c0_36, %c0_37] : memref<1x256x128xf32, #tpu.memory_space<vmem>>, vector<1x256x128xf32>
    %33 = vector.shape_cast %32 : vector<1x256x128xf32> to vector<256x128xf32>
    %34 = vector.shape_cast %31 : vector<16x16x128xbf16> to vector<256x128xbf16>
    %c0_38 = arith.constant 0 : index
    %c2_39 = arith.constant 2 : index
    %c0_40 = arith.constant 0 : index
    %c0_41 = arith.constant 0 : index
    %35 = vector.load %arg2[%c0_38, %c2_39, %c0_40, %c0_41] : memref<3x3x128x128xbf16, #tpu.memory_space<vmem>>, vector<1x1x128x128xbf16>
    %36 = vector.shape_cast %35 : vector<1x1x128x128xbf16> to vector<128x128xbf16>
    %cst_42 = arith.constant dense<0.000000e+00> : vector<256x128xf32>
    %37 = tpu.matmul %34, %36, %cst_42 {dimension_numbers = #tpu.dot_dimension_numbers<[1], [0], [0], [1], [0, 0, 1, 1], [], []>} : vector<256x128xbf16>, vector<128x128xbf16>, vector<256x128xf32> -> vector<256x128xf32>
    %38 = arith.addf %33, %37 : vector<256x128xf32>
    %c0_43 = arith.constant 0 : index
    %c0_44 = arith.constant 0 : index
    %c0_45 = arith.constant 0 : index
    %39 = vector.load %arg4[%c0_43, %c0_44, %c0_45] : memref<1x256x128xf32, #tpu.memory_space<vmem>>, vector<1x256x128xf32>
    %40 = vector.shape_cast %39 : vector<1x256x128xf32> to vector<256x128xf32>
    %41 = vector.shape_cast %38 : vector<256x128xf32> to vector<1x256x128xf32>
    tpu.vector_store %arg4[%c0_43, %c0_44, %c0_45], %41 {strides = array<i32>} : memref<1x256x128xf32, #tpu.memory_space<vmem>>, vector<1x256x128xf32>,
    %c0_46 = arith.constant 0 : index
    %c1_47 = arith.constant 1 : index
    %c0_48 = arith.constant 0 : index
    %c0_49 = arith.constant 0 : index
    %42 = vector.load %arg1[%c0_46, %c1_47, %c0_48, %c0_49] : memref<1x18x18x128xbf16, #tpu.memory_space<vmem>>, vector<1x16x16x128xbf16>
    %43 = vector.shape_cast %42 : vector<1x16x16x128xbf16> to vector<16x16x128xbf16>
    %c0_50 = arith.constant 0 : index
    %c0_51 = arith.constant 0 : index
    %c0_52 = arith.constant 0 : index
    %44 = vector.load %arg4[%c0_50, %c0_51, %c0_52] : memref<1x256x128xf32, #tpu.memory_space<vmem>>, vector<1x256x128xf32>
    %45 = vector.shape_cast %44 : vector<1x256x128xf32> to vector<256x128xf32>
    %46 = vector.shape_cast %43 : vector<16x16x128xbf16> to vector<256x128xbf16>
    %c1_53 = arith.constant 1 : index
    %c0_54 = arith.constant 0 : index
    %c0_55 = arith.constant 0 : index
    %c0_56 = arith.constant 0 : index
    %47 = vector.load %arg2[%c1_53, %c0_54, %c0_55, %c0_56] : memref<3x3x128x128xbf16, #tpu.memory_space<vmem>>, vector<1x1x128x128xbf16>
    %48 = vector.shape_cast %47 : vector<1x1x128x128xbf16> to vector<128x128xbf16>
    %cst_57 = arith.constant dense<0.000000e+00> : vector<256x128xf32>
    %49 = tpu.matmul %46, %48, %cst_57 {dimension_numbers = #tpu.dot_dimension_numbers<[1], [0], [0], [1], [0, 0, 1, 1], [], []>} : vector<256x128xbf16>, vector<128x128xbf16>, vector<256x128xf32> -> vector<256x128xf32>
    %50 = arith.addf %45, %49 : vector<256x128xf32>
    %c0_58 = arith.constant 0 : index
    %c0_59 = arith.constant 0 : index
    %c0_60 = arith.constant 0 : index
    %51 = vector.load %arg4[%c0_58, %c0_59, %c0_60] : memref<1x256x128xf32, #tpu.memory_space<vmem>>, vector<1x256x128xf32>
    %52 = vector.shape_cast %51 : vector<1x256x128xf32> to vector<256x128xf32>
    %53 = vector.shape_cast %50 : vector<256x128xf32> to vector<1x256x128xf32>
    tpu.vector_store %arg4[%c0_58, %c0_59, %c0_60], %53 {strides = array<i32>} : memref<1x256x128xf32, #tpu.memory_space<vmem>>, vector<1x256x128xf32>,
    %c0_61 = arith.constant 0 : index
    %c1_62 = arith.constant 1 : index
    %c1_63 = arith.constant 1 : index
    %c0_64 = arith.constant 0 : index
    %54 = vector.load %arg1[%c0_61, %c1_62, %c1_63, %c0_64] : memref<1x18x18x128xbf16, #tpu.memory_space<vmem>>, vector<1x16x16x128xbf16>
    %55 = vector.shape_cast %54 : vector<1x16x16x128xbf16> to vector<16x16x128xbf16>
    %c0_65 = arith.constant 0 : index
    %c0_66 = arith.constant 0 : index
    %c0_67 = arith.constant 0 : index
    %56 = vector.load %arg4[%c0_65, %c0_66, %c0_67] : memref<1x256x128xf32, #tpu.memory_space<vmem>>, vector<1x256x128xf32>
    %57 = vector.shape_cast %56 : vector<1x256x128xf32> to vector<256x128xf32>
    %58 = vector.shape_cast %55 : vector<16x16x128xbf16> to vector<256x128xbf16>
    %c1_68 = arith.constant 1 : index
    %c1_69 = arith.constant 1 : index
    %c0_70 = arith.constant 0 : index
    %c0_71 = arith.constant 0 : index
    %59 = vector.load %arg2[%c1_68, %c1_69, %c0_70, %c0_71] : memref<3x3x128x128xbf16, #tpu.memory_space<vmem>>, vector<1x1x128x128xbf16>
    %60 = vector.shape_cast %59 : vector<1x1x128x128xbf16> to vector<128x128xbf16>
    %cst_72 = arith.constant dense<0.000000e+00> : vector<256x128xf32>
    %61 = tpu.matmul %58, %60, %cst_72 {dimension_numbers = #tpu.dot_dimension_numbers<[1], [0], [0], [1], [0, 0, 1, 1], [], []>} : vector<256x128xbf16>, vector<128x128xbf16>, vector<256x128xf32> -> vector<256x128xf32>
    %62 = arith.addf %57, %61 : vector<256x128xf32>
    %c0_73 = arith.constant 0 : index
    %c0_74 = arith.constant 0 : index
    %c0_75 = arith.constant 0 : index
    %63 = vector.load %arg4[%c0_73, %c0_74, %c0_75] : memref<1x256x128xf32, #tpu.memory_space<vmem>>, vector<1x256x128xf32>
    %64 = vector.shape_cast %63 : vector<1x256x128xf32> to vector<256x128xf32>
    %65 = vector.shape_cast %62 : vector<256x128xf32> to vector<1x256x128xf32>
    tpu.vector_store %arg4[%c0_73, %c0_74, %c0_75], %65 {strides = array<i32>} : memref<1x256x128xf32, #tpu.memory_space<vmem>>, vector<1x256x128xf32>,
    %c0_76 = arith.constant 0 : index
    %c1_77 = arith.constant 1 : index
    %c2_78 = arith.constant 2 : index
    %c0_79 = arith.constant 0 : index
    %66 = vector.load %arg1[%c0_76, %c1_77, %c2_78, %c0_79] : memref<1x18x18x128xbf16, #tpu.memory_space<vmem>>, vector<1x16x16x128xbf16>
    %67 = vector.shape_cast %66 : vector<1x16x16x128xbf16> to vector<16x16x128xbf16>
    %c0_80 = arith.constant 0 : index
    %c0_81 = arith.constant 0 : index
    %c0_82 = arith.constant 0 : index
    %68 = vector.load %arg4[%c0_80, %c0_81, %c0_82] : memref<1x256x128xf32, #tpu.memory_space<vmem>>, vector<1x256x128xf32>
    %69 = vector.shape_cast %68 : vector<1x256x128xf32> to vector<256x128xf32>
    %70 = vector.shape_cast %67 : vector<16x16x128xbf16> to vector<256x128xbf16>
    %c1_83 = arith.constant 1 : index
    %c2_84 = arith.constant 2 : index
    %c0_85 = arith.constant 0 : index
    %c0_86 = arith.constant 0 : index
    %71 = vector.load %arg2[%c1_83, %c2_84, %c0_85, %c0_86] : memref<3x3x128x128xbf16, #tpu.memory_space<vmem>>, vector<1x1x128x128xbf16>
    %72 = vector.shape_cast %71 : vector<1x1x128x128xbf16> to vector<128x128xbf16>
    %cst_87 = arith.constant dense<0.000000e+00> : vector<256x128xf32>
    %73 = tpu.matmul %70, %72, %cst_87 {dimension_numbers = #tpu.dot_dimension_numbers<[1], [0], [0], [1], [0, 0, 1, 1], [], []>} : vector<256x128xbf16>, vector<128x128xbf16>, vector<256x128xf32> -> vector<256x128xf32>
    %74 = arith.addf %69, %73 : vector<256x128xf32>
    %c0_88 = arith.constant 0 : index
    %c0_89 = arith.constant 0 : index
    %c0_90 = arith.constant 0 : index
    %75 = vector.load %arg4[%c0_88, %c0_89, %c0_90] : memref<1x256x128xf32, #tpu.memory_space<vmem>>, vector<1x256x128xf32>
    %76 = vector.shape_cast %75 : vector<1x256x128xf32> to vector<256x128xf32>
    %77 = vector.shape_cast %74 : vector<256x128xf32> to vector<1x256x128xf32>
    tpu.vector_store %arg4[%c0_88, %c0_89, %c0_90], %77 {strides = array<i32>} : memref<1x256x128xf32, #tpu.memory_space<vmem>>, vector<1x256x128xf32>,
    %c0_91 = arith.constant 0 : index
    %c2_92 = arith.constant 2 : index
    %c0_93 = arith.constant 0 : index
    %c0_94 = arith.constant 0 : index
    %78 = vector.load %arg1[%c0_91, %c2_92, %c0_93, %c0_94] : memref<1x18x18x128xbf16, #tpu.memory_space<vmem>>, vector<1x16x16x128xbf16>
    %79 = vector.shape_cast %78 : vector<1x16x16x128xbf16> to vector<16x16x128xbf16>
    %c0_95 = arith.constant 0 : index
    %c0_96 = arith.constant 0 : index
    %c0_97 = arith.constant 0 : index
    %80 = vector.load %arg4[%c0_95, %c0_96, %c0_97] : memref<1x256x128xf32, #tpu.memory_space<vmem>>, vector<1x256x128xf32>
    %81 = vector.shape_cast %80 : vector<1x256x128xf32> to vector<256x128xf32>
    %82 = vector.shape_cast %79 : vector<16x16x128xbf16> to vector<256x128xbf16>
    %c2_98 = arith.constant 2 : index
    %c0_99 = arith.constant 0 : index
    %c0_100 = arith.constant 0 : index
    %c0_101 = arith.constant 0 : index
    %83 = vector.load %arg2[%c2_98, %c0_99, %c0_100, %c0_101] : memref<3x3x128x128xbf16, #tpu.memory_space<vmem>>, vector<1x1x128x128xbf16>
    %84 = vector.shape_cast %83 : vector<1x1x128x128xbf16> to vector<128x128xbf16>
    %cst_102 = arith.constant dense<0.000000e+00> : vector<256x128xf32>
    %85 = tpu.matmul %82, %84, %cst_102 {dimension_numbers = #tpu.dot_dimension_numbers<[1], [0], [0], [1], [0, 0, 1, 1], [], []>} : vector<256x128xbf16>, vector<128x128xbf16>, vector<256x128xf32> -> vector<256x128xf32>
    %86 = arith.addf %81, %85 : vector<256x128xf32>
    %c0_103 = arith.constant 0 : index
    %c0_104 = arith.constant 0 : index
    %c0_105 = arith.constant 0 : index
    %87 = vector.load %arg4[%c0_103, %c0_104, %c0_105] : memref<1x256x128xf32, #tpu.memory_space<vmem>>, vector<1x256x128xf32>
    %88 = vector.shape_cast %87 : vector<1x256x128xf32> to vector<256x128xf32>
    %89 = vector.shape_cast %86 : vector<256x128xf32> to vector<1x256x128xf32>
    tpu.vector_store %arg4[%c0_103, %c0_104, %c0_105], %89 {strides = array<i32>} : memref<1x256x128xf32, #tpu.memory_space<vmem>>, vector<1x256x128xf32>,
    %c0_106 = arith.constant 0 : index
    %c2_107 = arith.constant 2 : index
    %c1_108 = arith.constant 1 : index
    %c0_109 = arith.constant 0 : index
    %90 = vector.load %arg1[%c0_106, %c2_107, %c1_108, %c0_109] : memref<1x18x18x128xbf16, #tpu.memory_space<vmem>>, vector<1x16x16x128xbf16>
    %91 = vector.shape_cast %90 : vector<1x16x16x128xbf16> to vector<16x16x128xbf16>
    %c0_110 = arith.constant 0 : index
    %c0_111 = arith.constant 0 : index
    %c0_112 = arith.constant 0 : index
    %92 = vector.load %arg4[%c0_110, %c0_111, %c0_112] : memref<1x256x128xf32, #tpu.memory_space<vmem>>, vector<1x256x128xf32>
    %93 = vector.shape_cast %92 : vector<1x256x128xf32> to vector<256x128xf32>
    %94 = vector.shape_cast %91 : vector<16x16x128xbf16> to vector<256x128xbf16>
    %c2_113 = arith.constant 2 : index
    %c1_114 = arith.constant 1 : index
    %c0_115 = arith.constant 0 : index
    %c0_116 = arith.constant 0 : index
    %95 = vector.load %arg2[%c2_113, %c1_114, %c0_115, %c0_116] : memref<3x3x128x128xbf16, #tpu.memory_space<vmem>>, vector<1x1x128x128xbf16>
    %96 = vector.shape_cast %95 : vector<1x1x128x128xbf16> to vector<128x128xbf16>
    %cst_117 = arith.constant dense<0.000000e+00> : vector<256x128xf32>
    %97 = tpu.matmul %94, %96, %cst_117 {dimension_numbers = #tpu.dot_dimension_numbers<[1], [0], [0], [1], [0, 0, 1, 1], [], []>} : vector<256x128xbf16>, vector<128x128xbf16>, vector<256x128xf32> -> vector<256x128xf32>
    %98 = arith.addf %93, %97 : vector<256x128xf32>
    %c0_118 = arith.constant 0 : index
    %c0_119 = arith.constant 0 : index
    %c0_120 = arith.constant 0 : index
    %99 = vector.load %arg4[%c0_118, %c0_119, %c0_120] : memref<1x256x128xf32, #tpu.memory_space<vmem>>, vector<1x256x128xf32>
    %100 = vector.shape_cast %99 : vector<1x256x128xf32> to vector<256x128xf32>
    %101 = vector.shape_cast %98 : vector<256x128xf32> to vector<1x256x128xf32>
    tpu.vector_store %arg4[%c0_118, %c0_119, %c0_120], %101 {strides = array<i32>} : memref<1x256x128xf32, #tpu.memory_space<vmem>>, vector<1x256x128xf32>,
    %c0_121 = arith.constant 0 : index
    %c2_122 = arith.constant 2 : index
    %c2_123 = arith.constant 2 : index
    %c0_124 = arith.constant 0 : index
    %102 = vector.load %arg1[%c0_121, %c2_122, %c2_123, %c0_124] : memref<1x18x18x128xbf16, #tpu.memory_space<vmem>>, vector<1x16x16x128xbf16>
    %103 = vector.shape_cast %102 : vector<1x16x16x128xbf16> to vector<16x16x128xbf16>
    %c0_125 = arith.constant 0 : index
    %c0_126 = arith.constant 0 : index
    %c0_127 = arith.constant 0 : index
    %104 = vector.load %arg4[%c0_125, %c0_126, %c0_127] : memref<1x256x128xf32, #tpu.memory_space<vmem>>, vector<1x256x128xf32>
    %105 = vector.shape_cast %104 : vector<1x256x128xf32> to vector<256x128xf32>
    %106 = vector.shape_cast %103 : vector<16x16x128xbf16> to vector<256x128xbf16>
    %c2_128 = arith.constant 2 : index
    %c2_129 = arith.constant 2 : index
    %c0_130 = arith.constant 0 : index
    %c0_131 = arith.constant 0 : index
    %107 = vector.load %arg2[%c2_128, %c2_129, %c0_130, %c0_131] : memref<3x3x128x128xbf16, #tpu.memory_space<vmem>>, vector<1x1x128x128xbf16>
    %108 = vector.shape_cast %107 : vector<1x1x128x128xbf16> to vector<128x128xbf16>
    %cst_132 = arith.constant dense<0.000000e+00> : vector<256x128xf32>
    %109 = tpu.matmul %106, %108, %cst_132 {dimension_numbers = #tpu.dot_dimension_numbers<[1], [0], [0], [1], [0, 0, 1, 1], [], []>} : vector<256x128xbf16>, vector<128x128xbf16>, vector<256x128xf32> -> vector<256x128xf32>
    %110 = arith.addf %105, %109 : vector<256x128xf32>
    %c0_133 = arith.constant 0 : index
    %c0_134 = arith.constant 0 : index
    %c0_135 = arith.constant 0 : index
    %111 = vector.load %arg4[%c0_133, %c0_134, %c0_135] : memref<1x256x128xf32, #tpu.memory_space<vmem>>, vector<1x256x128xf32>
    %112 = vector.shape_cast %111 : vector<1x256x128xf32> to vector<256x128xf32>
    %113 = vector.shape_cast %110 : vector<256x128xf32> to vector<1x256x128xf32>
    tpu.vector_store %arg4[%c0_133, %c0_134, %c0_135], %113 {strides = array<i32>} : memref<1x256x128xf32, #tpu.memory_space<vmem>>, vector<1x256x128xf32>,
    return
  }
  func.func @transform_0(%arg0: i32) -> (i32, i32, i32, i32) {
    %c0_i32 = arith.constant 0 : i32
    %c0_i32_0 = arith.constant 0 : i32
    %c0_i32_1 = arith.constant 0 : i32
    %c0_i32_2 = arith.constant 0 : i32
    return %arg0, %c0_i32, %c0_i32_0, %c0_i32_1 : i32, i32, i32, i32
  }
  func.func @transform_1(%arg0: i32) -> (i32, i32, i32, i32) {
    %c0_i32 = arith.constant 0 : i32
    %c0_i32_0 = arith.constant 0 : i32
    %c0_i32_1 = arith.constant 0 : i32
    %c0_i32_2 = arith.constant 0 : i32
    %c0_i32_3 = arith.constant 0 : i32
    return %c0_i32, %c0_i32_0, %c0_i32_1, %c0_i32_2 : i32, i32, i32, i32
  }
  func.func @transform_2(%arg0: i32) -> (i32, i32) {
    %c0_i32 = arith.constant 0 : i32
    %c0_i32_0 = arith.constant 0 : i32
    %c0_i32_1 = arith.constant 0 : i32
    return %c0_i32, %c0_i32_0 : i32, i32
  }
  func.func @transform_3(%arg0: i32) -> (i32, i32, i32) {
    %c0_i32 = arith.constant 0 : i32
    %c0_i32_0 = arith.constant 0 : i32
    %c0_i32_1 = arith.constant 0 : i32
    return %arg0, %c0_i32, %c0_i32_0 : i32, i32, i32
  }
}

</mosaic_0001>

<bundles_post_ra>
// kernel: tpu_custom_call.1
= control target key start
LH: loop header
LB: loop body
LE: loop exit
PB: predicated region body
PF: predicated region fallthrough
CT: control target
= control target key end

     0   :  { %8 = vsyncpa [#allocation3], 0  ;;  %s9130_s0 = inlined_call_operand.vmem [shape: bf16[2,18,18,128], index: 0, kind: input, shape index: {}]   ;;  %s9131_s1 = inlined_call_operand.vmem [shape: bf16[3,3,128,128], index: 1, kind: input, shape index: {}]   ;;  %s9132_s2 = inlined_call_operand.vmem [shape: f32[1,128], index: 2, kind: input, shape index: {}]   ;;  %s9133_s3 = inlined_call_operand.hbm [shape: f32[2,256,128], index: 3, kind: output, shape index: {}]  }
   0x1   :  { %10 = vsyncpa [#allocation3 + $0x1], 0  ;;  %s7876_s12 = smov 0   ;;  %s7878_s13 = smov 0  }
   0x2   :  { %s7880_s14 = smov 0   ;;  %s7882_s15 = smov 0  }
   0x3 LB: > { %s7897_s16 = sadd.s32 4294967295, %s7851_s15   ;;  %s5878_s17 = sadd.s32 4294967294, %s7851_s15   ;;  %s7851_s15 = sphi %s7882_s15, %s9143_s15   ;;  %s7847_s14 = sphi %s7880_s14, %s9142_s14   ;;  %s7843_s13 = sphi %s7878_s13, %s9141_s13   ;;  %s7839_s12 = sphi %s7876_s12, %s9140_s12  }
   0x4   : > { %s7901_s18 = sadd.s32 1, %s7851_s15   ;;  %s91_s19 = sadd.s32 1, %s7847_s14 }
   0x5   : > { %s88_s20 = ssub.s32 %s7851_s15, %s7901_s18  ;;  %p101_p0 = scmp.ne.s32.totalorder %s7847_s14, %s7843_s13 }
   0x6   : > { %p89_p1 = scmp.eq.s32.totalorder %s88_s20, 0  ;;  %p102_p2 = scmp.eq.s32.totalorder %s7897_s16, 1 }
   0x7   : > { %p107_p3 = scmp.ne.s32.totalorder %s7843_s13, %s7839_s12  ;;  %p108_p4 = scmp.eq.s32.totalorder %s5878_s17, 1 }
   0x8   : > { %s7912_s21 = scalar_select %p89_p1, %s7847_s14, %s91_s19  }
   0x9   : > { %p7914_p5 = por %p102_p2, %p101_p0  ;;  %p7918_p6 = por %p108_p4, %p107_p3 }
   0xa   : > { %p5881_p7 = scmp.ge.s32.totalorder %s7851_s15, 1  ;;  %p140_p8 = scmp.lt.s32.totalorder %s7851_s15, 3 }
   0xc   : > { %p141_p9 = pnand %p5881_p7, %p140_p8 }
   0xd   : > { %v7661_v0 = vld [vmem:[%s9131_s1] sm:$0xff] (!%p141_p9)   ;;  %v7663_v2 = vld [vmem:[%s9131_s1 + $0x8] sm:$0xff] (!%p141_p9)   ;;  %p164_p10 = scmp.lt.s32.totalorder (!%p141_p9), %s7897_s16, 1  ;;  %v7665_v4 = vld [vmem:[%s9131_s1 + $0x10] sm:$0xff] (!%p141_p9)   ;;  %vm738_vm0 = vsmask.f32 (!%p141_p9), 3328 }
   0xe   : > { %144 = sbr.rel (%p141_p9) target bundleno = 573 (0x23d), region = 32  ;;  %v7662_v1 = vld [vmem:[%s9131_s1 + $0x100] sm:$0xff] (!%p141_p9)   ;;  %6755 = vmatprep.subr.bf16.mxu1 (!%p141_p9), %v7661_v0  ;;  %v7664_v3 = vld [vmem:[%s9131_s1 + $0x108] sm:$0xff] (!%p141_p9)   ;;  %v7666_v5 = vld [vmem:[%s9131_s1 + $0x110] sm:$0xff] (!%p141_p9)   ;;  %vm739_vm1 = vsmask.f32 (!%p141_p9), 7440 }
   0xf   : > { %6947 = vmatprep.subr.bf16.mxu0 (!%p141_p9), %v7662_v1  ;;  %6756 = vmatpush3.bf16.msra.mxu1 (!%p141_p9), %v7661_v0  ;;  %v7667_v6 = vld [vmem:[%s9131_s1 + $0x18] sm:$0xff] (!%p141_p9)   ;;  %v7669_v8 = vld [vmem:[%s9131_s1 + $0x20] sm:$0xff] (!%p141_p9)   ;;  %v7671_v10 = vld [vmem:[%s9131_s1 + $0x28] sm:$0xff] (!%p141_p9)   ;;  %vm1607_vm3 = vcmask (!%p141_p9), 1042432   ;;  %vm1608_vm4 = vcmask (!%p141_p9), 1046532   ;;  %s6538_s17 = sshll.u32 (!%p141_p9), %s7897_s16, 12 }
  0x10   : > { %6948 = vmatpush3.bf16.msra.mxu0 (!%p141_p9), %v7662_v1  ;;  %6757 = vmatprep.subr.bf16.mxu1 (!%p141_p9), %v7663_v2  ;;  %v7668_v7 = vld [vmem:[%s9131_s1 + $0x118] sm:$0xff] (!%p141_p9)   ;;  %v7670_v9 = vld [vmem:[%s9131_s1 + $0x120] sm:$0xff] (!%p141_p9)   ;;  %v7672_v11 = vld [vmem:[%s9131_s1 + $0x128] sm:$0xff] (!%p141_p9)   ;;  %s9080_s25 = scalar_lea.hbm (!%p141_p9), %s9133_s3, %s6538_s17  ;;  %s7853_s27 = smov (!%p141_p9), [#allocation2]  }
  0x11   : > { %6949 = vmatprep.subr.bf16.mxu0 (!%p141_p9), %v7664_v3  ;;  %v7673_v18 = vld [vmem:[%s9131_s1 + $0x30] sm:$0xff] (!%p141_p9)   ;;  %v7675_v32 = vld [vmem:[%s9131_s1 + $0x38] sm:$0xff] (!%p141_p9)   ;;  %vm7985_vm2 = vmor (!%p141_p9), %vm738_vm0, %vm739_vm1  ;;  %s7793_s28 = sshll.u32 (!%p141_p9), %s7853_s27, 4  ;;  %s7794_s28 = int_to_ptr.vmem [resolvable:$false] %s7793_s28 }
  0x12   : > { %v7674_v24 = vld [vmem:[%s9131_s1 + $0x130] sm:$0xff] (!%p141_p9)   ;;  %v7676_v38 = vld [vmem:[%s9131_s1 + $0x138] sm:$0xff] (!%p141_p9)   ;;  %v7679_v47 = vld [vmem:[%s9131_s1 + $0x40] sm:$0xff] (!%p141_p9)   ;;  %s7795_s29 = scalar_lea.vmem (!%p141_p9), %s7794_s28, 8192 }
  0x13   : > { %6758 = vmatpush3.bf16.msra.mxu1 (!%p141_p9), %v7663_v2  ;;  %v7680_v52 = vld [vmem:[%s9131_s1 + $0x140] sm:$0xff] (!%p141_p9)   ;;  %vm8085_vm5 = vmor (!%p141_p9), %vm1607_vm3, %vm1608_vm4 }
  0x14   : > { %6950 = vmatpush3.bf16.msra.mxu0 (!%p141_p9), %v7664_v3  ;;  %6759 = vmatprep.subr.bf16.mxu1 (!%p141_p9), %v7665_v4 }
  0x15   : > { %s165_s9 = scalar_select %p164_p10, %s7897_s16, 1  ;;  %6951 = vmatprep.subr.bf16.mxu0 %v7666_v5 }
  0x17   : > { %s7619_s20 = smul.u32 216, %s165_s9  ;;  %6760 = vmatpush3.bf16.msra.mxu1 %v7665_v4 }
  0x18   : > { %6952 = vmatpush3.bf16.msra.mxu0 %v7666_v5  ;;  %6761 = vmatprep.subr.bf16.mxu1 %v7667_v6 }
  0x19   : > { %6953 = vmatprep.subr.bf16.mxu0 %v7668_v7  ;;  %s7962_s5 = scalar_lea.vmem %s9130_s0, %s7619_s20 }
  0x1a   : > { %v7677_v12 = vld [vmem:[%s7962_s5] sm:$0xff]   ;;  %v6077_v13 = vld [vmem:[%s7962_s5 + $0xc] sm:$0xf]  ;;  %v6078_v14 = vld [vmem:[%s7962_s5 + $0x10] sm:$0xf] }
  0x1b   : > { %6762 = vmatpush3.bf16.msra.mxu1 %v7667_v6  ;;  %6771 = vmatprep.mubr.bf16.mxu1 %v7677_v12  ;;  %v6079_v15 = vld [vmem:[%s7962_s5 + $0x14] sm:$0x1]  ;;  %v2608_v16 = vshrl.u32 %v6077_v13, 16  ;;  %v2611_v17 = vshll.u32 %v6077_v13, 16  ;;  %v2617_v19 = vshll.u32 %v6078_v14, 16  ;;  %v2621_v20 = vshrl.u32 %v6078_v14, 16 }
  0x1c   : > { %6954 = vmatpush3.bf16.msra.mxu0 %v7668_v7  ;;  %6763 = vmatprep.subr.bf16.mxu1 %v7669_v8  ;;  %v2627_v21 = vshll.u32 %v6079_v15, 16  ;;  %v6080_v29 = vld [vmem:[%s7962_s5 + $0x18] sm:$0xf]  ;;  %v6081_v30 = vld [vmem:[%s7962_s5 + $0x1c] sm:$0xf]  ;;  %v7678_v55 = vld [vmem:[%s7962_s5 + $0xc] sm:$0xff]  }
  0x1d   : > { %6955 = vmatprep.subr.bf16.mxu0 %v7670_v9  ;;  %v2610_v22 = vrot.slane %v2608_v16, 4  ;;  %v2613_v23 = vrot.slane %v2611_v17, 5  ;;  %v2619_v25 = vrot.slane %v2617_v19, 5  ;;  %v2623_v26 = vrot.slane %v2621_v20, 4  ;;  %v6082_v31 = vld [vmem:[%s7962_s5 + $0x20] sm:$0x1] }
  0x1e   : > { %v2629_v27 = vrot.slane %v2627_v21, 5  ;;  %v2632_v35 = vshrl.u32 %v6080_v29, 16  ;;  %v2635_v36 = vshll.u32 %v6080_v29, 16  ;;  %v2641_v37 = vshll.u32 %v6081_v30, 16  ;;  %v6083_v53 = vld [vmem:[%s7962_s5 + $0x24] sm:$0xf] }
  0x1f   : > { %6764 = vmatpush3.bf16.msra.mxu1 %v7669_v8  ;;  %v2614_v28 = vor.u32 %v2613_v23, %v2610_v22  ;;  %v2624_v34 = vor.u32 %v2623_v26, %v2619_v25  ;;  %v2645_v40 = vshrl.u32 %v6081_v30, 16  ;;  %v2651_v41 = vshll.u32 %v6082_v31, 16  ;;  %v6084_v57 = vld [vmem:[%s7962_s5 + $0x28] sm:$0xf]  ;;  %v6085_v58 = vld [vmem:[%s7962_s5 + $0x2c] sm:$0x1] }
  0x20   : > { %6956 = vmatpush3.bf16.msra.mxu0 %v7670_v9  ;;  %6765 = vmatprep.subr.bf16.mxu1 %v7671_v10  ;;  %v2634_v43 = vrot.slane %v2632_v35, 4  ;;  %v2637_v44 = vrot.slane %v2635_v36, 5  ;;  %v2643_v45 = vrot.slane %v2641_v37, 5  ;;  %v2656_v59 = vshrl.u32 %v6083_v53, 16  ;;  %v7682_v2 = vld [vmem:[%s7962_s5 + $0x18] sm:$0xff]   ;;  %v7681_v6 = vld [vmem:[%s9131_s1 + $0x148] sm:$0xff]  }
  0x21   : > { %6957 = vmatprep.subr.bf16.mxu0 %v7672_v11  ;;  %v2615_v39 = vrot.slane %v2614_v28, 4  ;;  %v2625_v42 = vrot.slane %v2624_v34, 4  ;;  %v2647_v48 = vrot.slane %v2645_v40, 4  ;;  %v2653_v51 = vrot.slane %v2651_v41, 5  ;;  %v6086_v13 = vld [vmem:[%s7962_s5 + $0x30] sm:$0xf] }
  0x22   : > { %v2638_v50 = vor.u32 %v2637_v44, %v2634_v43  ;;  %v2659_v60 = vshll.u32 %v6083_v53, 16  ;;  %v2665_v62 = vshll.u32 %v6084_v57, 16  ;;  %v2669_v63 = vshrl.u32 %v6084_v57, 16  ;;  %v6087_v14 = vld [vmem:[%s7962_s5 + $0x34] sm:$0xf]  ;;  %v7683_v28 = vld [vmem:[%s7962_s5 + $0x24] sm:$0xff]  }
  0x23   : > { %6766 = vmatpush3.bf16.msra.mxu1 %v7671_v10  ;;  %v2620_v46 = vsel %vm7985_vm2, %v2615_v39, %v2619_v25  ;;  %v2630_v49 = vsel %vm7985_vm2, %v2625_v42, %v2629_v27  ;;  %v2648_v56 = vor.u32 %v2647_v48, %v2643_v45  ;;  %v2675_v0 = vshll.u32 %v6085_v58, 16  ;;  %v7684_v10 = vld [vmem:[%s9131_s1 + $0x48] sm:$0xff]   ;;  %v6088_v17 = vld [vmem:[%s7962_s5 + $0x38] sm:$0x1]  ;;  %v7685_v31 = vld [vmem:[%s9131_s1 + $0x150] sm:$0xff]  }
  0x24   : > { %6958 = vmatpush3.bf16.msra.mxu0 %v7672_v11  ;;  %6767 = vmatprep.subr.bf16.mxu1 %v7673_v18  ;;  %v6141_v54 = vcombine.low %v2620_v46, %v2630_v49  ;;  %v2639_v61 = vrot.slane %v2638_v50, 4  ;;  %v2658_v3 = vrot.slane %v2656_v59, 4  ;;  %v2661_v4 = vrot.slane %v2659_v60, 5  ;;  %v7687_v36 = vld [vmem:[%s7962_s5 + $0x30] sm:$0xff]   ;;  %v6089_v39 = vld [vmem:[%s7962_s5 + $0x3c] sm:$0xf] }
  0x25   : > { %6959 = vmatprep.subr.bf16.mxu0 %v7674_v24  ;;  %v2649_v1 = vrot.slane %v2648_v56, 4  ;;  %v2667_v7 = vrot.slane %v2665_v62, 5  ;;  %v2671_v8 = vrot.slane %v2669_v63, 4  ;;  %v2677_v9 = vrot.slane %v2675_v0, 5  ;;  %v6090_v40 = vld [vmem:[%s7962_s5 + $0x40] sm:$0xf] }
  0x26   : > { %6963 = vmatprep.mubr.bf16.mxu0 %v6141_v54  ;;  %v2644_v5 = vsel %vm7985_vm2, %v2639_v61, %v2643_v45  ;;  %v2662_v12 = vor.u32 %v2661_v4, %v2658_v3  ;;  %v2683_v19 = vshll.u32 %v6086_v13, 16  ;;  %v2689_v21 = vshll.u32 %v6087_v14, 16  ;;  %v6091_v41 = vld [vmem:[%s7962_s5 + $0x44] sm:$0x1]  ;;  %v7689_v54 = vld [vmem:[%s9131_s1 + $0x50] sm:$0xff]  }
  0x27   : > { %6768 = vmatpush3.bf16.msra.mxu1 %v7673_v18  ;;  %v2654_v11 = vsel %vm7985_vm2, %v2649_v1, %v2653_v51  ;;  %v2672_v16 = vor.u32 %v2671_v8, %v2667_v7  ;;  %v2680_v18 = vshrl.u32 %v6086_v13, 16  ;;  %v2693_v22 = vshrl.u32 %v6087_v14, 16  ;;  %v6092_v58 = vld [vmem:[%s7962_s5 + $0x48] sm:$0xf]  ;;  %v6093_v61 = vld [vmem:[%s7962_s5 + $0x4c] sm:$0xf] }
  0x28   : > { %6960 = vmatpush3.bf16.msra.mxu0 %v7674_v24  ;;  %6769 = vmatprep.subr.bf16.mxu1 %v7675_v32  ;;  %v6142_v15 = vcombine.low %v2644_v5, %v2654_v11  ;;  %v2663_v20 = vrot.slane %v2662_v12, 4  ;;  %v2699_v23 = vshll.u32 %v6088_v17, 16  ;;  %v2685_v26 = vrot.slane %v2683_v19, 5  ;;  %v6094_v62 = vld [vmem:[%s7962_s5 + $0x50] sm:$0x1]  ;;  %v7690_v8 = vld [vmem:[%s9131_s1 + $0x160] sm:$0xff]  }
  0x29   : > { %6961 = vmatprep.subr.bf16.mxu0 %v7676_v38  ;;  %v2673_v24 = vrot.slane %v2672_v16, 4  ;;  %v2682_v25 = vrot.slane %v2680_v18, 4  ;;  %v2691_v29 = vrot.slane %v2689_v21, 5  ;;  %v2695_v30 = vrot.slane %v2693_v22, 4  ;;  %v7692_v18 = vld [vmem:[%s7962_s5 + $0x48] sm:$0xff]  }
  0x2a   : > { %v2668_v27 = vsel %vm7985_vm2, %v2663_v20, %v2667_v7  ;;  %v2701_v35 = vrot.slane %v2699_v23, 5  ;;  %v2704_v43 = vshrl.u32 %v6089_v39, 16  ;;  %v2707_v44 = vshll.u32 %v6089_v39, 16  ;;  %v6095_v19 = vld [vmem:[%s7962_s5 + $0x54] sm:$0xf]  ;;  %v7691_v23 = vld [vmem:[%s9131_s1 + $0x168] sm:$0xff]  }
  0x2b   : > { %6770 = vmatpush3.bf16.msra.mxu1 %v7675_v32  ;;  %v2678_v32 = vsel %vm7985_vm2, %v2673_v24, %v2677_v9  ;;  %v2686_v34 = vor.u32 %v2685_v26, %v2682_v25  ;;  %v2713_v45 = vshll.u32 %v6090_v40, 16  ;;  %v2717_v48 = vshrl.u32 %v6090_v40, 16  ;;  %v6096_v20 = vld [vmem:[%s7962_s5 + $0x58] sm:$0xf]  ;;  %v6097_v24 = vld [vmem:[%s7962_s5 + $0x5c] sm:$0x1] }
  0x2c   : > { %6962 = vmatpush3.bf16.msra.mxu0 %v7676_v38  ;;  %6803 = vmatprep.subr.bf16.mxu1 %v7679_v47  ;;  %v6143_v37 = vcombine.low %v2668_v27, %v2678_v32  ;;  %v2696_v38 = vor.u32 %v2695_v30, %v2691_v29  ;;  %v2723_v49 = vshll.u32 %v6091_v41, 16  ;;  %v2706_v51 = vrot.slane %v2704_v43, 4  ;;  %v7693_v39 = vld [vmem:[%s7962_s5 + $0x54] sm:$0xff]   ;;  %v6098_v43 = vld [vmem:[%s7962_s5 + $0x60] sm:$0xf] }
  0x2d   : > { %6995 = vmatprep.subr.bf16.mxu0 %v7680_v52  ;;  %v2687_v42 = vrot.slane %v2686_v34, 4  ;;  %v2715_v53 = vrot.slane %v2713_v45, 5  ;;  %v2719_v56 = vrot.slane %v2717_v48, 4  ;;  %v2728_v63 = vshrl.u32 %v6092_v58, 16  ;;  %v7694_v40 = vld [vmem:[%s9131_s1 + $0x58] sm:$0xff]  }
  0x2e   : > { %6772 = vmatmul.mubr.bf16.vlgmr.msra.gmra.mrb[0].mxu1 %v7678_v55  ;;  %v2697_v46 = vrot.slane %v2696_v38, 4  ;;  %v2725_v57 = vrot.slane %v2723_v49, 5  ;;  %v2731_v0 = vshll.u32 %v6092_v58, 16  ;;  %v2741_v3 = vshrl.u32 %v6093_v61, 16  ;;  %v6100_v45 = vld [vmem:[%s7962_s5 + $0x68] sm:$0x1] }
  0x2f   : > { %6964 = vmatmul.mubr.bf16.vlgmr.msra.gmra.mrb[0].mxu0 %v6142_v15  ;;  %6804 = vmatpush3.bf16.msra.mxu1 %v7679_v47  ;;  %v7686_v47 = vld [vmem:[%s9131_s1 + $0x158] sm:$0xff]   ;;  %v2692_v50 = vsel %vm7985_vm2, %v2687_v42, %v2691_v29  ;;  %v2720_v1 = vor.u32 %v2719_v56, %v2715_v53  ;;  %v2747_v4 = vshll.u32 %v6094_v62, 16  ;;  %v2752_v25 = vshrl.u32 %v6095_v19, 16 }
  0x30   : > { %6996 = vmatpush3.bf16.msra.mxu0 %v7680_v52  ;;  %6775 = vmatprep.mubr.bf16.mxu1 %v7682_v2  ;;  %v2709_v52 = vrot.slane %v2707_v44, 5  ;;  %v2702_v55 = vsel %vm7985_vm2, %v2697_v46, %v2701_v35  ;;  %v2737_v2 = vshll.u32 %v6093_v61, 16  ;;  %v2733_v7 = vrot.slane %v2731_v0, 5  ;;  %v6099_v44 = vld [vmem:[%s7962_s5 + $0x64] sm:$0xf] }
  0x31   : > { %6997 = vmatprep.subr.bf16.mxu0 %v7681_v6  ;;  %6805 = vmatprep.subr.bf16.mxu1 %v7684_v10  ;;  %v6144_v59 = vcombine.low %v2692_v50, %v2702_v55  ;;  %v2721_v9 = vrot.slane %v2720_v1, 4  ;;  %v2743_v12 = vrot.slane %v2741_v3, 4  ;;  %v2749_v17 = vrot.slane %v2747_v4, 5  ;;  %v7695_v50 = vld [vmem:[%s9131_s1 + $0x170] sm:$0xff]   ;;  %v6165_v0 = vld [vmem:[%s7962_s5 + $0xc] sm:$0xe] }
  0x32   : > { %6967 = vmatprep.mubr.bf16.mxu0 %v6143_v37  ;;  %v2710_v60 = vor.u32 %v2709_v52, %v2706_v51  ;;  %v2739_v11 = vrot.slane %v2737_v2, 5  ;;  %v2755_v26 = vshll.u32 %v6095_v19, 16  ;;  %v2765_v29 = vshrl.u32 %v6096_v20, 16 }
  0x33   : > { %6806 = vmatpush3.bf16.msra.mxu1 %v7684_v10  ;;  %v7688_v10 = vld [vmem:[%s7962_s5 + $0x3c] sm:$0xff]   ;;  %v2726_v15 = vsel %vm7985_vm2, %v2721_v9, %v2725_v57  ;;  %v2771_v30 = vshll.u32 %v6097_v24, 16  ;;  %v2754_v32 = vrot.slane %v2752_v25, 4  ;;  %v2779_v48 = vshll.u32 %v6098_v43, 16 }
  0x34   : > { %6998 = vmatpush3.bf16.msra.mxu0 %v7681_v6  ;;  %6807 = vmatprep.subr.bf16.mxu1 %v7689_v54  ;;  %v2711_v5 = vrot.slane %v2710_v60, 4  ;;  %v2730_v6 = vrot.slane %v2728_v63, 4  ;;  %v2744_v16 = vor.u32 %v2743_v12, %v2739_v11  ;;  %v2757_v34 = vrot.slane %v2755_v26, 5  ;;  %v7696_v60 = vld [vmem:[%s9131_s1 + $0x178] sm:$0xff]   ;;  %v7697_v63 = vld [vmem:[%s7962_s5 + $0x60] sm:$0xff]  }
  0x35   : > { %6999 = vmatprep.subr.bf16.mxu0 %v7685_v31  ;;  %v2767_v37 = vrot.slane %v2765_v29, 4  ;;  %v2773_v38 = vrot.slane %v2771_v30, 5  ;;  %v2785_v49 = vshll.u32 %v6099_v44, 16  ;;  %v2789_v52 = vshrl.u32 %v6099_v44, 16  ;;  %v6171_v29 = vld [vmem:[%s7962_s5 + $0x24] sm:$0xe] }
  0x36   : > { %6776 = vmatmul.mubr.bf16.gmra.mrb[4].mxu1 %v7683_v28  ;;  %v2716_v13 = vsel %vm7985_vm2, %v2711_v5, %v2715_v53  ;;  %v2734_v14 = vor.u32 %v2733_v7, %v2730_v6  ;;  %v2745_v27 = vrot.slane %v2744_v16, 4  ;;  %v2761_v28 = vshll.u32 %v6096_v20, 16  ;;  %v6166_v5 = vld [vmem:[%s7962_s5 + $0x10] sm:$0xf]  ;;  %v6167_v6 = vld [vmem:[%s7962_s5 + $0x14] sm:$0x1] }
  0x37   : > { %6779 = vmatprep.mubr.bf16.mxu1 %v7687_v36  ;;  %6808 = vmatpush3.bf16.msra.mxu1 %v7689_v54  ;;  %v6145_v21 = vcombine.low %v2716_v13, %v2726_v15  ;;  %v2758_v42 = vor.u32 %v2757_v34, %v2754_v32  ;;  %v2795_v53 = vshll.u32 %v6100_v45, 16  ;;  %v2781_v56 = vrot.slane %v2779_v48, 5  ;;  %v7698_v13 = vld [vmem:[%s7962_s5 + $0x6c] sm:$0xff]   ;;  %v6169_v20 = vld [vmem:[%s7962_s5 + $0x1c] sm:$0xf] }
  0x38   : > { %7000 = vmatpush3.bf16.msra.mxu0 %v7685_v31  ;;  %v2735_v22 = vrot.slane %v2734_v14, 4  ;;  %v2750_v35 = vsel %vm7985_vm2, %v2745_v27, %v2749_v17  ;;  %v2763_v36 = vrot.slane %v2761_v28, 5  ;;  %6809 = vmatprep.subr.bf16.mxu1 %v7694_v40  ;;  %v2787_v57 = vrot.slane %v2785_v49, 5  ;;  %v6168_v17 = vld [vmem:[%s7962_s5 + $0x18] sm:$0xe] }
  0x39   : > { %6968 = vmatmul.mubr.bf16.gmra.mrb[4].mxu0 %v6144_v59  ;;  %7001 = vmatprep.subr.bf16.mxu0 %v7686_v47  ;;  %v2759_v51 = vrot.slane %v2758_v42, 4  ;;  %v2791_v59 = vrot.slane %v2789_v52, 4  ;;  %v2797_v3 = vrot.slane %v2795_v53, 5  ;;  %v6213_v7 = vrot.slane %v6165_v0, 9  ;;  %v6172_v30 = vld [vmem:[%s7962_s5 + $0x28] sm:$0xf] }
  0x3a   : > { %6971 = vmatprep.mubr.bf16.mxu0 %v6145_v21  ;;  %v2740_v31 = vsel %vm7985_vm2, %v2735_v22, %v2739_v11  ;;  %v2768_v46 = vor.u32 %v2767_v37, %v2763_v36  ;;  %v3475_v9 = vrot.slane %v6166_v5, 5  ;;  %v7699_v11 = vld [vmem:[%s9131_s1 + $0x60] sm:$0xff]   ;;  %v6214_v22 = vrot.slane %v6168_v17, 9  ;;  %v6175_v44 = vld [vmem:[%s7962_s5 + $0x34] sm:$0xf] }
  0x3b   : > { %v6146_v41 = vcombine.low %v2740_v31, %v2750_v35  ;;  %6810 = vmatpush3.bf16.msra.mxu1 %v7694_v40  ;;  %v2764_v58 = vsel %vm7985_vm2, %v2759_v51, %v2763_v36  ;;  %v2792_v2 = vor.u32 %v2791_v59, %v2787_v57  ;;  %v6170_v21 = vld [vmem:[%s7962_s5 + $0x20] sm:$0x1]  ;;  %v3482_v26 = vrot.slane %v6169_v20, 5  ;;  %v6173_v31 = vld [vmem:[%s7962_s5 + $0x2c] sm:$0x1]  ;;  %v7701_v42 = vld [vmem:[%s7962_s5 + $0x84] sm:$0xff]  }
  0x3c   : > { %7002 = vmatpush3.bf16.msra.mxu0 %v7686_v47  ;;  %v2776_v47 = vshrl.u32 %v6098_v43, 16  ;;  %v2769_v54 = vrot.slane %v2768_v46, 4  ;;  %v3476_v15 = vsel %vm8085_vm5, %v6213_v7, %v3475_v9  ;;  %v3477_v16 = vrot.slane %v3475_v9, 4  ;;  %6811 = vmatprep.subr.bf16.mxu1 %v7699_v11  ;;  %v7703_v36 = vld [vmem:[%s9131_s1 + $0x180] sm:$0xff]   ;;  %v6174_v43 = vld [vmem:[%s7962_s5 + $0x30] sm:$0xe] }
  0x3d   : > { %7003 = vmatprep.subr.bf16.mxu0 %v7690_v8  ;;  %v2793_v12 = vrot.slane %v2792_v2, 4  ;;  %v3485_v27 = vrot.slane %v6170_v21, 5  ;;  %v3484_v32 = vrot.slane %v3482_v26, 4  ;;  %v6215_v34 = vrot.slane %v6171_v29, 9  ;;  %v6176_v45 = vld [vmem:[%s7962_s5 + $0x38] sm:$0x1] }
  0x3e   : > { %6780 = vmatmul.mubr.bf16.gmra.mrb[8].mxu1 %v7688_v10  ;;  %v2778_v55 = vrot.slane %v2776_v47, 4  ;;  %v2774_v61 = vsel %vm7985_vm2, %v2769_v54, %v2773_v38  ;;  %v3478_v10 = vrot.slane %v6167_v6, 5  ;;  %v3489_v35 = vrot.slane %v6172_v30, 5  ;;  %v7706_v47 = vld [vmem:[%s9131_s1 + $0x70] sm:$0xff]   ;;  %v6177_v54 = vld [vmem:[%s7962_s5 + $0x3c] sm:$0xe] }
  0x3f   : > { %6783 = vmatprep.mubr.bf16.mxu1 %v7692_v18  ;;  %v6147_v1 = vcombine.low %v2764_v58, %v2774_v61  ;;  %v7700_v18 = vld [vmem:[%s7962_s5 + $0x78] sm:$0xff]   ;;  %v2798_v19 = vsel %vm7985_vm2, %v2793_v12, %v2797_v3  ;;  %6812 = vmatpush3.bf16.msra.mxu1 %v7699_v11  ;;  %v3483_v37 = vsel %vm8085_vm5, %v6214_v22, %v3482_v26  ;;  %v3492_v38 = vrot.slane %v6173_v31, 5  ;;  %v7704_v52 = vld [vmem:[%s7962_s5 + $0x90] sm:$0xff]   ;;  %v6180_v61 = vld [vmem:[%s7962_s5 + $0x48] sm:$0xe] }
  0x40   : > { %7004 = vmatpush3.bf16.msra.mxu0 %v7690_v8  ;;  %v2782_v62 = vor.u32 %v2781_v56, %v2778_v55  ;;  %v3479_v25 = vsel %vm8085_vm5, %v3477_v16, %v3478_v10  ;;  %v3490_v40 = vsel %vm8085_vm5, %v6215_v34, %v3489_v35  ;;  %v6216_v46 = vrot.slane %v6174_v43, 9  ;;  %v6178_v56 = vld [vmem:[%s7962_s5 + $0x40] sm:$0xf]  ;;  %v6182_v2 = vld [vmem:[%s7962_s5 + $0x50] sm:$0x1]  ;;  %v7707_v10 = vld [vmem:[%s9131_s1 + $0x188] sm:$0xff]  }
  0x41   : > { %7005 = vmatprep.subr.bf16.mxu0 %v7691_v23  ;;  %6972 = vmatmul.mubr.bf16.gmra.mrb[8].mxu0 %v6146_v41  ;;  %v6245_v28 = vcombine.low %v3476_v15, %v3479_v25  ;;  %v3491_v41 = vrot.slane %v3489_v35, 4  ;;  %v3499_v51 = vrot.slane %v6176_v45, 5  ;;  %v6217_v58 = vrot.slane %v6177_v54, 9  ;;  %v7705_v5 = vld [vmem:[%s7962_s5 + $0x9c] sm:$0xff]   ;;  %v6184_v15 = vld [vmem:[%s7962_s5 + $0x58] sm:$0xf] }
  0x42   : > { %v2783_v8 = vrot.slane %v2782_v62, 4  ;;  %6975 = vmatprep.mubr.bf16.mxu0 %v6147_v1  ;;  %v3503_v59 = vrot.slane %v6178_v56, 5  ;;  %v6181_v1 = vld [vmem:[%s7962_s5 + $0x4c] sm:$0xf]  ;;  %v6218_v6 = vrot.slane %v6180_v61, 9  ;;  %v3513_v9 = vrot.slane %v6182_v2, 5 }
  0x43   : > { %v3493_v49 = vsel %vm8085_vm5, %v3491_v41, %v3492_v38  ;;  %v3510_v7 = vrot.slane %v6181_v1, 5  ;;  %v6185_v17 = vld [vmem:[%s7962_s5 + $0x5c] sm:$0x1]  ;;  %v6186_v26 = vld [vmem:[%s7962_s5 + $0x60] sm:$0xe]  ;;  %v7711_v30 = vld [vmem:[%s9131_s1 + $0x190] sm:$0xff]  }
  0x44   : > { %7006 = vmatpush3.bf16.msra.mxu0 %v7691_v23  ;;  %v2788_v14 = vsel %vm7985_vm2, %v2783_v8, %v2787_v57  ;;  %v7702_v23 = vld [vmem:[%s9131_s1 + $0x68] sm:$0xff]   ;;  %v6247_v53 = vcombine.low %v3490_v40, %v3493_v49  ;;  %v6179_v57 = vld [vmem:[%s7962_s5 + $0x44] sm:$0x1]  ;;  %v3505_v0 = vrot.slane %v3503_v59, 4  ;;  %v3504_v3 = vsel %vm8085_vm5, %v6217_v58, %v3503_v59  ;;  %v7710_v25 = vld [vmem:[%s9131_s1 + $0x78] sm:$0xff]  }
  0x45   : > { %7007 = vmatprep.subr.bf16.mxu0 %v7695_v50  ;;  %v6148_v24 = vcombine.low %v2788_v14, %v2798_v19  ;;  %6813 = vmatprep.subr.bf16.mxu1 %v7702_v23  ;;  %v3512_v12 = vrot.slane %v3510_v7, 4  ;;  %v6183_v14 = vld [vmem:[%s7962_s5 + $0x54] sm:$0xe]  ;;  %v3517_v19 = vrot.slane %v6184_v15, 5  ;;  %v3520_v20 = vrot.slane %v6185_v17, 5 }
  0x46   : > { %6784 = vmatmul.mubr.bf16.gmra.mrb[12].mxu1 %v7693_v39  ;;  %v3486_v39 = vsel %vm8085_vm5, %v3484_v32, %v3485_v27  ;;  %v3511_v21 = vsel %vm8085_vm5, %v6218_v6, %v3510_v7  ;;  %v6187_v27 = vld [vmem:[%s7962_s5 + $0x64] sm:$0xf]  ;;  %v6220_v29 = vrot.slane %v6186_v26, 9  ;;  %v658_v38 = vld [vmem:[%s7962_s5] sm:$0xf] }
  0x47   : > { %6787 = vmatprep.mubr.bf16.mxu1 %v7697_v63  ;;  %6814 = vmatpush3.bf16.msra.mxu1 %v7702_v23  ;;  %v6246_v48 = vcombine.low %v3483_v37, %v3486_v39  ;;  %v3514_v22 = vsel %vm8085_vm5, %v3512_v12, %v3513_v9  ;;  %v3524_v32 = vrot.slane %v6187_v27, 5  ;;  %v7709_v37 = vld [vmem:[%s7962_s5 + $0xb4] sm:$0xff]   ;;  %v659_v39 = vld [vmem:[%s7962_s5 + $0x4] sm:$0xf]  ;;  %v660_v40 = vld [vmem:[%s7962_s5 + $0x8] sm:$0x1] }
  0x48   : > { %7008 = vmatpush3.bf16.msra.mxu0 %v7695_v50  ;;  %v3496_v50 = vrot.slane %v6175_v44, 5  ;;  %6815 = vmatprep.subr.bf16.mxu1 %v7706_v47  ;;  %v6250_v35 = vcombine.low %v3511_v21, %v3514_v22  ;;  %v742_v43 = vshrl.u32 %v658_v38, 16  ;;  %v745_v44 = vshll.u32 %v658_v38, 16  ;;  %v6189_v45 = vld [vmem:[%s7962_s5 + $0x6c] sm:$0xe]  ;;  %v7715_v9 = vld [vmem:[%s9131_s1 + $0x1a0] sm:$0xff]  }
  0x49   : > { %7009 = vmatprep.subr.bf16.mxu0 %v7696_v60  ;;  %6976 = vmatmul.mubr.bf16.gmra.mrb[12].mxu0 %v6148_v24  ;;  %v3519_v24 = vrot.slane %v3517_v19, 4  ;;  %v8177_v41 = vsel %vm8085_vm5, %v6220_v29, %v3524_v32  ;;  %v761_v49 = vshll.u32 %v660_v40, 16  ;;  %v661_v61 = vld [vmem:[%s7962_s5 + $0xc] sm:$0xf]  ;;  %v662_v2 = vld [vmem:[%s7962_s5 + $0x10] sm:$0xf] }
  0x4a   : > { %7011 = vmatprep.mubr.bf16.mxu0 %v6245_v28  ;;  %v3498_v55 = vrot.slane %v3496_v50, 4  ;;  %v3497_v62 = vsel %vm8085_vm5, %v6216_v46, %v3496_v50  ;;  %v6188_v28 = vld [vmem:[%s7962_s5 + $0x68] sm:$0x1]  ;;  %v8183_v46 = vld [vmem:[%s9131_s1 + $0x80] sm:$0xff]   ;;  %v6190_v50 = vld [vmem:[%s7962_s5 + $0x70] sm:$0xf] }
  0x4b   : > { %6816 = vmatpush3.bf16.msra.mxu1 %v7706_v47  ;;  %v3521_v31 = vsel %vm8085_vm5, %v3519_v24, %v3520_v20  ;;  %v3527_v34 = vrot.slane %v6188_v28, 5  ;;  %v751_v47 = vshll.u32 %v659_v39, 16  ;;  %v747_v54 = vrot.slane %v745_v44, 5  ;;  %v6193_v24 = vld [vmem:[%s7962_s5 + $0x7c] sm:$0xf] }
  0x4c   : > { %7010 = vmatpush3.bf16.msra.mxu0 %v7696_v60  ;;  %v3506_v60 = vrot.slane %v6179_v57, 5  ;;  %v3500_v63 = vsel %vm8085_vm5, %v3498_v55, %v3499_v51  ;;  %6817 = vmatprep.subr.bf16.mxu1 %v7710_v25  ;;  %v6221_v51 = vrot.slane %v6189_v45, 9  ;;  %v6191_v55 = vld [vmem:[%s7962_s5 + $0x74] sm:$0x1]  ;;  %v3531_v56 = vrot.slane %v6190_v50, 5  ;;  %v7713_v57 = vld [vmem:[%s9131_s1 + $0x198] sm:$0xff]  }
  0x4d   : > { %7043 = vmatprep.subr.bf16.mxu0 %v7703_v36  ;;  %v6248_v11 = vcombine.low %v3497_v62, %v3500_v63  ;;  %v753_v58 = vrot.slane %v751_v47, 5  ;;  %v3534_v1 = vrot.slane %v6191_v55, 5  ;;  %v766_v6 = vshrl.u32 %v661_v61, 16  ;;  %v6194_v27 = vld [vmem:[%s7962_s5 + $0x80] sm:$0x1] }
  0x4e   : > { %6788 = vmatmul.mubr.bf16.gmra.mrb[16].mxu1 %v7698_v13  ;;  %v3507_v8 = vsel %vm8085_vm5, %v3505_v0, %v3506_v60  ;;  %v7708_v13 = vld [vmem:[%s7962_s5 + $0xa8] sm:$0xff]   ;;  %v763_v60 = vrot.slane %v761_v49, 5  ;;  %v3533_v0 = vrot.slane %v3531_v56, 4  ;;  %v769_v7 = vshll.u32 %v661_v61, 16  ;;  %v665_v40 = vld [vmem:[%s7962_s5 + $0x1c] sm:$0xf] }
  0x4f   : > { %6791 = vmatprep.mubr.bf16.mxu1 %v7700_v18  ;;  %v6249_v16 = vcombine.low %v3504_v3, %v3507_v8  ;;  %v6219_v18 = vrot.slane %v6183_v14, 9  ;;  %6818 = vmatpush3.bf16.msra.mxu1 %v7710_v25  ;;  %v663_v3 = vld [vmem:[%s7962_s5 + $0x14] sm:$0x1]  ;;  %v775_v8 = vshll.u32 %v662_v2, 16  ;;  %v779_v12 = vshrl.u32 %v662_v2, 16  ;;  %v7720_v2 = vld [vmem:[%s9131_s1 + $0x1b8] sm:$0xff]  }
  0x50   : > { %6851 = vmatprep.subr.bf16.mxu1 %v8183_v46  ;;  %v3535_v15 = vsel %vm8085_vm5, %v3533_v0, %v3534_v1  ;;  %v771_v17 = vrot.slane %v769_v7, 5  ;;  %v3538_v29 = vrot.slane %v6193_v24, 5  ;;  %v799_v45 = vshll.u32 %v665_v40, 16  ;;  %v6195_v47 = vld [vmem:[%s7962_s5 + $0x84] sm:$0xe] }
  0x51   : > { %7012 = vmatmul.mubr.bf16.vlgmr.msra.gmra.mrb[0].mxu0 %v6246_v48  ;;  %v3518_v23 = vsel %vm8085_vm5, %v6219_v18, %v3517_v19  ;;  %v755_v48 = vshrl.u32 %v659_v39, 16  ;;  %v6192_v18 = vld [vmem:[%s7962_s5 + $0x78] sm:$0xe]  ;;  %v7717_v19 = vld [vmem:[%s9131_s1 + $0x1a8] sm:$0xff]   ;;  %v777_v21 = vrot.slane %v775_v8, 5  ;;  %v781_v22 = vrot.slane %v779_v12, 4 }
  0x52   : > { %7015 = vmatprep.mubr.bf16.mxu0 %v6247_v53  ;;  %7044 = vmatpush3.bf16.msra.mxu0 %v7703_v36  ;;  %v6251_v36 = vcombine.low %v3518_v23, %v3521_v31  ;;  %v744_v53 = vrot.slane %v742_v43, 4  ;;  %v6222_v28 = vrot.slane %v6192_v18, 9  ;;  %v3540_v39 = vrot.slane %v3538_v29, 4  ;;  %v669_v1 = vld [vmem:[%s7962_s5 + $0x2c] sm:$0x1] }
  0x53   : > { %7045 = vmatprep.subr.bf16.mxu0 %v7707_v10  ;;  %v757_v59 = vrot.slane %v755_v48, 4  ;;  %v803_v50 = vshrl.u32 %v665_v40, 16 }
  0x54   : > { %v748_v63 = vor.u32 %v747_v54, %v744_v53  ;;  %v8223_v38 = vsel %vm8085_vm5, %v6222_v28, %v3538_v29  ;;  %v6197_v53 = vld [vmem:[%s7962_s5 + $0x8c] sm:$0x1] }
  0x55   : > { %v7714_v54 = vld [vmem:[%s9131_s1 + $0x88] sm:$0xff]   ;;  %v3548_v7 = vrot.slane %v6197_v53, 5 }
  0x56   : > { %6792 = vmatmul.mubr.bf16.gmra.mrb[20].mxu1 %v7701_v42  ;;  %7046 = vmatpush3.bf16.msra.mxu0 %v7707_v10  ;;  %v3526_v42 = vrot.slane %v3524_v32, 4  ;;  %v749_v10 = vrot.slane %v748_v63, 4  ;;  %v782_v32 = vor.u32 %v781_v22, %v777_v21  ;;  %v805_v63 = vrot.slane %v803_v50, 4  ;;  %v6202_v50 = vld [vmem:[%s7962_s5 + $0xa0] sm:$0xf] }
  0x57   : > { %6795 = vmatprep.mubr.bf16.mxu1 %v7704_v52  ;;  %7047 = vmatprep.subr.bf16.mxu0 %v7711_v30 }
  0x58   : > { %v8188_v52 = vsel %vm8085_vm5, %v3526_v42, %v3527_v34  ;;  %v754_v20 = vsel %vm7985_vm2, %v749_v10, %v753_v58  ;;  %v3541_v34 = vrot.slane %v6194_v27, 5  ;;  %v783_v42 = vrot.slane %v782_v32, 4  ;;  %v7718_v32 = vld [vmem:[%s9131_s1 + $0x98] sm:$0xff]  }
  0x59   : > { %7016 = vmatmul.mubr.bf16.gmra.mrb[4].mxu0 %v6248_v11  ;;  %v6252_v62 = vcombine.low %v8177_v41, %v8188_v52  ;;  %v3532_v11 = vsel %vm8085_vm5, %v6221_v51, %v3531_v56  ;;  %v666_v41 = vld [vmem:[%s7962_s5 + $0x20] sm:$0x1]  ;;  %v6196_v52 = vld [vmem:[%s7962_s5 + $0x88] sm:$0xf] }
  0x5a   : > { %7019 = vmatprep.mubr.bf16.mxu0 %v6249_v16  ;;  %7048 = vmatpush3.bf16.msra.mxu0 %v7711_v30  ;;  %v768_v16 = vrot.slane %v766_v6, 4  ;;  %v6253_v31 = vcombine.low %v3532_v11, %v3535_v15  ;;  %v3542_v49 = vsel %vm8085_vm5, %v3540_v39, %v3541_v34  ;;  %v809_v51 = vshll.u32 %v666_v41, 16  ;;  %v672_v39 = vld [vmem:[%s7962_s5 + $0x38] sm:$0x1] }
  0x5b   : > { %7049 = vmatprep.subr.bf16.mxu0 %v7713_v57  ;;  %v6254_v56 = vcombine.low %v8223_v38, %v3542_v49  ;;  %v3545_v6 = vrot.slane %v6196_v52, 5  ;;  %v671_v38 = vld [vmem:[%s7962_s5 + $0x34] sm:$0xf] }
  0x5c   : > { %v772_v26 = vor.u32 %v771_v17, %v768_v16  ;;  %v811_v0 = vrot.slane %v809_v51, 5  ;;  %v6198_v16 = vld [vmem:[%s7962_s5 + $0x90] sm:$0xe]  ;;  %v847_v49 = vshll.u32 %v671_v38, 16 }
  0x5d   : > { %v7716_v17 = vld [vmem:[%s9131_s1 + $0x90] sm:$0xff]  }
  0x5e   : > { %6796 = vmatmul.mubr.bf16.gmra.mrb[24].mxu1 %v7705_v5  ;;  %v758_v5 = vor.u32 %v757_v59, %v753_v58  ;;  %7050 = vmatpush3.bf16.msra.mxu0 %v7713_v57  ;;  %v667_v59 = vld [vmem:[%s7962_s5 + $0x24] sm:$0xf] }
  0x5f   : > { %6799 = vmatprep.mubr.bf16.mxu1 %v7708_v13  ;;  %v785_v13 = vshll.u32 %v663_v3, 16  ;;  %7051 = vmatprep.subr.bf16.mxu0 %v7715_v9  ;;  %v817_v10 = vshll.u32 %v667_v59, 16 }
  0x60   : > { %v759_v14 = vrot.slane %v758_v5, 4  ;;  %v6223_v5 = vrot.slane %v6195_v47, 9 }
  0x61   : > { %7020 = vmatmul.mubr.bf16.gmra.mrb[8].mxu0 %v6250_v35  ;;  %v787_v23 = vrot.slane %v785_v13, 5  ;;  %v664_v35 = vld [vmem:[%s7962_s5 + $0x18] sm:$0xf] }
  0x62   : > { %7023 = vmatprep.mubr.bf16.mxu0 %v6251_v36  ;;  %v764_v25 = vsel %vm7985_vm2, %v759_v14, %v763_v60  ;;  %7052 = vmatpush3.bf16.msra.mxu0 %v7715_v9  ;;  %v7719_v36 = vld [vmem:[%s9131_s1 + $0x1b0] sm:$0xff]   ;;  %v790_v43 = vshrl.u32 %v664_v35, 16  ;;  %v793_v44 = vshll.u32 %v664_v35, 16  ;;  %v668_v60 = vld [vmem:[%s7962_s5 + $0x28] sm:$0xf]  ;;  %v814_v9 = vshrl.u32 %v667_v59, 16 }
  0x63   : > { %v5925_v30 = vcombine.low %v754_v20, %v764_v25  ;;  %7053 = vmatprep.subr.bf16.mxu0 %v7717_v19  ;;  %v788_v55 = vsel %vm7985_vm2, %v783_v42, %v787_v23  ;;  %v823_v11 = vshll.u32 %v668_v60, 16  ;;  %v3546_v13 = vsel %vm8085_vm5, %v6223_v5, %v3545_v6  ;;  %v8287_v5 = vld [vmem:[%s9131_s1 + $0x1c0] sm:$0xff]  }
  0x64   : > { %v792_v57 = vrot.slane %v790_v43, 4  ;;  %v795_v58 = vrot.slane %v793_v44, 5  ;;  %v3547_v14 = vrot.slane %v3545_v6, 4  ;;  %v827_v15 = vshrl.u32 %v668_v60, 16  ;;  %v6201_v44 = vld [vmem:[%s7962_s5 + $0x9c] sm:$0xe] }
  0x65   : > { %v819_v20 = vrot.slane %v817_v10, 5  ;;  %v833_v25 = vshll.u32 %v669_v1, 16  ;;  %v849_v59 = vrot.slane %v847_v49, 5  ;;  %v857_v60 = vshll.u32 %v672_v39, 16 }
  0x66   : > { %6800 = vmatmul.mubr.bf16.gmra.mrb[28].mxu1 %v7709_v37  ;;  %v773_v37 = vrot.slane %v772_v26, 4  ;;  %7054 = vmatpush3.bf16.msra.mxu0 %v7717_v19  ;;  %v796_v3 = vor.u32 %v795_v58, %v792_v57  ;;  %v816_v19 = vrot.slane %v814_v9, 4  ;;  %v3549_v23 = vsel %vm8085_vm5, %v3547_v14, %v3548_v7  ;;  %v6200_v26 = vld [vmem:[%s7962_s5 + $0x98] sm:$0x1]  ;;  %v6204_v14 = vld [vmem:[%s7962_s5 + $0xa8] sm:$0xe] }
  0x67   : > { %6819 = vmatprep.mubr.bf16.mxu1 %v5925_v30  ;;  %7055 = vmatprep.subr.bf16.mxu0 %v7719_v36  ;;  %v829_v24 = vrot.slane %v827_v15, 4  ;;  %v6255_v28 = vcombine.low %v3546_v13, %v3549_v23  ;;  %v6224_v30 = vrot.slane %v6198_v16, 9  ;;  %v3555_v41 = vrot.slane %v6200_v26, 5  ;;  %v6206_v23 = vld [vmem:[%s7962_s5 + $0xb0] sm:$0x1] }
  0x68   : > { %v778_v48 = vsel %vm7985_vm2, %v773_v37, %v777_v21  ;;  %v797_v12 = vrot.slane %v796_v3, 4  ;;  %v825_v21 = vrot.slane %v823_v11, 5  ;;  %v820_v29 = vor.u32 %v819_v20, %v816_v19  ;;  %v675_v3 = vld [vmem:[%s7962_s5 + $0x44] sm:$0x1]  ;;  %v6205_v19 = vld [vmem:[%s7962_s5 + $0xac] sm:$0xf] }
  0x69   : > { %7024 = vmatmul.mubr.bf16.gmra.mrb[12].mxu0 %v6252_v62  ;;  %v5926_v61 = vcombine.low %v778_v48, %v788_v55  ;;  %v801_v62 = vrot.slane %v799_v45, 5  ;;  %v6203_v55 = vld [vmem:[%s7962_s5 + $0xa4] sm:$0x1]  ;;  %v859_v6 = vrot.slane %v857_v60, 5  ;;  %v6225_v7 = vrot.slane %v6201_v44, 9 }
  0x6a   : > { %7027 = vmatprep.mubr.bf16.mxu0 %v6253_v31  ;;  %7056 = vmatpush3.bf16.msra.mxu0 %v7719_v36  ;;  %v670_v31 = vld [vmem:[%s7962_s5 + $0x30] sm:$0xf]  ;;  %v830_v35 = vor.u32 %v829_v24, %v825_v21  ;;  %v835_v36 = vrot.slane %v833_v25, 5  ;;  %v821_v40 = vrot.slane %v820_v29, 4  ;;  %v3562_v9 = vrot.slane %v6203_v55, 5  ;;  %v7725_v24 = vld [vmem:[%s9131_s1 + $0xa8] sm:$0xff]  }
  0x6b   : > { %v806_v8 = vor.u32 %v805_v63, %v801_v62  ;;  %7057 = vmatprep.subr.bf16.mxu0 %v7720_v2  ;;  %v802_v22 = vsel %vm7985_vm2, %v797_v12, %v801_v62  ;;  %v838_v42 = vshrl.u32 %v670_v31, 16  ;;  %v841_v43 = vshll.u32 %v670_v31, 16  ;;  %v674_v62 = vld [vmem:[%s7962_s5 + $0x40] sm:$0xf] }
  0x6c   : > { %v831_v45 = vrot.slane %v830_v35, 4  ;;  %v826_v51 = vsel %vm7985_vm2, %v821_v40, %v825_v21  ;;  %v7729_v35 = vld [vmem:[%s9131_s1 + $0xb0] sm:$0xff]   ;;  %v3566_v39 = vrot.slane %v6205_v19, 5  ;;  %v677_v40 = vld [vmem:[%s7962_s5 + $0x4c] sm:$0xf] }
  0x6d   : > { %v807_v18 = vrot.slane %v806_v8, 4  ;;  %v840_v52 = vrot.slane %v838_v42, 4  ;;  %v843_v53 = vrot.slane %v841_v43, 5  ;;  %v3559_v8 = vrot.slane %v6202_v50, 5 }
  0x6e   : > { %6820 = vmatmul.mubr.bf16.vlgmr.msra.gmra.mrb[0].mxu1 %v5926_v61  ;;  %7058 = vmatpush3.bf16.msra.mxu0 %v7720_v2  ;;  %v836_v57 = vsel %vm7985_vm2, %v831_v45, %v835_v36  ;;  %v673_v61 = vld [vmem:[%s7962_s5 + $0x3c] sm:$0xf]  ;;  %v3569_v43 = vrot.slane %v6206_v23, 5  ;;  %v3568_v50 = vrot.slane %v3566_v39, 4 }
  0x6f   : > { %6852 = vmatpush3.bf16.msra.mxu1 %v8183_v46  ;;  %v6199_v46 = vld [vmem:[%s7962_s5 + $0x94] sm:$0xf]  ;;  %v812_v27 = vsel %vm7985_vm2, %v807_v18, %v811_v0  ;;  %v5928_v63 = vcombine.low %v826_v51, %v836_v57  ;;  %v844_v1 = vor.u32 %v843_v53, %v840_v52  ;;  %v862_v12 = vshrl.u32 %v673_v61, 16  ;;  %7091 = vmatprep.subr.bf16.mxu0 %v8287_v5  ;;  %v6208_v52 = vld [vmem:[%s7962_s5 + $0xb8] sm:$0xf] }
  0x70   : > { %6853 = vmatprep.subr.bf16.mxu1 %v7714_v54  ;;  %v5927_v34 = vcombine.low %v802_v22, %v812_v27  ;;  %v3552_v37 = vrot.slane %v6199_v46, 5  ;;  %v865_v13 = vshll.u32 %v673_v61, 16  ;;  %v3560_v15 = vsel %vm8085_vm5, %v6225_v7, %v3559_v8  ;;  %v6209_v57 = vld [vmem:[%s7962_s5 + $0xbc] sm:$0x1] }
  0x71   : > { %7028 = vmatmul.mubr.bf16.gmra.mrb[16].mxu0 %v6254_v56  ;;  %v7722_v56 = vld [vmem:[%s9131_s1 + $0xa0] sm:$0xff]   ;;  %v845_v10 = vrot.slane %v844_v1, 4  ;;  %v3561_v16 = vrot.slane %v3559_v8, 4  ;;  %v875_v18 = vshrl.u32 %v674_v62, 16  ;;  %v864_v46 = vrot.slane %v862_v12, 4  ;;  %v7733_v7 = vld [vmem:[%s9131_s1 + $0xb8] sm:$0xff]  }
  0x72   : > { %7031 = vmatprep.mubr.bf16.mxu0 %v6255_v28  ;;  %6823 = vmatprep.mubr.bf16.mxu1 %v5927_v34  ;;  %v3553_v47 = vsel %vm8085_vm5, %v6224_v30, %v3552_v37  ;;  %v3554_v48 = vrot.slane %v3552_v37, 4  ;;  %v867_v22 = vrot.slane %v865_v13, 5  ;;  %v881_v28 = vshll.u32 %v675_v3, 16  ;;  %v676_v34 = vld [vmem:[%s7962_s5 + $0x48] sm:$0xf] }
  0x73   : > { %6854 = vmatpush3.bf16.msra.mxu1 %v7714_v54  ;;  %v851_v54 = vshrl.u32 %v671_v38, 16  ;;  %v850_v20 = vsel %vm7985_vm2, %v845_v10, %v849_v59  ;;  %v3563_v25 = vsel %vm8085_vm5, %v3561_v16, %v3562_v9  ;;  %v877_v27 = vrot.slane %v875_v18, 4  ;;  %v6210_v16 = vld [vmem:[%s7962_s5 + $0xc0] sm:$0xe] }
  0x74   : > { %6855 = vmatprep.subr.bf16.mxu1 %v7716_v17  ;;  %v3556_v58 = vsel %vm8085_vm5, %v3554_v48, %v3555_v41  ;;  %v6257_v30 = vcombine.low %v3560_v15, %v3563_v25  ;;  %v868_v31 = vor.u32 %v867_v22, %v864_v46  ;;  %v883_v38 = vrot.slane %v881_v28, 5  ;;  %v678_v41 = vld [vmem:[%s7962_s5 + $0x50] sm:$0x1]  ;;  %v6212_v25 = vld [vmem:[%s7962_s5 + $0xc8] sm:$0x1] }
  0x75   : > { %v6256_v0 = vcombine.low %v3553_v47, %v3556_v58  ;;  %v853_v2 = vrot.slane %v851_v54, 4  ;;  %v886_v44 = vshrl.u32 %v676_v34, 16  ;;  %v889_v45 = vshll.u32 %v676_v34, 16  ;;  %v6207_v47 = vld [vmem:[%s7962_s5 + $0xb4] sm:$0xe] }
  0x76   : > { %6824 = vmatmul.mubr.bf16.gmra.mrb[4].mxu1 %v5928_v63  ;;  %v869_v42 = vrot.slane %v868_v31, 4  ;;  %v895_v51 = vshll.u32 %v677_v40, 16  ;;  %v905_v61 = vshll.u32 %v678_v41, 16  ;;  %v680_v63 = vld [vmem:[%s7962_s5 + $0x58] sm:$0xf]  ;;  %v6227_v9 = vrot.slane %v6207_v47, 9 }
  0x77   : > { %6856 = vmatpush3.bf16.msra.mxu1 %v7716_v17  ;;  %v854_v11 = vor.u32 %v853_v2, %v849_v59  ;;  %v871_v17 = vshll.u32 %v674_v62, 16  ;;  %v888_v54 = vrot.slane %v886_v44, 4  ;;  %v891_v55 = vrot.slane %v889_v45, 5  ;;  %v679_v62 = vld [vmem:[%s7962_s5 + $0x54] sm:$0xf] }
  0x78   : > { %6857 = vmatprep.subr.bf16.mxu1 %v7718_v32  ;;  %v3570_v59 = vsel %vm8085_vm5, %v3568_v50, %v3569_v43  ;;  %v897_v60 = vrot.slane %v895_v51, 5  ;;  %v907_v8 = vrot.slane %v905_v61, 5  ;;  %v3573_v10 = vrot.slane %v6208_v52, 5  ;;  %v683_v43 = vld [vmem:[%s7962_s5 + $0x64] sm:$0xf] }
  0x79   : > { %7032 = vmatmul.mubr.bf16.gmra.mrb[20].mxu0 %v6256_v0  ;;  %v855_v21 = vrot.slane %v854_v11, 4  ;;  %v873_v26 = vrot.slane %v871_v17, 5  ;;  %v892_v2 = vor.u32 %v891_v55, %v888_v54  ;;  %v3576_v11 = vrot.slane %v6209_v57, 5  ;;  %v684_v44 = vld [vmem:[%s7962_s5 + $0x68] sm:$0x1]  ;;  %v7721_v54 = vld [vmem:[%s7962_s5 + $0x18] sm:$0xff]  }
  0x7a   : > { %7035 = vmatprep.mubr.bf16.mxu0 %v6257_v30  ;;  %v913_v15 = vshll.u32 %v679_v62, 16  ;;  %v3574_v17 = vsel %vm8085_vm5, %v6227_v9, %v3573_v10  ;;  %v3575_v18 = vrot.slane %v3573_v10, 4  ;;  %v919_v19 = vshll.u32 %v680_v63, 16 }
  0x7b   : > { %6858 = vmatpush3.bf16.msra.mxu1 %v7718_v32  ;;  %v860_v29 = vsel %vm7985_vm2, %v855_v21, %v859_v6  ;;  %v6226_v32 = vrot.slane %v6204_v14, 9  ;;  %v878_v37 = vor.u32 %v877_v27, %v873_v26  ;;  %v874_v53 = vsel %vm7985_vm2, %v869_v42, %v873_v26  ;;  %v681_v6 = vld [vmem:[%s7962_s5 + $0x5c] sm:$0x1]  ;;  %v6211_v21 = vld [vmem:[%s7962_s5 + $0xc4] sm:$0xf] }
  0x7c   : > { %6859 = vmatprep.subr.bf16.mxu1 %v7722_v56  ;;  %v5929_v36 = vcombine.low %v850_v20, %v860_v29  ;;  %v893_v12 = vrot.slane %v892_v2, 4  ;;  %v910_v14 = vshrl.u32 %v679_v62, 16  ;;  %v923_v20 = vshrl.u32 %v680_v63, 16  ;;  %v8337_v26 = vld [vmem:[%s9131_s1 + $0xc0] sm:$0xff]  }
  0x7d   : > { %v879_v48 = vrot.slane %v878_v37, 4  ;;  %v3567_v49 = vsel %vm8085_vm5, %v6226_v32, %v3566_v39  ;;  %v3577_v27 = vsel %vm8085_vm5, %v3575_v18, %v3576_v11  ;;  %v921_v28 = vrot.slane %v919_v19, 5 }
  0x7e   : > { %6827 = vmatprep.mubr.bf16.mxu1 %v5929_v36  ;;  %v6258_v1 = vcombine.low %v3567_v49, %v3570_v59  ;;  %v898_v46 = vsel %vm7985_vm2, %v893_v12, %v897_v60  ;;  %v912_v23 = vrot.slane %v910_v14, 4  ;;  %v925_v29 = vrot.slane %v923_v20, 4  ;;  %v685_v59 = vld [vmem:[%s7962_s5 + $0x6c] sm:$0xf]  ;;  %v689_v20 = vld [vmem:[%s7962_s5 + $0x7c] sm:$0xf] }
  0x7f   : > { %6860 = vmatpush3.bf16.msra.mxu1 %v7722_v56  ;;  %v899_v56 = vshrl.u32 %v677_v40, 16  ;;  %v884_v58 = vsel %vm7985_vm2, %v879_v48, %v883_v38  ;;  %v929_v30 = vshll.u32 %v681_v6, 16  ;;  %v6259_v32 = vcombine.low %v3574_v17, %v3577_v27  ;;  %v682_v40 = vld [vmem:[%s7962_s5 + $0x60] sm:$0xf] }
  0x80   : > { %6861 = vmatprep.subr.bf16.mxu1 %v7725_v24  ;;  %v5930_v0 = vcombine.low %v874_v53, %v884_v58  ;;  %v926_v37 = vor.u32 %v925_v29, %v921_v28  ;;  %v3580_v39 = vrot.slane %v6211_v21, 5  ;;  %v3583_v42 = vrot.slane %v6212_v25, 5 }
  0x81   : > { %v901_v3 = vrot.slane %v899_v56, 4  ;;  %7036 = vmatmul.mubr.bf16.gmra.mrb[24].mxu0 %v6258_v1  ;;  %v931_v38 = vrot.slane %v929_v30, 5  ;;  %v934_v49 = vshrl.u32 %v682_v40, 16  ;;  %v937_v51 = vshll.u32 %v682_v40, 16  ;;  %v687_v1 = vld [vmem:[%s7962_s5 + $0x74] sm:$0x1] }
  0x82   : > { %6828 = vmatmul.mubr.bf16.gmra.mrb[8].mxu1 %v5930_v0  ;;  %7039 = vmatprep.mubr.bf16.mxu0 %v6259_v32  ;;  %v927_v45 = vrot.slane %v926_v37, 4  ;;  %v3582_v48 = vrot.slane %v3580_v39, 4  ;;  %v943_v52 = vshll.u32 %v683_v43, 16  ;;  %v947_v53 = vshrl.u32 %v683_v43, 16  ;;  %v691_v37 = vld [vmem:[%s7962_s5 + $0x84] sm:$0xf] }
  0x83   : > { %6862 = vmatpush3.bf16.msra.mxu1 %v7725_v24  ;;  %v902_v13 = vor.u32 %v901_v3, %v897_v60  ;;  %v915_v24 = vrot.slane %v913_v15, 5  ;;  %v936_v57 = vrot.slane %v934_v49, 4  ;;  %v953_v58 = vshll.u32 %v684_v44, 16  ;;  %v686_v60 = vld [vmem:[%s7962_s5 + $0x70] sm:$0xf]  ;;  %v7731_v43 = vld [vmem:[%s9131_s1 + $0x1c8] sm:$0xff]  }
  0x84   : > { %6863 = vmatprep.subr.bf16.mxu1 %v7729_v35  ;;  %v932_v55 = vsel %vm7985_vm2, %v927_v45, %v931_v38  ;;  %v3584_v56 = vsel %vm8085_vm5, %v3582_v48, %v3583_v42  ;;  %v939_v63 = vrot.slane %v937_v51, 5  ;;  %v945_v0 = vrot.slane %v943_v52, 5  ;;  %v688_v15 = vld [vmem:[%s7962_s5 + $0x78] sm:$0xf]  ;;  %v692_v42 = vld [vmem:[%s7962_s5 + $0x88] sm:$0xf] }
  0x85   : > { %v903_v22 = vrot.slane %v902_v13, 4  ;;  %v916_v34 = vor.u32 %v915_v24, %v912_v23  ;;  %v949_v2 = vrot.slane %v947_v53, 4  ;;  %v955_v3 = vrot.slane %v953_v58, 5  ;;  %v690_v23 = vld [vmem:[%s7962_s5 + $0x80] sm:$0x1]  ;;  %v7735_v58 = vld [vmem:[%s9131_s1 + $0x1d0] sm:$0xff]  }
  0x86   : > { %v958_v6 = vshrl.u32 %v685_v59, 16  ;;  %v967_v9 = vshll.u32 %v686_v60, 16  ;;  %v971_v10 = vshrl.u32 %v686_v60, 16  ;;  %v977_v11 = vshll.u32 %v687_v1, 16  ;;  %v693_v48 = vld [vmem:[%s7962_s5 + $0x8c] sm:$0x1] }
  0x87   : > { %6864 = vmatpush3.bf16.msra.mxu1 %v7729_v35  ;;  %v908_v31 = vsel %vm7985_vm2, %v903_v22, %v907_v8  ;;  %v6228_v35 = vrot.slane %v6210_v16, 9  ;;  %v917_v41 = vrot.slane %v916_v34, 4  ;;  %v940_v8 = vor.u32 %v939_v63, %v936_v57  ;;  %v7723_v22 = vld [vmem:[%s7962_s5 + $0x24] sm:$0xff]   ;;  %v7726_v1 = vld [vmem:[%s7962_s5 + $0x3c] sm:$0xff]  }
  0x88   : > { %6865 = vmatprep.subr.bf16.mxu1 %v7733_v7  ;;  %v5931_v36 = vcombine.low %v898_v46, %v908_v31  ;;  %v950_v12 = vor.u32 %v949_v2, %v945_v0  ;;  %v960_v13 = vrot.slane %v958_v6, 4  ;;  %v969_v17 = vrot.slane %v967_v9, 5  ;;  %v694_v2 = vld [vmem:[%s7962_s5 + $0x90] sm:$0xf] }
  0x89   : > { %v3581_v47 = vsel %vm8085_vm5, %v6228_v35, %v3580_v39  ;;  %v922_v50 = vsel %vm7985_vm2, %v917_v41, %v921_v28  ;;  %v941_v16 = vrot.slane %v940_v8, 4  ;;  %v973_v18 = vrot.slane %v971_v10, 4  ;;  %v696_v8 = vld [vmem:[%s7962_s5 + $0x98] sm:$0x1] }
  0x8a   : > { %6831 = vmatprep.mubr.bf16.mxu1 %v5931_v36  ;;  %v5932_v61 = vcombine.low %v922_v50, %v932_v55  ;;  %v6260_v62 = vcombine.low %v3581_v47, %v3584_v56  ;;  %v979_v19 = vrot.slane %v977_v11, 5  ;;  %v951_v21 = vrot.slane %v950_v12, 4  ;;  %v7724_v36 = vld [vmem:[%s7962_s5 + $0x30] sm:$0xff]  }
  0x8b   : > { %6866 = vmatpush3.bf16.msra.mxu1 %v7733_v7  ;;  %v961_v7 = vshll.u32 %v685_v59, 16  ;;  %v982_v24 = vshrl.u32 %v688_v15, 16  ;;  %v985_v25 = vshll.u32 %v688_v15, 16  ;;  %v946_v27 = vsel %vm7985_vm2, %v941_v16, %v945_v0 }
  0x8c   : > { %6899 = vmatprep.subr.bf16.mxu1 %v8337_v26  ;;  %6832 = vmatmul.mubr.bf16.gmra.mrb[12].mxu1 %v5932_v61  ;;  %v974_v28 = vor.u32 %v973_v18, %v969_v17  ;;  %v991_v29 = vshll.u32 %v689_v20, 16  ;;  %v995_v30 = vshrl.u32 %v689_v20, 16  ;;  %v956_v31 = vsel %vm7985_vm2, %v951_v21, %v955_v3 }
  0x8d   : > { %7040 = vmatmul.mubr.bf16.gmra.mrb[28].mxu0 %v6260_v62  ;;  %v963_v14 = vrot.slane %v961_v7, 5  ;;  %v984_v34 = vrot.slane %v982_v24, 4  ;;  %v987_v35 = vrot.slane %v985_v25, 5  ;;  %v5933_v38 = vcombine.low %v946_v27, %v956_v31  ;;  %v695_v7 = vld [vmem:[%s7962_s5 + $0x94] sm:$0xf] }
  0x8e   : > { %7059 = vmatprep.mubr.bf16.mxu0 %v7721_v54  ;;  %v975_v39 = vrot.slane %v974_v28, 4  ;;  %v993_v40 = vrot.slane %v991_v29, 5  ;;  %v997_v41 = vrot.slane %v995_v30, 4  ;;  %v1001_v47 = vshll.u32 %v690_v23, 16  ;;  %v698_v27 = vld [vmem:[%s7962_s5 + $0xa0] sm:$0xf] }
  0x8f   : > { %v964_v46 = vor.u32 %v963_v14, %v960_v13  ;;  %v988_v45 = vor.u32 %v987_v35, %v984_v34  ;;  %v1006_v49 = vshrl.u32 %v691_v37, 16  ;;  %6835 = vmatprep.mubr.bf16.mxu1 %v5933_v38  ;;  %v1009_v52 = vshll.u32 %v691_v37, 16  ;;  %v7728_v14 = vld [vmem:[%s7962_s5 + $0x48] sm:$0xff]   ;;  %v699_v28 = vld [vmem:[%s7962_s5 + $0xa4] sm:$0x1] }
  0x90   : > { %v980_v50 = vsel %vm7985_vm2, %v975_v39, %v979_v19  ;;  %v998_v51 = vor.u32 %v997_v41, %v993_v40  ;;  %v1015_v53 = vshll.u32 %v692_v42, 16  ;;  %v1003_v56 = vrot.slane %v1001_v47, 5  ;;  %v7739_v19 = vld [vmem:[%s9131_s1 + $0x1d8] sm:$0xff]   ;;  %v7743_v34 = vld [vmem:[%s9131_s1 + $0x1e0] sm:$0xff]  }
  0x91   : > { %v965_v32 = vrot.slane %v964_v46, 4  ;;  %v989_v55 = vrot.slane %v988_v45, 4  ;;  %v1008_v57 = vrot.slane %v1006_v49, 4  ;;  %v1011_v60 = vrot.slane %v1009_v52, 5  ;;  %v7730_v39 = vld [vmem:[%s7962_s5 + $0x54] sm:$0xff]  }
  0x92   : > { %v999_v59 = vrot.slane %v998_v51, 4  ;;  %v1017_v61 = vrot.slane %v1015_v53, 5  ;;  %v1019_v62 = vshrl.u32 %v692_v42, 16  ;;  %v1025_v0 = vshll.u32 %v693_v48, 16  ;;  %v700_v52 = vld [vmem:[%s7962_s5 + $0xa8] sm:$0xf] }
  0x93   : > { %v970_v44 = vsel %vm7985_vm2, %v965_v32, %v969_v17  ;;  %v994_v63 = vsel %vm7985_vm2, %v989_v55, %v993_v40  ;;  %v1012_v3 = vor.u32 %v1011_v60, %v1008_v57  ;;  %v1030_v9 = vshrl.u32 %v694_v2, 16  ;;  %v701_v53 = vld [vmem:[%s7962_s5 + $0xac] sm:$0xf]  ;;  %v702_v57 = vld [vmem:[%s7962_s5 + $0xb0] sm:$0x1] }
  0x94   : > { %v5934_v54 = vcombine.low %v970_v44, %v980_v50  ;;  %v1021_v6 = vrot.slane %v1019_v62, 4  ;;  %v1027_v11 = vrot.slane %v1025_v0, 5  ;;  %v1033_v12 = vshll.u32 %v694_v2, 16  ;;  %v7732_v44 = vld [vmem:[%s7962_s5 + $0x60] sm:$0xff]  }
  0x95   : > { %7060 = vmatmul.mubr.bf16.vlgmr.msra.gmra.mrb[0].mxu0 %v7723_v22  ;;  %v1039_v13 = vshll.u32 %v695_v7, 16  ;;  %v1013_v15 = vrot.slane %v1012_v3, 4  ;;  %v1032_v17 = vrot.slane %v1030_v9, 4  ;;  %v1043_v18 = vshrl.u32 %v695_v7, 16  ;;  %v697_v22 = vld [vmem:[%s7962_s5 + $0x9c] sm:$0xf] }
  0x96   : > { %7063 = vmatprep.mubr.bf16.mxu0 %v7724_v36  ;;  %7092 = vmatpush3.bf16.msra.mxu0 %v8287_v5  ;;  %v1004_v5 = vsel %vm7985_vm2, %v999_v59, %v1003_v56  ;;  %v1022_v16 = vor.u32 %v1021_v6, %v1017_v61  ;;  %v1035_v20 = vrot.slane %v1033_v12, 5  ;;  %v1049_v46 = vshll.u32 %v696_v8, 16  ;;  %v703_v3 = vld [vmem:[%s7962_s5 + $0xb4] sm:$0xf]  ;;  %v704_v9 = vld [vmem:[%s7962_s5 + $0xb8] sm:$0xf] }
  0x97   : > { %7093 = vmatprep.subr.bf16.mxu0 %v7731_v43  ;;  %6836 = vmatmul.mubr.bf16.gmra.mrb[16].mxu1 %v5934_v54  ;;  %v5935_v10 = vcombine.low %v994_v63, %v1004_v5  ;;  %v1041_v21 = vrot.slane %v1039_v13, 5  ;;  %v1018_v23 = vsel %vm7985_vm2, %v1013_v15, %v1017_v61  ;;  %v1045_v25 = vrot.slane %v1043_v18, 4  ;;  %v7747_v63 = vld [vmem:[%s9131_s1 + $0x1e8] sm:$0xff]   ;;  %v7751_v15 = vld [vmem:[%s9131_s1 + $0x1f0] sm:$0xff]  }
  0x98   : > { %v1023_v24 = vrot.slane %v1022_v16, 4  ;;  %v1036_v29 = vor.u32 %v1035_v20, %v1032_v17  ;;  %v1051_v30 = vrot.slane %v1049_v46, 5  ;;  %v1054_v31 = vshrl.u32 %v697_v22, 16 }
  0x99   : > { %6839 = vmatprep.mubr.bf16.mxu1 %v5935_v10  ;;  %v1057_v32 = vshll.u32 %v697_v22, 16  ;;  %v1046_v36 = vor.u32 %v1045_v25, %v1041_v21  ;;  %v1063_v37 = vshll.u32 %v698_v27, 16  ;;  %v1067_v38 = vshrl.u32 %v698_v27, 16  ;;  %v705_v10 = vld [vmem:[%s7962_s5 + $0xbc] sm:$0x1] }
  0x9a   : > { %7094 = vmatpush3.bf16.msra.mxu0 %v7731_v43  ;;  %v1028_v35 = vsel %vm7985_vm2, %v1023_v24, %v1027_v11  ;;  %v1037_v41 = vrot.slane %v1036_v29, 4  ;;  %v1056_v42 = vrot.slane %v1054_v31, 4  ;;  %v1073_v49 = vshll.u32 %v699_v28, 16  ;;  %v7736_v28 = vld [vmem:[%s7962_s5 + $0x78] sm:$0xff]  }
  0x9b   : > { %7095 = vmatprep.subr.bf16.mxu0 %v7735_v58  ;;  %v5936_v40 = vcombine.low %v1018_v23, %v1028_v35  ;;  %v1059_v43 = vrot.slane %v1057_v32, 5  ;;  %v1047_v45 = vrot.slane %v1046_v36, 4  ;;  %v1065_v47 = vrot.slane %v1063_v37, 5  ;;  %v7734_v23 = vld [vmem:[%s7962_s5 + $0x6c] sm:$0xff]   ;;  %v7752_v32 = vld [vmem:[%s9131_s1 + $0x1f8] sm:$0xff]  }
  0x9c   : > { %v1069_v48 = vrot.slane %v1067_v38, 4  ;;  %v1042_v50 = vsel %vm7985_vm2, %v1037_v41, %v1041_v21  ;;  %v1075_v56 = vrot.slane %v1073_v49, 5  ;;  %v1081_v61 = vshll.u32 %v700_v52, 16  ;;  %v1479_v36 = vld [vmem:[%s7962_s5] sm:$0xe] }
  0x9d   : > { %7064 = vmatmul.mubr.bf16.gmra.mrb[4].mxu0 %v7726_v1  ;;  %v1060_v51 = vor.u32 %v1059_v43, %v1056_v42  ;;  %v1052_v54 = vsel %vm7985_vm2, %v1047_v45, %v1051_v30  ;;  %v1087_v62 = vshll.u32 %v701_v53, 16  ;;  %v1091_v2 = vshrl.u32 %v701_v53, 16  ;;  %v1480_v37 = vld [vmem:[%s7962_s5 + $0x4] sm:$0xf]  ;;  %v1481_v38 = vld [vmem:[%s7962_s5 + $0x8] sm:$0x1] }
  0x9e   : > { %7067 = vmatprep.mubr.bf16.mxu0 %v7728_v14  ;;  %7096 = vmatpush3.bf16.msra.mxu0 %v7735_v58  ;;  %v1070_v55 = vor.u32 %v1069_v48, %v1065_v47  ;;  %v1078_v58 = vshrl.u32 %v700_v52, 16  ;;  %v5937_v59 = vcombine.low %v1042_v50, %v1052_v54  ;;  %v1097_v5 = vshll.u32 %v702_v57, 16  ;;  %v1483_v48 = vld [vmem:[%s7962_s5 + $0x10] sm:$0xf]  ;;  %v1484_v52 = vld [vmem:[%s7962_s5 + $0x14] sm:$0x1] }
  0x9f   : > { %7097 = vmatprep.subr.bf16.mxu0 %v7739_v19  ;;  %6840 = vmatmul.mubr.bf16.gmra.mrb[20].mxu1 %v5936_v40  ;;  %v1061_v60 = vrot.slane %v1060_v51, 4  ;;  %v1083_v7 = vrot.slane %v1081_v61, 5  ;;  %v1089_v8 = vrot.slane %v1087_v62, 5  ;;  %v1093_v12 = vrot.slane %v1091_v2, 4  ;;  %v7738_v54 = vld [vmem:[%s7962_s5 + $0x84] sm:$0xff]  }
  0xa0   : > { %v1071_v0 = vrot.slane %v1070_v55, 4  ;;  %v1080_v1 = vrot.slane %v1078_v58, 4  ;;  %6843 = vmatprep.mubr.bf16.mxu1 %v5937_v59  ;;  %v1099_v13 = vrot.slane %v1097_v5, 5  ;;  %v1102_v14 = vshrl.u32 %v703_v3, 16  ;;  %v8447_v55 = vld [vmem:[%s9131_s1 + $0x200] sm:$0xff]  }
  0xa1   : > { %v1066_v6 = vsel %vm7985_vm2, %v1061_v60, %v1065_v47  ;;  %v1105_v18 = vshll.u32 %v703_v3, 16  ;;  %v1094_v20 = vor.u32 %v1093_v12, %v1089_v8  ;;  %v1115_v46 = vshrl.u32 %v704_v9, 16  ;;  %v1482_v47 = vld [vmem:[%s7962_s5 + $0xc] sm:$0xe]  ;;  %v1486_v2 = vld [vmem:[%s7962_s5 + $0x1c] sm:$0xf] }
  0xa2   : > { %7098 = vmatpush3.bf16.msra.mxu0 %v7739_v19  ;;  %v1076_v11 = vsel %vm7985_vm2, %v1071_v0, %v1075_v56  ;;  %v1084_v17 = vor.u32 %v1083_v7, %v1080_v1  ;;  %v1111_v19 = vshll.u32 %v704_v9, 16  ;;  %v1104_v21 = vrot.slane %v1102_v14, 4  ;;  %v1485_v0 = vld [vmem:[%s7962_s5 + $0x18] sm:$0xe]  ;;  %v7740_v1 = vld [vmem:[%s7962_s5 + $0x90] sm:$0xff]  }
  0xa3   : > { %7099 = vmatprep.subr.bf16.mxu0 %v7743_v34  ;;  %v5938_v16 = vcombine.low %v1066_v6, %v1076_v11  ;;  %v1121_v22 = vshll.u32 %v705_v10, 16  ;;  %v1107_v25 = vrot.slane %v1105_v18, 5  ;;  %v1095_v29 = vrot.slane %v1094_v20, 4  ;;  %v1487_v5 = vld [vmem:[%s7962_s5 + $0x20] sm:$0x1] }
  0xa4   : > { %v1085_v24 = vrot.slane %v1084_v17, 4  ;;  %v1113_v27 = vrot.slane %v1111_v19, 5  ;;  %v1117_v30 = vrot.slane %v1115_v46, 4  ;;  %v5949_v41 = vrot.slane %v1479_v36, 9  ;;  %v1488_v10 = vld [vmem:[%s7962_s5 + $0x24] sm:$0xe] }
  0xa5   : > { %7068 = vmatmul.mubr.bf16.gmra.mrb[8].mxu0 %v7730_v39  ;;  %v1123_v31 = vrot.slane %v1121_v22, 5  ;;  %v1108_v35 = vor.u32 %v1107_v25, %v1104_v21  ;;  %v1100_v39 = vsel %vm7985_vm2, %v1095_v29, %v1099_v13  ;;  %v1612_v42 = vrot.slane %v1480_v37, 5  ;;  %v1489_v11 = vld [vmem:[%s7962_s5 + $0x28] sm:$0xf]  ;;  %v1490_v12 = vld [vmem:[%s7962_s5 + $0x2c] sm:$0x1] }
  0xa6   : > { %7071 = vmatprep.mubr.bf16.mxu0 %v7732_v44  ;;  %7100 = vmatpush3.bf16.msra.mxu0 %v7743_v34  ;;  %v1090_v34 = vsel %vm7985_vm2, %v1085_v24, %v1089_v8  ;;  %v1118_v40 = vor.u32 %v1117_v30, %v1113_v27  ;;  %v1615_v45 = vrot.slane %v1481_v38, 5  ;;  %v5950_v53 = vrot.slane %v1482_v47, 9  ;;  %v7741_v21 = vld [vmem:[%s9131_s1 + $0xc8] sm:$0xff]   ;;  %v7742_v46 = vld [vmem:[%s7962_s5 + $0x9c] sm:$0xff]   ;;  %v1492_v24 = vld [vmem:[%s7962_s5 + $0x34] sm:$0xf] }
  0xa7   : > { %7101 = vmatprep.subr.bf16.mxu0 %v7747_v63  ;;  %6844 = vmatmul.mubr.bf16.gmra.mrb[24].mxu1 %v5938_v16  ;;  %v5939_v43 = vcombine.low %v1090_v34, %v1100_v39  ;;  %v1109_v44 = vrot.slane %v1108_v35, 4  ;;  %v1613_v50 = vsel %vm8085_vm5, %v5949_v41, %v1612_v42  ;;  %v1614_v51 = vrot.slane %v1612_v42, 4  ;;  %v1493_v25 = vld [vmem:[%s7962_s5 + $0x38] sm:$0x1]  ;;  %v7744_v30 = vld [vmem:[%s7962_s5 + $0xa8] sm:$0xff]   ;;  %v7745_v39 = vld [vmem:[%s9131_s1 + $0xd0] sm:$0xff]  }
  0xa8   : > { %v1119_v49 = vrot.slane %v1118_v40, 4  ;;  %v1619_v57 = vrot.slane %v1483_v48, 5  ;;  %v1622_v58 = vrot.slane %v1484_v52, 5  ;;  %v5951_v3 = vrot.slane %v1485_v0, 9  ;;  %v1495_v34 = vld [vmem:[%s7962_s5 + $0x40] sm:$0xf] }
  0xa9   : > { %6847 = vmatprep.mubr.bf16.mxu1 %v5939_v43  ;;  %v1114_v56 = vsel %vm7985_vm2, %v1109_v44, %v1113_v27  ;;  %v1616_v60 = vsel %vm8085_vm5, %v1614_v51, %v1615_v45  ;;  %v1626_v6 = vrot.slane %v1486_v2, 5  ;;  %v1629_v7 = vrot.slane %v1487_v5, 5  ;;  %v1496_v35 = vld [vmem:[%s7962_s5 + $0x44] sm:$0x1]  ;;  %v1497_v43 = vld [vmem:[%s7962_s5 + $0x48] sm:$0xe] }
  0xaa   : > { %7102 = vmatpush3.bf16.msra.mxu0 %v7747_v63  ;;  %v1124_v59 = vsel %vm7985_vm2, %v1119_v49, %v1123_v31  ;;  %v5981_v62 = vcombine.low %v1613_v50, %v1616_v60  ;;  %v1621_v63 = vrot.slane %v1619_v57, 4  ;;  %v1620_v8 = vsel %vm8085_vm5, %v5950_v53, %v1619_v57  ;;  %v1494_v31 = vld [vmem:[%s7962_s5 + $0x3c] sm:$0xe]  ;;  %v7746_v47 = vld [vmem:[%s7962_s5 + $0xb4] sm:$0xff]   ;;  %v1498_v48 = vld [vmem:[%s7962_s5 + $0x4c] sm:$0xf] }
  0xab   : > { %7103 = vmatprep.subr.bf16.mxu0 %v7751_v15  ;;  %v5940_v61 = vcombine.low %v1114_v56, %v1124_v59  ;;  %v1627_v13 = vsel %vm8085_vm5, %v5951_v3, %v1626_v6  ;;  %v1628_v14 = vrot.slane %v1626_v6, 4  ;;  %v5952_v16 = vrot.slane %v1488_v10, 9  ;;  %v1499_v49 = vld [vmem:[%s7962_s5 + $0x50] sm:$0x1]  ;;  %v7749_v51 = vld [vmem:[%s9131_s1 + $0xd8] sm:$0xff]   ;;  %v7748_v60 = vld [vmem:[%s7962_s5 + $0xc0] sm:$0xff]  }
  0xac   : > { %v1623_v9 = vsel %vm8085_vm5, %v1621_v63, %v1622_v58  ;;  %v1636_v20 = vrot.slane %v1490_v12, 5  ;;  %v1643_v29 = vrot.slane %v1493_v25, 5  ;;  %v1647_v38 = vrot.slane %v1495_v34, 5  ;;  %v1500_v56 = vld [vmem:[%s7962_s5 + $0x54] sm:$0xe]  ;;  %v7750_v12 = vld [vmem:[%s7962_s5 + $0xcc] sm:$0xff]  }
  0xad   : > { %7072 = vmatmul.mubr.bf16.gmra.mrb[12].mxu0 %v7734_v23  ;;  %v5982_v17 = vcombine.low %v1620_v8, %v1623_v9  ;;  %v1630_v18 = vsel %vm8085_vm5, %v1628_v14, %v1629_v7  ;;  %v1491_v23 = vld [vmem:[%s7962_s5 + $0x30] sm:$0xe]  ;;  %v5954_v41 = vrot.slane %v1494_v31, 9  ;;  %v1650_v42 = vrot.slane %v1496_v35, 5  ;;  %v1501_v57 = vld [vmem:[%s7962_s5 + $0x58] sm:$0xf] }
  0xae   : > { %7075 = vmatprep.mubr.bf16.mxu0 %v7736_v28  ;;  %7104 = vmatpush3.bf16.msra.mxu0 %v7751_v15  ;;  %v1633_v15 = vrot.slane %v1489_v11, 5  ;;  %v5983_v22 = vcombine.low %v1627_v13, %v1630_v18  ;;  %v5953_v27 = vrot.slane %v1491_v23, 9  ;;  %v1640_v28 = vrot.slane %v1492_v24, 5  ;;  %v1502_v58 = vld [vmem:[%s7962_s5 + $0x5c] sm:$0x1] }
  0xaf   : > { %7105 = vmatprep.subr.bf16.mxu0 %v7752_v32  ;;  %6848 = vmatmul.mubr.bf16.gmra.mrb[28].mxu1 %v5940_v61  ;;  %v1649_v45 = vrot.slane %v1647_v38, 4  ;;  %v5955_v50 = vrot.slane %v1497_v43, 9  ;;  %v1654_v53 = vrot.slane %v1498_v48, 5  ;;  %v1661_v61 = vrot.slane %v1501_v57, 5  ;;  %v1503_v8 = vld [vmem:[%s7962_s5 + $0x60] sm:$0xe] }
  0xb0   : > { %6867 = vmatprep.mubr.bf16.mxu1 %v5981_v62  ;;  %v1635_v19 = vrot.slane %v1633_v15, 4  ;;  %v1634_v36 = vsel %vm8085_vm5, %v5952_v16, %v1633_v15  ;;  %v1648_v62 = vsel %vm8085_vm5, %v5954_v41, %v1647_v38  ;;  %v5956_v0 = vrot.slane %v1500_v56, 9  ;;  %v1504_v9 = vld [vmem:[%s7962_s5 + $0x64] sm:$0xf]  ;;  %v1505_v10 = vld [vmem:[%s7962_s5 + $0x68] sm:$0x1] }
  0xb1   : > { %v1656_v59 = vrot.slane %v1654_v53, 4  ;;  %v1651_v63 = vsel %vm8085_vm5, %v1649_v45, %v1650_v42  ;;  %v1663_v2 = vrot.slane %v1661_v61, 4  ;;  %v1664_v5 = vrot.slane %v1502_v58, 5  ;;  %v6341_v16 = vld [vmem:[%s7962_s5 + $0x18] sm:$0xf]  ;;  %v7756_v43 = vld [vmem:[%s9131_s1 + $0xf0] sm:$0xff]  }
  0xb2   : > { %7106 = vmatpush3.bf16.msra.mxu0 %v7752_v32  ;;  %v1642_v32 = vrot.slane %v1640_v28, 4  ;;  %v1637_v37 = vsel %vm8085_vm5, %v1635_v19, %v1636_v20  ;;  %v1655_v3 = vsel %vm8085_vm5, %v5955_v50, %v1654_v53  ;;  %v5986_v7 = vcombine.low %v1648_v62, %v1651_v63  ;;  %v6342_v19 = vld [vmem:[%s7962_s5 + $0x1c] sm:$0xf]  ;;  %v6343_v20 = vld [vmem:[%s7962_s5 + $0x20] sm:$0x1] }
  0xb3   : > { %7139 = vmatprep.subr.bf16.mxu0 %v8447_v55  ;;  %v5984_v44 = vcombine.low %v1634_v36, %v1637_v37  ;;  %v8521_v11 = vsel %vm8085_vm5, %v5956_v0, %v1661_v61  ;;  %v5957_v13 = vrot.slane %v1503_v8, 9  ;;  %v1668_v14 = vrot.slane %v1504_v9, 5  ;;  %v1508_v38 = vld [vmem:[%s7962_s5 + $0x74] sm:$0x1]  ;;  %v6345_v50 = vld [vmem:[%s7962_s5 + $0x28] sm:$0xf] }
  0xb4   : > { %v1644_v40 = vsel %vm8085_vm5, %v1642_v32, %v1643_v29  ;;  %v1671_v15 = vrot.slane %v1505_v10, 5  ;;  %v8527_v18 = vsel %vm8085_vm5, %v1663_v2, %v1664_v5  ;;  %v4480_v24 = vshll.u32 %v6342_v19, 16  ;;  %v1507_v32 = vld [vmem:[%s7962_s5 + $0x70] sm:$0xf]  ;;  %v1509_v61 = vld [vmem:[%s7962_s5 + $0x78] sm:$0xe] }
  0xb5   : > { %7076 = vmatmul.mubr.bf16.gmra.mrb[16].mxu0 %v7738_v54  ;;  %v1657_v54 = vrot.slane %v1499_v49, 5  ;;  %v1670_v23 = vrot.slane %v1668_v14, 4  ;;  %v4484_v25 = vshrl.u32 %v6342_v19, 16  ;;  %v4490_v31 = vshll.u32 %v6343_v20, 16  ;;  %v6344_v49 = vld [vmem:[%s7962_s5 + $0x24] sm:$0xf] }
  0xb6   : > { %7079 = vmatprep.mubr.bf16.mxu0 %v7740_v1  ;;  %v7753_v1 = vld [vmem:[%s9131_s1 + $0xe0] sm:$0xff]   ;;  %v4482_v36 = vrot.slane %v4480_v24, 5  ;;  %v1678_v42 = vrot.slane %v1508_v38, 5  ;;  %v4495_v53 = vshrl.u32 %v6344_v49, 16  ;;  %v4504_v56 = vshll.u32 %v6345_v50, 16  ;;  %v7758_v10 = vld [vmem:[%s9131_s1 + $0xf8] sm:$0xff]  }
  0xb7   : > { %6868 = vmatmul.mubr.bf16.vlgmr.msra.gmra.mrb[0].mxu1 %v5982_v17  ;;  %v1658_v6 = vsel %vm8085_vm5, %v1656_v59, %v1657_v54  ;;  %v1672_v35 = vsel %vm8085_vm5, %v1670_v23, %v1671_v15  ;;  %v4486_v37 = vrot.slane %v4484_v25, 4  ;;  %v4492_v45 = vrot.slane %v4490_v31, 5  ;;  %v1510_v2 = vld [vmem:[%s7962_s5 + $0x7c] sm:$0xf]  ;;  %v1511_v5 = vld [vmem:[%s7962_s5 + $0x80] sm:$0x1] }
  0xb8   : > { %6900 = vmatpush3.bf16.msra.mxu1 %v8337_v26  ;;  %6871 = vmatprep.mubr.bf16.mxu1 %v5983_v22  ;;  %v1641_v26 = vsel %vm8085_vm5, %v5953_v27, %v1640_v28  ;;  %v5987_v17 = vcombine.low %v1655_v3, %v1658_v6  ;;  %v8533_v22 = vsel %vm8085_vm5, %v5957_v13, %v1668_v14  ;;  %v1506_v27 = vld [vmem:[%s7962_s5 + $0x6c] sm:$0xe]  ;;  %v4498_v54 = vshll.u32 %v6344_v49, 16  ;;  %v6347_v9 = vld [vmem:[%s7962_s5 + $0x30] sm:$0xf] }
  0xb9   : > { %6901 = vmatprep.subr.bf16.mxu1 %v7741_v21  ;;  %v5985_v52 = vcombine.low %v1641_v26, %v1644_v40  ;;  %v7754_v28 = vld [vmem:[%s9131_s1 + $0xe8] sm:$0xff]   ;;  %v5958_v34 = vrot.slane %v1506_v27, 9  ;;  %v5988_v26 = vcombine.low %v8521_v11, %v8527_v18  ;;  %v5989_v40 = vcombine.low %v8533_v22, %v1672_v35  ;;  %v6348_v15 = vld [vmem:[%s7962_s5 + $0x34] sm:$0xf] }
  0xba   : > { %v4508_v59 = vshrl.u32 %v6345_v50, 16  ;;  %v4497_v0 = vrot.slane %v4495_v53, 4  ;;  %v4506_v6 = vrot.slane %v4504_v56, 5  ;;  %v5959_v13 = vrot.slane %v1509_v61, 9  ;;  %v1513_v25 = vld [vmem:[%s7962_s5 + $0x88] sm:$0xf] }
  0xbb   : > { %v1682_v14 = vrot.slane %v1510_v2, 5  ;;  %v1685_v18 = vrot.slane %v1511_v5, 5  ;;  %v4519_v19 = vshrl.u32 %v6347_v9, 16  ;;  %v4522_v20 = vshll.u32 %v6347_v9, 16  ;;  %v1514_v31 = vld [vmem:[%s7962_s5 + $0x8c] sm:$0x1] }
  0xbc   : > { %6902 = vmatpush3.bf16.msra.mxu1 %v7741_v21  ;;  %v4471_v21 = vshrl.u32 %v6341_v16, 16  ;;  %v4528_v24 = vshll.u32 %v6348_v15, 16  ;;  %v7757_v49 = vld [vmem:[%s9131_s1 + $0x208] sm:$0xff]   ;;  %v1515_v2 = vld [vmem:[%s7962_s5 + $0x90] sm:$0xe] }
  0xbd   : > { %7080 = vmatmul.mubr.bf16.gmra.mrb[20].mxu0 %v7742_v46  ;;  %6903 = vmatprep.subr.bf16.mxu1 %v7745_v39  ;;  %v4474_v46 = vshll.u32 %v6341_v16, 16  ;;  %v6349_v16 = vld [vmem:[%s7962_s5 + $0x38] sm:$0x1]  ;;  %v1683_v22 = vsel %vm8085_vm5, %v5959_v13, %v1682_v14  ;;  %v1684_v23 = vrot.slane %v1682_v14, 4 }
  0xbe   : > { %7083 = vmatprep.mubr.bf16.mxu0 %v7744_v30  ;;  %v4473_v29 = vrot.slane %v4471_v21, 4  ;;  %v1512_v21 = vld [vmem:[%s7962_s5 + $0x84] sm:$0xe]  ;;  %v4530_v35 = vrot.slane %v4528_v24, 5  ;;  %v1517_v9 = vld [vmem:[%s7962_s5 + $0x98] sm:$0x1] }
  0xbf   : > { %6872 = vmatmul.mubr.bf16.gmra.mrb[4].mxu1 %v5984_v44  ;;  %v4476_v30 = vrot.slane %v4474_v46, 5  ;;  %v4487_v44 = vor.u32 %v4486_v37, %v4482_v36 }
  0xc0   : > { %6875 = vmatprep.mubr.bf16.mxu1 %v5985_v52  ;;  %6904 = vmatpush3.bf16.msra.mxu1 %v7745_v39  ;;  %v1675_v39 = vrot.slane %v1507_v32, 5  ;;  %v6346_v52 = vld [vmem:[%s7962_s5 + $0x2c] sm:$0x1] }
  0xc1   : > { %6905 = vmatprep.subr.bf16.mxu1 %v7749_v51  ;;  %v4477_v41 = vor.u32 %v4476_v30, %v4473_v29  ;;  %v4488_v57 = vrot.slane %v4487_v44, 4  ;;  %v4524_v29 = vrot.slane %v4522_v20, 5  ;;  %v4532_v30 = vshrl.u32 %v6348_v15, 16 }
  0xc2   : > { %v1677_v48 = vrot.slane %v1675_v39, 4  ;;  %v5960_v44 = vrot.slane %v1512_v21, 9 }
  0xc3   : > { %v4493_v3 = vsel %vm7985_vm2, %v4488_v57, %v4492_v45  ;;  %v1689_v45 = vrot.slane %v1513_v25, 5 }
  0xc4   : > { %6906 = vmatpush3.bf16.msra.mxu1 %v7749_v51  ;;  %v4478_v51 = vrot.slane %v4477_v41, 4  ;;  %v8558_v58 = vsel %vm8085_vm5, %v1677_v48, %v1678_v42  ;;  %v6351_v41 = vld [vmem:[%s7962_s5 + $0x40] sm:$0xf]  ;;  %v6352_v48 = vld [vmem:[%s7962_s5 + $0x44] sm:$0x1] }
  0xc5   : > { %7084 = vmatmul.mubr.bf16.gmra.mrb[24].mxu0 %v7746_v47  ;;  %6907 = vmatprep.subr.bf16.mxu1 %v7753_v1  ;;  %v8551_v47 = vsel %vm8085_vm5, %v5958_v34, %v1675_v39  ;;  %v1686_v34 = vsel %vm8085_vm5, %v1684_v23, %v1685_v18  ;;  %v1691_v56 = vrot.slane %v1689_v45, 4 }
  0xc6   : > { %7087 = vmatprep.mubr.bf16.mxu0 %v7748_v60  ;;  %v4514_v60 = vshll.u32 %v6346_v52, 16  ;;  %v4483_v62 = vsel %vm7985_vm2, %v4478_v51, %v4482_v36  ;;  %v5990_v63 = vcombine.low %v8551_v47, %v8558_v58  ;;  %v4538_v36 = vshll.u32 %v6349_v16, 16  ;;  %v1516_v58 = vld [vmem:[%s7962_s5 + $0x94] sm:$0xf]  ;;  %v6354_v16 = vld [vmem:[%s7962_s5 + $0x4c] sm:$0xf] }
  0xc7   : > { %6876 = vmatmul.mubr.bf16.gmra.mrb[8].mxu1 %v5986_v7  ;;  %v4510_v7 = vrot.slane %v4508_v59, 4  ;;  %v6405_v11 = vcombine.low %v4483_v62, %v4493_v3  ;;  %v5991_v38 = vcombine.low %v1683_v22, %v1686_v34  ;;  %v1692_v52 = vrot.slane %v1514_v31, 5  ;;  %v1520_v34 = vld [vmem:[%s7962_s5 + $0xa4] sm:$0x1] }
  0xc8   : > { %6879 = vmatprep.mubr.bf16.mxu1 %v5987_v17  ;;  %6908 = vmatpush3.bf16.msra.mxu1 %v7753_v1  ;;  %v4500_v1 = vrot.slane %v4498_v54, 5  ;;  %v4516_v8 = vrot.slane %v4514_v60, 5  ;;  %v1690_v54 = vsel %vm8085_vm5, %v5960_v44, %v1689_v45  ;;  %v4552_v59 = vshll.u32 %v6351_v41, 16  ;;  %v8597_v60 = vld [vmem:[%s9131_s1 + $0x100] sm:$0xff]  }
  0xc9   : > { %6909 = vmatprep.subr.bf16.mxu1 %v7754_v28  ;;  %v4511_v17 = vor.u32 %v4510_v7, %v4506_v6  ;;  %v1693_v5 = vsel %vm8085_vm5, %v1691_v56, %v1692_v52  ;;  %v4562_v47 = vshll.u32 %v6352_v48, 16  ;;  %v1696_v15 = vrot.slane %v1516_v58, 5 }
  0xca   : > { %v4576_v25 = vshll.u32 %v6354_v16, 16 }
  0xcb   : > { %v4512_v27 = vrot.slane %v4511_v17, 4  ;;  %v4564_v14 = vrot.slane %v4562_v47, 5  ;;  %v6355_v17 = vld [vmem:[%s7962_s5 + $0x50] sm:$0x1]  ;;  %v1698_v24 = vrot.slane %v1696_v15, 4 }
  0xcc   : > { %6910 = vmatpush3.bf16.msra.mxu1 %v7754_v28  ;;  %v4521_v28 = vrot.slane %v4519_v19, 4  ;;  %v1699_v19 = vrot.slane %v1517_v9, 5 }
  0xcd   : > { %7088 = vmatmul.mubr.bf16.gmra.mrb[28].mxu0 %v7750_v12  ;;  %6911 = vmatprep.subr.bf16.mxu1 %v7756_v43  ;;  %v4501_v12 = vor.u32 %v4500_v1, %v4497_v0  ;;  %v4517_v37 = vsel %vm7985_vm2, %v4512_v27, %v4516_v8  ;;  %v4556_v1 = vshrl.u32 %v6351_v41, 16  ;;  %v1519_v27 = vld [vmem:[%s7962_s5 + $0xa0] sm:$0xf] }
  0xce   : > { %7107 = vmatprep.mubr.bf16.mxu0 %v6405_v11  ;;  %v4525_v39 = vor.u32 %v4524_v29, %v4521_v28  ;;  %v6353_v11 = vld [vmem:[%s7962_s5 + $0x48] sm:$0xf]  ;;  %v7762_v28 = vld [vmem:[%s9131_s1 + $0x218] sm:$0xff]  }
  0xcf   : > { %6880 = vmatmul.mubr.bf16.gmra.mrb[12].mxu1 %v5988_v26  ;;  %v4502_v46 = vrot.slane %v4501_v12, 4  ;;  %v4534_v26 = vrot.slane %v4532_v30, 4  ;;  %v4558_v8 = vrot.slane %v4556_v1, 4  ;;  %v4567_v20 = vshrl.u32 %v6353_v11, 16 }
  0xd0   : > { %6883 = vmatprep.mubr.bf16.mxu1 %v5989_v40  ;;  %6912 = vmatpush3.bf16.msra.mxu1 %v7756_v43  ;;  %v6350_v40 = vld [vmem:[%s7962_s5 + $0x3c] sm:$0xf]  ;;  %v4540_v43 = vrot.slane %v4538_v36, 5  ;;  %v4526_v50 = vrot.slane %v4525_v39, 4  ;;  %v4570_v21 = vshll.u32 %v6353_v11, 16  ;;  %v1700_v36 = vsel %vm8085_vm5, %v1698_v24, %v1699_v19 }
  0xd1   : > { %v4507_v32 = vsel %vm7985_vm2, %v4502_v46, %v4506_v6  ;;  %6913 = vmatprep.subr.bf16.mxu1 %v7758_v10  ;;  %v4535_v51 = vor.u32 %v4534_v26, %v4530_v35  ;;  %v4543_v53 = vshrl.u32 %v6350_v40, 16  ;;  %v4546_v57 = vshll.u32 %v6350_v40, 16  ;;  %v1518_v46 = vld [vmem:[%s7962_s5 + $0x9c] sm:$0xe]  ;;  %v1523_v11 = vld [vmem:[%s7962_s5 + $0xb0] sm:$0x1] }
  0xd2   : > { %v6406_v42 = vcombine.low %v4507_v32, %v4517_v37  ;;  %v4531_v61 = vsel %vm7985_vm2, %v4526_v50, %v4530_v35  ;;  %v4554_v6 = vrot.slane %v4552_v59, 5  ;;  %v4569_v30 = vrot.slane %v4567_v20, 4  ;;  %v6358_v50 = vld [vmem:[%s7962_s5 + $0x5c] sm:$0x1]  ;;  %v6361_v19 = vld [vmem:[%s7962_s5 + $0x68] sm:$0x1] }
  0xd3   : > { %v4536_v62 = vrot.slane %v4535_v51, 4  ;;  %v4545_v0 = vrot.slane %v4543_v53, 4  ;;  %v4548_v3 = vrot.slane %v4546_v57, 5  ;;  %v4572_v31 = vrot.slane %v4570_v21, 5  ;;  %v7765_v51 = vld [vmem:[%s9131_s1 + $0x220] sm:$0xff]  }
  0xd4   : > { %6914 = vmatpush3.bf16.msra.mxu1 %v7758_v10  ;;  %v5961_v10 = vrot.slane %v1515_v2, 9  ;;  %v4559_v18 = vor.u32 %v4558_v8, %v4554_v6  ;;  %v4580_v32 = vshrl.u32 %v6354_v16, 16  ;;  %v4578_v37 = vrot.slane %v4576_v25, 5 }
  0xd5   : > { %7108 = vmatmul.mubr.bf16.vlgmr.msra.gmra.mrb[0].mxu0 %v6406_v42  ;;  %7187 = vmatprep.subr.bf16.mxu1 %v8597_v60  ;;  %v4541_v7 = vsel %vm7985_vm2, %v4536_v62, %v4540_v43  ;;  %v4549_v13 = vor.u32 %v4548_v3, %v4545_v0  ;;  %v4573_v40 = vor.u32 %v4572_v31, %v4569_v30  ;;  %v6356_v42 = vld [vmem:[%s7962_s5 + $0x54] sm:$0xf]  ;;  %v6357_v43 = vld [vmem:[%s7962_s5 + $0x58] sm:$0xf]  ;;  %v5962_v48 = vrot.slane %v1518_v46, 9 }
  0xd6   : > { %7140 = vmatpush3.bf16.msra.mxu0 %v8447_v55  ;;  %v5992_v55 = vcombine.low %v1690_v54, %v1693_v5  ;;  %v6407_v12 = vcombine.low %v4531_v61, %v4541_v7  ;;  %v1697_v23 = vsel %vm8085_vm5, %v5961_v10, %v1696_v15  ;;  %v4560_v29 = vrot.slane %v4559_v18, 4  ;;  %v1521_v3 = vld [vmem:[%s7962_s5 + $0xa8] sm:$0xe]  ;;  %v1522_v7 = vld [vmem:[%s7962_s5 + $0xac] sm:$0xf]  ;;  %v7771_v30 = vld [vmem:[%s9131_s1 + $0x230] sm:$0xff]  }
  0xd7   : > { %6884 = vmatmul.mubr.bf16.gmra.mrb[16].mxu1 %v5990_v63  ;;  %7141 = vmatprep.subr.bf16.mxu0 %v7757_v49  ;;  %v7759_v63 = vld [vmem:[%s9131_s1 + $0x210] sm:$0xff]   ;;  %v4550_v22 = vrot.slane %v4549_v13, 4  ;;  %v5993_v26 = vcombine.low %v1697_v23, %v1700_v36  ;;  %v4582_v41 = vrot.slane %v4580_v32, 4  ;;  %v4574_v52 = vrot.slane %v4573_v40, 4  ;;  %v6359_v13 = vld [vmem:[%s7962_s5 + $0x60] sm:$0xf] }
  0xd8   : > { %6887 = vmatprep.mubr.bf16.mxu1 %v5991_v38  ;;  %7111 = vmatprep.mubr.bf16.mxu0 %v6407_v12  ;;  %v4586_v38 = vshll.u32 %v6355_v17, 16  ;;  %v4565_v39 = vsel %vm7985_vm2, %v4560_v29, %v4564_v14  ;;  %v1706_v54 = vrot.slane %v1520_v34, 5  ;;  %v4591_v56 = vshrl.u32 %v6356_v42, 16  ;;  %v6360_v18 = vld [vmem:[%s7962_s5 + $0x64] sm:$0xf] }
  0xd9   : > { %v4555_v35 = vsel %vm7985_vm2, %v4550_v22, %v4554_v6  ;;  %v4583_v53 = vor.u32 %v4582_v41, %v4578_v37  ;;  %v4594_v61 = vshll.u32 %v6356_v42, 16  ;;  %v4600_v62 = vshll.u32 %v6357_v43, 16  ;;  %v1524_v23 = vld [vmem:[%s7962_s5 + $0xb4] sm:$0xe]  ;;  %v1525_v29 = vld [vmem:[%s7962_s5 + $0xb8] sm:$0xf] }
  0xda   : > { %7142 = vmatpush3.bf16.msra.mxu0 %v7757_v49  ;;  %v6408_v44 = vcombine.low %v4555_v35, %v4565_v39  ;;  %v4588_v45 = vrot.slane %v4586_v38, 5  ;;  %v1703_v49 = vrot.slane %v1519_v27, 5  ;;  %v4579_v0 = vsel %vm7985_vm2, %v4574_v52, %v4578_v37  ;;  %v1526_v36 = vld [vmem:[%s7962_s5 + $0xbc] sm:$0x1]  ;;  %v6364_v52 = vld [vmem:[%s7962_s5 + $0x74] sm:$0x1] }
  0xdb   : > { %7143 = vmatprep.subr.bf16.mxu0 %v7759_v63  ;;  %v4584_v1 = vrot.slane %v4583_v53, 4  ;;  %v4593_v2 = vrot.slane %v4591_v56, 4  ;;  %v4604_v5 = vshrl.u32 %v6357_v43, 16  ;;  %v4596_v47 = vrot.slane %v4594_v61, 5  ;;  %v7772_v53 = vld [vmem:[%s9131_s1 + $0x238] sm:$0xff]  }
  0xdc   : > { %v1704_v57 = vsel %vm8085_vm5, %v5962_v48, %v1703_v49  ;;  %v1705_v59 = vrot.slane %v1703_v49, 4  ;;  %v4602_v58 = vrot.slane %v4600_v62, 5  ;;  %v5963_v12 = vrot.slane %v1521_v3, 9 }
  0xdd   : > { %7112 = vmatmul.mubr.bf16.gmra.mrb[4].mxu0 %v6408_v44  ;;  %v4589_v8 = vsel %vm7985_vm2, %v4584_v1, %v4588_v45  ;;  %v4606_v10 = vrot.slane %v4604_v5, 4  ;;  %v4597_v15 = vor.u32 %v4596_v47, %v4593_v2  ;;  %v1710_v17 = vrot.slane %v1522_v7, 5  ;;  %v6362_v44 = vld [vmem:[%s7962_s5 + $0x6c] sm:$0xf]  ;;  %v6363_v45 = vld [vmem:[%s7962_s5 + $0x70] sm:$0xf] }
  0xde   : > { %7144 = vmatpush3.bf16.msra.mxu0 %v7759_v63  ;;  %v1707_v6 = vsel %vm8085_vm5, %v1705_v59, %v1706_v54  ;;  %v4610_v63 = vshll.u32 %v6358_v50, 16  ;;  %v6409_v14 = vcombine.low %v4579_v0, %v4589_v8  ;;  %v1713_v21 = vrot.slane %v1523_v11, 5  ;;  %v6365_v11 = vld [vmem:[%s7962_s5 + $0x78] sm:$0xf] }
  0xdf   : > { %6888 = vmatmul.mubr.bf16.gmra.mrb[20].mxu1 %v5992_v55  ;;  %7145 = vmatprep.subr.bf16.mxu0 %v7762_v28  ;;  %v7768_v55 = vld [vmem:[%s9131_s1 + $0x228] sm:$0xff]   ;;  %v5994_v9 = vcombine.low %v1704_v57, %v1707_v6  ;;  %v4607_v20 = vor.u32 %v4606_v10, %v4602_v58  ;;  %v4615_v46 = vshrl.u32 %v6359_v13, 16  ;;  %v4618_v22 = vshll.u32 %v6359_v13, 16 }
  0xe0   : > { %6891 = vmatprep.mubr.bf16.mxu1 %v5993_v26  ;;  %v4612_v16 = vrot.slane %v4610_v63, 5  ;;  %7115 = vmatprep.mubr.bf16.mxu0 %v6409_v14  ;;  %v4598_v24 = vrot.slane %v4597_v15, 4  ;;  %v1711_v25 = vsel %vm8085_vm5, %v5963_v12, %v1710_v17  ;;  %v1712_v27 = vrot.slane %v1710_v17, 4  ;;  %v6366_v12 = vld [vmem:[%s7962_s5 + $0x7c] sm:$0xf] }
  0xe1   : > { %v4608_v31 = vrot.slane %v4607_v20, 4  ;;  %v4617_v32 = vrot.slane %v4615_v46, 4  ;;  %v4620_v34 = vrot.slane %v4618_v22, 5  ;;  %v4628_v35 = vshrl.u32 %v6360_v18, 16 }
  0xe2   : > { %7146 = vmatpush3.bf16.msra.mxu0 %v7762_v28  ;;  %v4624_v28 = vshll.u32 %v6360_v18, 16  ;;  %v4603_v37 = vsel %vm7985_vm2, %v4598_v24, %v4602_v58  ;;  %v1714_v38 = vsel %vm8085_vm5, %v1712_v27, %v1713_v21  ;;  %v4634_v26 = vshll.u32 %v6361_v19, 16  ;;  %v6368_v24 = vld [vmem:[%s7962_s5 + $0x84] sm:$0xf] }
  0xe3   : > { %7147 = vmatprep.subr.bf16.mxu0 %v7765_v51  ;;  %v4613_v40 = vsel %vm7985_vm2, %v4608_v31, %v4612_v16  ;;  %v5995_v41 = vcombine.low %v1711_v25, %v1714_v38  ;;  %v4621_v42 = vor.u32 %v4620_v34, %v4617_v32  ;;  %v4630_v43 = vrot.slane %v4628_v35, 4  ;;  %v6367_v16 = vld [vmem:[%s7962_s5 + $0x80] sm:$0x1]  ;;  %v6370_v34 = vld [vmem:[%s7962_s5 + $0x8c] sm:$0x1] }
  0xe4   : > { %v4626_v39 = vrot.slane %v4624_v28, 5  ;;  %v6410_v48 = vcombine.low %v4603_v37, %v4613_v40  ;;  %v4636_v49 = vrot.slane %v4634_v26, 5  ;;  %v5964_v50 = vrot.slane %v1524_v23, 9  ;;  %v7761_v26 = vld [vmem:[%s7962_s5 + $0x18] sm:$0xff]  }
  0xe5   : > { %v4622_v54 = vrot.slane %v4621_v42, 4  ;;  %v1720_v57 = vrot.slane %v1526_v36, 5  ;;  %v4639_v59 = vshrl.u32 %v6362_v44, 16  ;;  %v4642_v0 = vshll.u32 %v6362_v44, 16 }
  0xe6   : > { %7148 = vmatpush3.bf16.msra.mxu0 %v7765_v51  ;;  %v1717_v51 = vrot.slane %v1525_v29, 5  ;;  %v4631_v56 = vor.u32 %v4630_v43, %v4626_v39  ;;  %v4648_v1 = vshll.u32 %v6363_v45, 16  ;;  %v4652_v6 = vshrl.u32 %v6363_v45, 16  ;;  %v7763_v45 = vld [vmem:[%s7962_s5 + $0x24] sm:$0xff]  }
  0xe7   : > { %6892 = vmatmul.mubr.bf16.gmra.mrb[24].mxu1 %v5994_v9  ;;  %7149 = vmatprep.subr.bf16.mxu0 %v7768_v55  ;;  %v4627_v2 = vsel %vm7985_vm2, %v4622_v54, %v4626_v39  ;;  %v4641_v3 = vrot.slane %v4639_v59, 4  ;;  %v4644_v58 = vrot.slane %v4642_v0, 5  ;;  %v4658_v7 = vshll.u32 %v6364_v52, 16  ;;  %v6371_v54 = vld [vmem:[%s7962_s5 + $0x90] sm:$0xf] }
  0xe8   : > { %6895 = vmatprep.mubr.bf16.mxu1 %v5995_v41  ;;  %7116 = vmatmul.mubr.bf16.gmra.mrb[8].mxu0 %v6410_v48  ;;  %v1718_v61 = vsel %vm8085_vm5, %v5964_v50, %v1717_v51  ;;  %v1719_v62 = vrot.slane %v1717_v51, 4  ;;  %v4632_v5 = vrot.slane %v4631_v56, 4  ;;  %v4650_v63 = vrot.slane %v4648_v1, 5  ;;  %v6372_v56 = vld [vmem:[%s7962_s5 + $0x94] sm:$0xf] }
  0xe9   : > { %v4654_v10 = vrot.slane %v4652_v6, 4  ;;  %v4645_v14 = vor.u32 %v4644_v58, %v4641_v3  ;;  %v4660_v15 = vrot.slane %v4658_v7, 5  ;;  %v4663_v17 = vshrl.u32 %v6365_v11, 16  ;;  %v6374_v6 = vld [vmem:[%s7962_s5 + $0x9c] sm:$0xf] }
  0xea   : > { %7150 = vmatpush3.bf16.msra.mxu0 %v7768_v55  ;;  %v1721_v47 = vsel %vm8085_vm5, %v1719_v62, %v1720_v57  ;;  %v7760_v55 = vld [vmem:[%s7962_s5 + $0xc] sm:$0xff]   ;;  %v4637_v8 = vsel %vm7985_vm2, %v4632_v5, %v4636_v49  ;;  %v4666_v19 = vshll.u32 %v6365_v11, 16  ;;  %v4672_v20 = vshll.u32 %v6366_v12, 16  ;;  %v6373_v62 = vld [vmem:[%s7962_s5 + $0x98] sm:$0x1] }
  0xeb   : > { %7151 = vmatprep.subr.bf16.mxu0 %v7771_v30  ;;  %v5996_v9 = vcombine.low %v1718_v61, %v1721_v47  ;;  %v6411_v13 = vcombine.low %v4627_v2, %v4637_v8  ;;  %v4655_v18 = vor.u32 %v4654_v10, %v4650_v63  ;;  %v4676_v21 = vshrl.u32 %v6366_v12, 16  ;;  %v7782_v8 = vld [vmem:[%s9131_s1 + $0x108] sm:$0xff]   ;;  %v6376_v12 = vld [vmem:[%s7962_s5 + $0xa4] sm:$0x1] }
  0xec   : > { %v4646_v46 = vrot.slane %v4645_v14, 4  ;;  %v4665_v22 = vrot.slane %v4663_v17, 4  ;;  %v4682_v23 = vshll.u32 %v6367_v16, 16  ;;  %v4668_v27 = vrot.slane %v4666_v19, 5  ;;  %v7766_v14 = vld [vmem:[%s7962_s5 + $0x3c] sm:$0xff]  }
  0xed   : > { %7119 = vmatprep.mubr.bf16.mxu0 %v6411_v13  ;;  %v4656_v25 = vrot.slane %v4655_v18, 4  ;;  %v4674_v28 = vrot.slane %v4672_v20, 5  ;;  %v4678_v29 = vrot.slane %v4676_v21, 4  ;;  %v4687_v35 = vshrl.u32 %v6368_v24, 16 }
  0xee   : > { %7152 = vmatpush3.bf16.msra.mxu0 %v7771_v30  ;;  %v6369_v30 = vld [vmem:[%s7962_s5 + $0x88] sm:$0xf]  ;;  %v4651_v31 = vsel %vm7985_vm2, %v4646_v46, %v4650_v63  ;;  %v4684_v32 = vrot.slane %v4682_v23, 5  ;;  %v4690_v36 = vshll.u32 %v6368_v24, 16  ;;  %v4669_v38 = vor.u32 %v4668_v27, %v4665_v22 }
  0xef   : > { %7153 = vmatprep.subr.bf16.mxu0 %v7772_v53  ;;  %6896 = vmatmul.mubr.bf16.gmra.mrb[28].mxu1 %v5996_v9  ;;  %v4661_v37 = vsel %vm7985_vm2, %v4656_v25, %v4660_v15  ;;  %v4679_v39 = vor.u32 %v4678_v29, %v4674_v28  ;;  %v4696_v40 = vshll.u32 %v6369_v30, 16  ;;  %v4689_v42 = vrot.slane %v4687_v35, 4  ;;  %v6375_v9 = vld [vmem:[%s7962_s5 + $0xa0] sm:$0xf]  ;;  %v6377_v27 = vld [vmem:[%s7962_s5 + $0xa8] sm:$0xf] }
  0xf0   : > { %6915 = vmatprep.mubr.bf16.mxu1 %v7760_v55  ;;  %v6412_v41 = vcombine.low %v4651_v31, %v4661_v37  ;;  %v4692_v43 = vrot.slane %v4690_v36, 5  ;;  %v4700_v44 = vshrl.u32 %v6369_v30, 16  ;;  %v4670_v48 = vrot.slane %v4669_v38, 4  ;;  %v7764_v55 = vld [vmem:[%s7962_s5 + $0x30] sm:$0xff]  }
  0xf1   : > { %v4680_v49 = vrot.slane %v4679_v39, 4  ;;  %v4698_v50 = vrot.slane %v4696_v40, 5  ;;  %v4706_v51 = vshll.u32 %v6370_v34, 16  ;;  %v4711_v0 = vshrl.u32 %v6371_v54, 16  ;;  %v6379_v38 = vld [vmem:[%s7962_s5 + $0xb0] sm:$0x1] }
  0xf2   : > { %7154 = vmatpush3.bf16.msra.mxu0 %v7772_v53  ;;  %v4693_v52 = vor.u32 %v4692_v43, %v4689_v42  ;;  %v4702_v53 = vrot.slane %v4700_v44, 4  ;;  %v4675_v57 = vsel %vm7985_vm2, %v4670_v48, %v4674_v28  ;;  %v4714_v3 = vshll.u32 %v6371_v54, 16  ;;  %v7783_v28 = vld [vmem:[%s9131_s1 + $0x110] sm:$0xff]  }
  0xf3   : > { %7120 = vmatmul.mubr.bf16.gmra.mrb[12].mxu0 %v6412_v41  ;;  %v4685_v59 = vsel %vm7985_vm2, %v4680_v49, %v4684_v32  ;;  %v4708_v61 = vrot.slane %v4706_v51, 5  ;;  %v4713_v47 = vrot.slane %v4711_v0, 4  ;;  %v4720_v58 = vshll.u32 %v6372_v56, 16  ;;  %v6378_v32 = vld [vmem:[%s7962_s5 + $0xac] sm:$0xf]  ;;  %v7784_v51 = vld [vmem:[%s9131_s1 + $0x118] sm:$0xff]  }
  0xf4   : > { %v6413_v1 = vcombine.low %v4675_v57, %v4685_v59  ;;  %v4694_v2 = vrot.slane %v4693_v52, 4  ;;  %v4703_v5 = vor.u32 %v4702_v53, %v4698_v50  ;;  %v4724_v63 = vshrl.u32 %v6372_v56, 16  ;;  %v7767_v49 = vld [vmem:[%s7962_s5 + $0x48] sm:$0xff]   ;;  %v6381_v57 = vld [vmem:[%s7962_s5 + $0xb8] sm:$0xf] }
  0xf5   : > { %v4730_v7 = vshll.u32 %v6373_v62, 16  ;;  %v4716_v11 = vrot.slane %v4714_v3, 5  ;;  %v4735_v13 = vshrl.u32 %v6374_v6, 16  ;;  %v4722_v15 = vrot.slane %v4720_v58, 5  ;;  %v7769_v59 = vld [vmem:[%s7962_s5 + $0x54] sm:$0xff]  }
  0xf6   : > { %7123 = vmatprep.mubr.bf16.mxu0 %v6413_v1  ;;  %v4704_v10 = vrot.slane %v4703_v5, 4  ;;  %v4726_v16 = vrot.slane %v4724_v63, 4  ;;  %v4738_v18 = vshll.u32 %v6374_v6, 16  ;;  %v4744_v46 = vshll.u32 %v6375_v9, 16  ;;  %v6382_v1 = vld [vmem:[%s7962_s5 + $0xbc] sm:$0x1] }
  0xf7   : > { %6916 = vmatmul.mubr.bf16.vlgmr.msra.gmra.mrb[0].mxu1 %v7761_v26  ;;  %v4732_v17 = vrot.slane %v4730_v7, 5  ;;  %v4717_v20 = vor.u32 %v4716_v11, %v4713_v47  ;;  %v4737_v21 = vrot.slane %v4735_v13, 4  ;;  %v4748_v25 = vshrl.u32 %v6375_v9, 16 }
  0xf8   : > { %7195 = vmatpush3.bf16.msra.mxu1 %v8597_v60  ;;  %6919 = vmatprep.mubr.bf16.mxu1 %v7763_v45  ;;  %v4699_v60 = vsel %vm7985_vm2, %v4694_v2, %v4698_v50  ;;  %v4709_v19 = vsel %vm7985_vm2, %v4704_v10, %v4708_v61  ;;  %v4727_v23 = vor.u32 %v4726_v16, %v4722_v15  ;;  %v4740_v24 = vrot.slane %v4738_v18, 5  ;;  %v6380_v50 = vld [vmem:[%s7962_s5 + $0xb4] sm:$0xf]  ;;  %v6384_v16 = vld [vmem:[%s7962_s5 + $0xc4] sm:$0xf] }
  0xf9   : > { %7188 = vmatprep.subr.bf16.mxu1 %v7782_v8  ;;  %v6414_v22 = vcombine.low %v4699_v60, %v4709_v19  ;;  %v4718_v29 = vrot.slane %v4717_v20, 4  ;;  %v4746_v30 = vrot.slane %v4744_v46, 5  ;;  %v4754_v31 = vshll.u32 %v6376_v12, 16  ;;  %v6383_v12 = vld [vmem:[%s7962_s5 + $0xc0] sm:$0xf] }
  0xfa   : > { %v4759_v34 = vshrl.u32 %v6377_v27, 16  ;;  %v4728_v35 = vrot.slane %v4727_v23, 4  ;;  %v4741_v36 = vor.u32 %v4740_v24, %v4737_v21  ;;  %v4750_v37 = vrot.slane %v4748_v25, 4 }
  0xfb   : > { %7124 = vmatmul.mubr.bf16.gmra.mrb[16].mxu0 %v6414_v22  ;;  %v4762_v39 = vshll.u32 %v6377_v27, 16  ;;  %v4723_v26 = vsel %vm7985_vm2, %v4718_v29, %v4722_v15  ;;  %v4756_v40 = vrot.slane %v4754_v31, 5  ;;  %v4768_v42 = vshll.u32 %v6378_v32, 16  ;;  %v6386_v31 = vld [vmem:[%s7962_s5 + $0xcc] sm:$0xf] }
  0xfc   : > { %7196 = vmatpush3.bf16.msra.mxu1 %v7782_v8  ;;  %v4761_v41 = vrot.slane %v4759_v34, 4  ;;  %v4733_v43 = vsel %vm7985_vm2, %v4728_v35, %v4732_v17  ;;  %v4742_v44 = vrot.slane %v4741_v36, 4  ;;  %v4751_v45 = vor.u32 %v4750_v37, %v4746_v30  ;;  %v7785_v8 = vld [vmem:[%s9131_s1 + $0x120] sm:$0xff]   ;;  %v6385_v17 = vld [vmem:[%s7962_s5 + $0xc8] sm:$0x1] }
  0xfd   : > { %7189 = vmatprep.subr.bf16.mxu1 %v7783_v28  ;;  %v4764_v48 = vrot.slane %v4762_v39, 5  ;;  %v6415_v52 = vcombine.low %v4723_v26, %v4733_v43  ;;  %v4770_v53 = vrot.slane %v4768_v42, 5  ;;  %v4772_v54 = vshrl.u32 %v6378_v32, 16  ;;  %v7786_v32 = vld [vmem:[%s9131_s1 + $0x128] sm:$0xff]   ;;  %v6388_v42 = vld [vmem:[%s7962_s5 + $0xd4] sm:$0x1] }
  0xfe   : > { %v4778_v56 = vshll.u32 %v6379_v38, 16  ;;  %v4747_v61 = vsel %vm7985_vm2, %v4742_v44, %v4746_v30  ;;  %v4752_v62 = vrot.slane %v4751_v45, 4  ;;  %v4783_v2 = vshrl.u32 %v6380_v50, 16  ;;  %v7770_v30 = vld [vmem:[%s7962_s5 + $0x60] sm:$0xff]   ;;  %v6387_v38 = vld [vmem:[%s7962_s5 + $0xd0] sm:$0xf] }
  0xff   : > { %6920 = vmatmul.mubr.bf16.gmra.mrb[4].mxu1 %v7764_v55  ;;  %v4765_v0 = vor.u32 %v4764_v48, %v4761_v41  ;;  %7127 = vmatprep.mubr.bf16.mxu0 %v6415_v52  ;;  %v4774_v5 = vrot.slane %v4772_v54, 4  ;;  %v4786_v6 = vshll.u32 %v6380_v50, 16  ;;  %v4792_v47 = vshll.u32 %v6381_v57, 16  ;;  %v7773_v39 = vld [vmem:[%s7962_s5 + $0x6c] sm:$0xff]  }
 0x100   : > { %6923 = vmatprep.mubr.bf16.mxu1 %v7766_v14  ;;  %7197 = vmatpush3.bf16.msra.mxu1 %v7783_v28  ;;  %v4780_v3 = vrot.slane %v4778_v56, 5  ;;  %v4757_v58 = vsel %vm7985_vm2, %v4752_v62, %v4756_v40  ;;  %v4785_v7 = vrot.slane %v4783_v2, 4  ;;  %v4796_v55 = vshrl.u32 %v6381_v57, 16  ;;  %v7787_v54 = vld [vmem:[%s9131_s1 + $0x130] sm:$0xff]  }
 0x101   : > { %7190 = vmatprep.subr.bf16.mxu1 %v7784_v51  ;;  %v4766_v63 = vrot.slane %v4765_v0, 4  ;;  %v6416_v9 = vcombine.low %v4747_v61, %v4757_v58  ;;  %v4775_v60 = vor.u32 %v4774_v5, %v4770_v53  ;;  %v4788_v10 = vrot.slane %v4786_v6, 5  ;;  %v6430_v6 = vld [vmem:[%s7962_s5 + $0x1c] sm:$0xf] }
 0x102   : > { %v4794_v11 = vrot.slane %v4792_v47, 5  ;;  %v4798_v14 = vrot.slane %v4796_v55, 4  ;;  %v4802_v15 = vshll.u32 %v6382_v1, 16  ;;  %v4807_v20 = vshrl.u32 %v6383_v12, 16  ;;  %v6429_v1 = vld [vmem:[%s7962_s5 + $0x18] sm:$0xe] }
 0x103   : > { %v4771_v13 = vsel %vm7985_vm2, %v4766_v63, %v4770_v53  ;;  %7128 = vmatmul.mubr.bf16.gmra.mrb[20].mxu0 %v6416_v9  ;;  %v4776_v18 = vrot.slane %v4775_v60, 4  ;;  %v4789_v19 = vor.u32 %v4788_v10, %v4785_v7  ;;  %v4810_v21 = vshll.u32 %v6383_v12, 16  ;;  %v6431_v47 = vld [vmem:[%s7962_s5 + $0x20] sm:$0x1]  ;;  %v7788_v9 = vld [vmem:[%s9131_s1 + $0x138] sm:$0xff]  }
 0x104   : > { %7198 = vmatpush3.bf16.msra.mxu1 %v7784_v51  ;;  %v4799_v46 = vor.u32 %v4798_v14, %v4794_v11  ;;  %v4804_v22 = vrot.slane %v4802_v15, 5  ;;  %v4816_v23 = vshll.u32 %v6384_v16, 16  ;;  %v4820_v24 = vshrl.u32 %v6384_v16, 16  ;;  %v6432_v12 = vld [vmem:[%s7962_s5 + $0x24] sm:$0xe] }
 0x105   : > { %7191 = vmatprep.subr.bf16.mxu1 %v7785_v8  ;;  %v4781_v25 = vsel %vm7985_vm2, %v4776_v18, %v4780_v3  ;;  %v4790_v27 = vrot.slane %v4789_v19, 4  ;;  %v4809_v28 = vrot.slane %v4807_v20, 4  ;;  %v4812_v29 = vrot.slane %v4810_v21, 5  ;;  %v6433_v15 = vld [vmem:[%s7962_s5 + $0x28] sm:$0xf] }
 0x106   : > { %v6417_v34 = vcombine.low %v4771_v13, %v4781_v25  ;;  %v4800_v35 = vrot.slane %v4799_v46, 4  ;;  %v4818_v36 = vrot.slane %v4816_v23, 5  ;;  %v4822_v37 = vrot.slane %v4820_v24, 4  ;;  %v6434_v16 = vld [vmem:[%s7962_s5 + $0x2c] sm:$0x1] }
 0x107   : > { %6924 = vmatmul.mubr.bf16.gmra.mrb[8].mxu1 %v7767_v49  ;;  %v4795_v26 = vsel %vm7985_vm2, %v4790_v27, %v4794_v11  ;;  %v4813_v40 = vor.u32 %v4812_v29, %v4809_v28  ;;  %v4826_v41 = vshll.u32 %v6385_v17, 16  ;;  %v4831_v43 = vshrl.u32 %v6386_v31, 16  ;;  %v7775_v17 = vld [vmem:[%s7962_s5 + $0x84] sm:$0xff]   ;;  %v6436_v23 = vld [vmem:[%s7962_s5 + $0x34] sm:$0xf] }
 0x108   : > { %6927 = vmatprep.mubr.bf16.mxu1 %v7769_v59  ;;  %7199 = vmatpush3.bf16.msra.mxu1 %v7785_v8  ;;  %v4805_v44 = vsel %vm7985_vm2, %v4800_v35, %v4804_v22  ;;  %v4823_v45 = vor.u32 %v4822_v37, %v4818_v36  ;;  %v4834_v48 = vshll.u32 %v6386_v31, 16  ;;  %v4840_v49 = vshll.u32 %v6387_v38, 16  ;;  %v7774_v8 = vld [vmem:[%s7962_s5 + $0x78] sm:$0xff]   ;;  %v6435_v22 = vld [vmem:[%s7962_s5 + $0x30] sm:$0xe] }
 0x109   : > { %7192 = vmatprep.subr.bf16.mxu1 %v7786_v32  ;;  %7131 = vmatprep.mubr.bf16.mxu0 %v6417_v34  ;;  %v6418_v50 = vcombine.low %v4795_v26, %v4805_v44  ;;  %v4814_v51 = vrot.slane %v4813_v40, 4  ;;  %v4828_v52 = vrot.slane %v4826_v41, 5  ;;  %v4833_v53 = vrot.slane %v4831_v43, 4  ;;  %v6437_v29 = vld [vmem:[%s7962_s5 + $0x38] sm:$0x1]  ;;  %v7776_v35 = vld [vmem:[%s7962_s5 + $0x90] sm:$0xff]  }
 0x10a   : > { %v4824_v56 = vrot.slane %v4823_v45, 4  ;;  %v4836_v57 = vrot.slane %v4834_v48, 5  ;;  %v4842_v59 = vrot.slane %v4840_v49, 5  ;;  %v4844_v61 = vshrl.u32 %v6387_v38, 16  ;;  %v6439_v37 = vld [vmem:[%s7962_s5 + $0x40] sm:$0xf] }
 0x10b   : > { %7132 = vmatmul.mubr.bf16.gmra.mrb[24].mxu0 %v6418_v50  ;;  %v4819_v62 = vsel %vm7985_vm2, %v4814_v51, %v4818_v36  ;;  %v4850_v0 = vshll.u32 %v6388_v42, 16  ;;  %v6477_v58 = vrot.slane %v6429_v1, 9  ;;  %v5338_v7 = vrot.slane %v6430_v6, 5  ;;  %v6438_v36 = vld [vmem:[%s7962_s5 + $0x3c] sm:$0xe] }
 0x10c   : > { %7200 = vmatpush3.bf16.msra.mxu1 %v7786_v32  ;;  %v4829_v2 = vsel %vm7985_vm2, %v4824_v56, %v4828_v52  ;;  %v4837_v5 = vor.u32 %v4836_v57, %v4833_v53  ;;  %v4846_v3 = vrot.slane %v4844_v61, 4  ;;  %v5341_v55 = vrot.slane %v6431_v47, 5  ;;  %v6440_v38 = vld [vmem:[%s7962_s5 + $0x44] sm:$0x1]  ;;  %v7777_v41 = vld [vmem:[%s7962_s5 + $0x9c] sm:$0xff]  }
 0x10d   : > { %7193 = vmatprep.subr.bf16.mxu1 %v7787_v54  ;;  %v6419_v63 = vcombine.low %v4819_v62, %v4829_v2  ;;  %v4852_v11 = vrot.slane %v4850_v0, 5  ;;  %v5339_v13 = vsel %vm8085_vm5, %v6477_v58, %v5338_v7  ;;  %v5340_v14 = vrot.slane %v5338_v7, 4  ;;  %v6441_v48 = vld [vmem:[%s7962_s5 + $0x48] sm:$0xe]  ;;  %v6442_v49 = vld [vmem:[%s7962_s5 + $0x4c] sm:$0xf] }
 0x10e   : > { %v4838_v60 = vrot.slane %v4837_v5, 4  ;;  %v4847_v10 = vor.u32 %v4846_v3, %v4842_v59  ;;  %v6478_v20 = vrot.slane %v6432_v12, 9  ;;  %v5345_v21 = vrot.slane %v6433_v15, 5  ;;  %v6443_v51 = vld [vmem:[%s7962_s5 + $0x50] sm:$0x1] }
 0x10f   : > { %6928 = vmatmul.mubr.bf16.gmra.mrb[12].mxu1 %v7770_v30  ;;  %7135 = vmatprep.mubr.bf16.mxu0 %v6419_v63  ;;  %v5342_v46 = vsel %vm8085_vm5, %v5340_v14, %v5341_v55  ;;  %v5348_v28 = vrot.slane %v6434_v16, 5  ;;  %v6479_v31 = vrot.slane %v6435_v22, 9  ;;  %v5352_v32 = vrot.slane %v6436_v23, 5  ;;  %v6444_v57 = vld [vmem:[%s7962_s5 + $0x54] sm:$0xe] }
 0x110   : > { %6931 = vmatprep.mubr.bf16.mxu1 %v7773_v39  ;;  %7201 = vmatpush3.bf16.msra.mxu1 %v7787_v54  ;;  %v4843_v18 = vsel %vm7985_vm2, %v4838_v60, %v4842_v59  ;;  %v4848_v19 = vrot.slane %v4847_v10, 4  ;;  %v6509_v25 = vcombine.low %v5339_v13, %v5342_v46  ;;  %v5347_v27 = vrot.slane %v5345_v21, 4  ;;  %v6445_v0 = vld [vmem:[%s7962_s5 + $0x58] sm:$0xf]  ;;  %v6446_v1 = vld [vmem:[%s7962_s5 + $0x5c] sm:$0x1] }
 0x111   : > { %7194 = vmatprep.subr.bf16.mxu1 %v7788_v9  ;;  %v5355_v34 = vrot.slane %v6437_v29, 5  ;;  %v5346_v39 = vsel %vm8085_vm5, %v6478_v20, %v5345_v21  ;;  %v5354_v26 = vrot.slane %v5352_v32, 4  ;;  %v6480_v40 = vrot.slane %v6438_v36, 9  ;;  %v6447_v7 = vld [vmem:[%s7962_s5 + $0x60] sm:$0xe]  ;;  %v7779_v13 = vld [vmem:[%s7962_s5 + $0xb4] sm:$0xff]  }
 0x112   : > { %v4853_v24 = vsel %vm7985_vm2, %v4848_v19, %v4852_v11  ;;  %v5349_v42 = vsel %vm8085_vm5, %v5347_v27, %v5348_v28  ;;  %v5353_v43 = vsel %vm8085_vm5, %v6479_v31, %v5352_v32  ;;  %v5359_v44 = vrot.slane %v6439_v37, 5  ;;  %v6448_v55 = vld [vmem:[%s7962_s5 + $0x64] sm:$0xf]  ;;  %v6450_v16 = vld [vmem:[%s7962_s5 + $0x6c] sm:$0xe] }
 0x113   : > { %v6420_v30 = vcombine.low %v4843_v18, %v4853_v24  ;;  %v5362_v45 = vrot.slane %v6440_v38, 5  ;;  %v5356_v50 = vsel %vm8085_vm5, %v5354_v26, %v5355_v34  ;;  %v6481_v52 = vrot.slane %v6441_v48, 9  ;;  %v6452_v20 = vld [vmem:[%s7962_s5 + $0x74] sm:$0x1]  ;;  %v6101_v22 = vld [vmem:[%s7962_s5 + $0x6c] sm:$0xf] }
 0x114   : > { %7202 = vmatpush3.bf16.msra.mxu1 %v7788_v9  ;;  %v5366_v53 = vrot.slane %v6442_v49, 5  ;;  %v5361_v54 = vrot.slane %v5359_v44, 4  ;;  %v5369_v56 = vrot.slane %v6443_v51, 5  ;;  %v6510_v59 = vcombine.low %v5346_v39, %v5349_v42  ;;  %v7778_v9 = vld [vmem:[%s7962_s5 + $0xa8] sm:$0xff]   ;;  %v6102_v28 = vld [vmem:[%s7962_s5 + $0x70] sm:$0xf] }
 0x115   : > { %7136 = vmatmul.mubr.bf16.gmra.mrb[28].mxu0 %v6420_v30  ;;  %v6511_v61 = vcombine.low %v5353_v43, %v5356_v50  ;;  %v6482_v2 = vrot.slane %v6444_v57, 9  ;;  %v5360_v5 = vsel %vm8085_vm5, %v6480_v40, %v5359_v44  ;;  %v5373_v6 = vrot.slane %v6445_v0, 5  ;;  %v6103_v29 = vld [vmem:[%s7962_s5 + $0x74] sm:$0x1]  ;;  %v6454_v26 = vld [vmem:[%s7962_s5 + $0x7c] sm:$0xf] }
 0x116   : > { %7155 = vmatprep.mubr.bf16.mxu0 %v6509_v25  ;;  %v5368_v62 = vrot.slane %v5366_v53, 4  ;;  %v5363_v3 = vsel %vm8085_vm5, %v5361_v54, %v5362_v45  ;;  %v5376_v47 = vrot.slane %v6446_v1, 5  ;;  %v5367_v58 = vsel %vm8085_vm5, %v6481_v52, %v5366_v53  ;;  %v6455_v44 = vld [vmem:[%s7962_s5 + $0x80] sm:$0x1]  ;;  %v6104_v45 = vld [vmem:[%s7962_s5 + $0x78] sm:$0xf] }
 0x117   : > { %6932 = vmatmul.mubr.bf16.gmra.mrb[16].mxu1 %v7774_v8  ;;  %v6449_v8 = vld [vmem:[%s7962_s5 + $0x68] sm:$0x1]  ;;  %v8823_v60 = vsel %vm8085_vm5, %v6482_v2, %v5373_v6  ;;  %v5375_v10 = vrot.slane %v5373_v6, 4  ;;  %v6483_v11 = vrot.slane %v6447_v7, 9  ;;  %v6512_v12 = vcombine.low %v5360_v5, %v5363_v3  ;;  %v6105_v52 = vld [vmem:[%s7962_s5 + $0x7c] sm:$0xf] }
 0x118   : > { %6935 = vmatprep.mubr.bf16.mxu1 %v7775_v17  ;;  %v5370_v63 = vsel %vm8085_vm5, %v5368_v62, %v5369_v56  ;;  %v5380_v14 = vrot.slane %v6448_v55, 5  ;;  %v5383_v15 = vrot.slane %v6449_v8, 5  ;;  %v6451_v17 = vld [vmem:[%s7962_s5 + $0x70] sm:$0xf]  ;;  %v6484_v21 = vrot.slane %v6450_v16, 9  ;;  %v7780_v2 = vld [vmem:[%s7962_s5 + $0xc0] sm:$0xff]  }
 0x119   : > { %v6513_v18 = vcombine.low %v5367_v58, %v5370_v63  ;;  %v8830_v19 = vsel %vm8085_vm5, %v5375_v10, %v5376_v47  ;;  %v5387_v46 = vrot.slane %v6451_v17, 5  ;;  %v5390_v27 = vrot.slane %v6452_v20, 5  ;;  %v6456_v58 = vld [vmem:[%s7962_s5 + $0x84] sm:$0xe] }
 0x11a   : > { %v6514_v23 = vcombine.low %v8823_v60, %v8830_v19  ;;  %v8838_v24 = vsel %vm8085_vm5, %v6483_v11, %v5380_v14  ;;  %v5382_v25 = vrot.slane %v5380_v14, 4  ;;  %v2800_v32 = vshrl.u32 %v6101_v22, 16  ;;  %v6458_v14 = vld [vmem:[%s7962_s5 + $0x8c] sm:$0x1] }
 0x11b   : > { %v8844_v30 = vsel %vm8085_vm5, %v6484_v21, %v5387_v46  ;;  %v5389_v31 = vrot.slane %v5387_v46, 4  ;;  %v2803_v34 = vshll.u32 %v6101_v22, 16  ;;  %v2809_v37 = vshll.u32 %v6102_v28, 16  ;;  %v6108_v21 = vld [vmem:[%s7962_s5 + $0x88] sm:$0xf] }
 0x11c   : > { %v8849_v36 = vsel %vm8085_vm5, %v5382_v25, %v5383_v15  ;;  %v2813_v38 = vshrl.u32 %v6102_v28, 16  ;;  %v2819_v39 = vshll.u32 %v6103_v29, 16  ;;  %v2802_v42 = vrot.slane %v2800_v32, 4  ;;  %v6107_v15 = vld [vmem:[%s7962_s5 + $0x84] sm:$0xf] }
 0x11d   : > { %7156 = vmatmul.mubr.bf16.vlgmr.msra.gmra.mrb[0].mxu0 %v6510_v59  ;;  %v6515_v40 = vcombine.low %v8838_v24, %v8849_v36  ;;  %v2805_v43 = vrot.slane %v2803_v34, 5  ;;  %v2811_v49 = vrot.slane %v2809_v37, 5  ;;  %v5394_v56 = vrot.slane %v6454_v26, 5  ;;  %v6109_v28 = vld [vmem:[%s7962_s5 + $0x8c] sm:$0x1] }
 0x11e   : > { %7159 = vmatprep.mubr.bf16.mxu0 %v6511_v61  ;;  %v2815_v50 = vrot.slane %v2813_v38, 4  ;;  %v2821_v51 = vrot.slane %v2819_v39, 5  ;;  %v5397_v57 = vrot.slane %v6455_v44, 5  ;;  %v6106_v61 = vld [vmem:[%s7962_s5 + $0x80] sm:$0x1]  ;;  %v2824_v62 = vshrl.u32 %v6104_v45, 16 }
 0x11f   : > { %6936 = vmatmul.mubr.bf16.gmra.mrb[20].mxu1 %v7776_v35  ;;  %v6453_v35 = vld [vmem:[%s7962_s5 + $0x78] sm:$0xe]  ;;  %v2806_v53 = vor.u32 %v2805_v43, %v2802_v42  ;;  %v2827_v0 = vshll.u32 %v6104_v45, 16  ;;  %v2833_v1 = vshll.u32 %v6105_v52, 16  ;;  %v5396_v6 = vrot.slane %v5394_v56, 4 }
 0x120   : > { %6939 = vmatprep.mubr.bf16.mxu1 %v7777_v41  ;;  %v8856_v41 = vsel %vm8085_vm5, %v5389_v31, %v5390_v27  ;;  %v6485_v54 = vrot.slane %v6453_v35, 9  ;;  %v2816_v59 = vor.u32 %v2815_v50, %v2811_v49  ;;  %v2837_v47 = vshrl.u32 %v6105_v52, 16  ;;  %v6459_v35 = vld [vmem:[%s7962_s5 + $0x90] sm:$0xe]  ;;  %v6460_v42 = vld [vmem:[%s7962_s5 + $0x94] sm:$0xf] }
 0x121   : > { %v6516_v48 = vcombine.low %v8844_v30, %v8856_v41  ;;  %v2807_v5 = vrot.slane %v2806_v53, 4  ;;  %v2826_v7 = vrot.slane %v2824_v62, 4  ;;  %v2829_v55 = vrot.slane %v2827_v0, 5  ;;  %v6461_v50 = vld [vmem:[%s7962_s5 + $0x98] sm:$0x1] }
 0x122   : > { %v8867_v3 = vsel %vm8085_vm5, %v6485_v54, %v5394_v56  ;;  %v2817_v63 = vrot.slane %v2816_v59, 4  ;;  %v2835_v8 = vrot.slane %v2833_v1, 5  ;;  %v8875_v11 = vsel %vm8085_vm5, %v5396_v6, %v5397_v57  ;;  %v6110_v52 = vld [vmem:[%s7962_s5 + $0x90] sm:$0xf]  ;;  %v6111_v24 = vld [vmem:[%s7962_s5 + $0x94] sm:$0xf] }
 0x123   : > { %v2812_v10 = vsel %vm7985_vm2, %v2807_v5, %v2811_v49  ;;  %v6517_v17 = vcombine.low %v8867_v3, %v8875_v11  ;;  %v6486_v20 = vrot.slane %v6456_v58, 9  ;;  %v5404_v31 = vrot.slane %v6458_v14, 5  ;;  %v6112_v62 = vld [vmem:[%s7962_s5 + $0x98] sm:$0x1]  ;;  %v6462_v6 = vld [vmem:[%s7962_s5 + $0x9c] sm:$0xe] }
 0x124   : > { %v2822_v16 = vsel %vm7985_vm2, %v2817_v63, %v2821_v51  ;;  %v2848_v32 = vshrl.u32 %v6107_v15, 16  ;;  %v2851_v34 = vshll.u32 %v6107_v15, 16  ;;  %v2857_v26 = vshll.u32 %v6108_v21, 16  ;;  %v6115_v30 = vld [vmem:[%s7962_s5 + $0xa4] sm:$0x1] }
 0x125   : > { %7160 = vmatmul.mubr.bf16.gmra.mrb[4].mxu0 %v6512_v12  ;;  %v2839_v12 = vrot.slane %v2837_v47, 4  ;;  %v6149_v46 = vcombine.low %v2812_v10, %v2822_v16  ;;  %v2861_v49 = vshrl.u32 %v6108_v21, 16  ;;  %v5408_v59 = vrot.slane %v6460_v42, 5 }
 0x126   : > { %7163 = vmatprep.mubr.bf16.mxu0 %v6513_v18  ;;  %v2830_v18 = vor.u32 %v2829_v55, %v2826_v7  ;;  %v2850_v44 = vrot.slane %v2848_v32, 4  ;;  %v2853_v45 = vrot.slane %v2851_v34, 5  ;;  %v2859_v19 = vrot.slane %v2857_v26, 5  ;;  %v6463_v55 = vld [vmem:[%s7962_s5 + $0xa0] sm:$0xf] }
 0x127   : > { %6940 = vmatmul.mubr.bf16.gmra.mrb[24].mxu1 %v7778_v9  ;;  %v6457_v9 = vld [vmem:[%s7962_s5 + $0x88] sm:$0xf]  ;;  %v2840_v22 = vor.u32 %v2839_v12, %v2835_v8  ;;  %v2863_v57 = vrot.slane %v2861_v49, 4  ;;  %v2875_v5 = vshll.u32 %v6110_v52, 16  ;;  %v5410_v58 = vrot.slane %v5408_v59, 4 }
 0x128   : > { %6943 = vmatprep.mubr.bf16.mxu1 %v7779_v13  ;;  %v2843_v13 = vshll.u32 %v6106_v61, 16  ;;  %v5401_v27 = vrot.slane %v6457_v9, 5  ;;  %v2831_v29 = vrot.slane %v2830_v18, 4  ;;  %v2854_v56 = vor.u32 %v2853_v45, %v2850_v44  ;;  %v6467_v49 = vld [vmem:[%s7962_s5 + $0xb0] sm:$0x1] }
 0x129   : > { %v2841_v37 = vrot.slane %v2840_v22, 4  ;;  %v5411_v61 = vrot.slane %v6461_v50, 5  ;;  %v2864_v1 = vor.u32 %v2863_v57, %v2859_v19  ;;  %v2881_v63 = vshll.u32 %v6111_v24, 16 }
 0x12a   : > { %v2845_v25 = vrot.slane %v2843_v13, 5  ;;  %v8888_v38 = vsel %vm8085_vm5, %v6486_v20, %v5401_v27  ;;  %v5403_v39 = vrot.slane %v5401_v27, 4  ;;  %v2836_v43 = vsel %vm7985_vm2, %v2831_v29, %v2835_v8  ;;  %v6464_v13 = vld [vmem:[%s7962_s5 + $0xa4] sm:$0x1]  ;;  %v6113_v20 = vld [vmem:[%s7962_s5 + $0x9c] sm:$0xf] }
 0x12b   : > { %v2855_v0 = vrot.slane %v2854_v56, 4  ;;  %v2885_v7 = vshrl.u32 %v6111_v24, 16  ;;  %v2865_v9 = vrot.slane %v2864_v1, 4  ;;  %v2877_v12 = vrot.slane %v2875_v5, 5  ;;  %v6114_v27 = vld [vmem:[%s7962_s5 + $0xa0] sm:$0xf] }
 0x12c   : > { %v2846_v51 = vsel %vm7985_vm2, %v2841_v37, %v2845_v25  ;;  %v8904_v60 = vsel %vm8085_vm5, %v5403_v39, %v5404_v31  ;;  %v5412_v14 = vsel %vm8085_vm5, %v5410_v58, %v5411_v61  ;;  %v2883_v15 = vrot.slane %v2881_v63, 5  ;;  %v6465_v37 = vld [vmem:[%s7962_s5 + $0xa8] sm:$0xe] }
 0x12d   : > { %7164 = vmatmul.mubr.bf16.gmra.mrb[8].mxu0 %v6514_v23  ;;  %v2867_v23 = vshll.u32 %v6109_v28, 16  ;;  %v6150_v53 = vcombine.low %v2836_v43, %v2846_v51  ;;  %v6518_v54 = vcombine.low %v8888_v38, %v8904_v60  ;;  %v2860_v8 = vsel %vm7985_vm2, %v2855_v0, %v2859_v19  ;;  %v6118_v0 = vld [vmem:[%s7962_s5 + $0xb0] sm:$0x1] }
 0x12e   : > { %7167 = vmatprep.mubr.bf16.mxu0 %v6515_v40  ;;  %v6487_v40 = vrot.slane %v6459_v35, 9  ;;  %v2887_v16 = vrot.slane %v2885_v7, 4  ;;  %v2891_v18 = vshll.u32 %v6112_v62, 16  ;;  %v6488_v25 = vrot.slane %v6462_v6, 9 }
 0x12f   : > { %6944 = vmatmul.mubr.bf16.gmra.mrb[28].mxu1 %v7780_v2  ;;  %v2869_v36 = vrot.slane %v2867_v23, 5  ;;  %v2872_v2 = vshrl.u32 %v6110_v52, 16  ;;  %v5415_v32 = vrot.slane %v6463_v55, 5  ;;  %v2896_v34 = vshrl.u32 %v6113_v20, 16  ;;  %v6116_v52 = vld [vmem:[%s7962_s5 + $0xa8] sm:$0xf] }
 0x130   : > { %6979 = vmatprep.mubr.bf16.mxu1 %v6149_v46  ;;  %v8914_v47 = vsel %vm8085_vm5, %v6487_v40, %v5408_v59  ;;  %v2888_v29 = vor.u32 %v2887_v16, %v2883_v15  ;;  %v2893_v31 = vrot.slane %v2891_v18, 5  ;;  %v2899_v35 = vshll.u32 %v6113_v20, 16  ;;  %v6119_v16 = vld [vmem:[%s7962_s5 + $0xb4] sm:$0xf] }
 0x131   : > { %v2874_v10 = vrot.slane %v2872_v2, 4  ;;  %v2870_v21 = vsel %vm7985_vm2, %v2865_v9, %v2869_v36  ;;  %v6519_v46 = vcombine.low %v8914_v47, %v5412_v14  ;;  %v8937_v26 = vsel %vm8085_vm5, %v6488_v25, %v5415_v32  ;;  %v6117_v36 = vld [vmem:[%s7962_s5 + $0xac] sm:$0xf]  ;;  %v6468_v47 = vld [vmem:[%s7962_s5 + $0xb4] sm:$0xe] }
 0x132   : > { %v6151_v28 = vcombine.low %v2860_v8, %v2870_v21  ;;  %v2889_v39 = vrot.slane %v2888_v29, 4  ;;  %v5417_v3 = vrot.slane %v5415_v32, 4  ;;  %v2905_v11 = vshll.u32 %v6114_v27, 16  ;;  %v6469_v8 = vld [vmem:[%s7962_s5 + $0xb8] sm:$0xf] }
 0x133   : > { %v2878_v22 = vor.u32 %v2877_v12, %v2874_v10  ;;  %v2898_v43 = vrot.slane %v2896_v34, 4  ;;  %v2901_v44 = vrot.slane %v2899_v35, 5  ;;  %v2909_v45 = vshrl.u32 %v6114_v27, 16  ;;  %v6470_v10 = vld [vmem:[%s7962_s5 + $0xbc] sm:$0x1] }
 0x134   : > { %v2894_v50 = vsel %vm7985_vm2, %v2889_v39, %v2893_v31  ;;  %v2907_v19 = vrot.slane %v2905_v11, 5  ;;  %v2915_v23 = vshll.u32 %v6115_v30, 16  ;;  %v6489_v59 = vrot.slane %v6465_v37, 9  ;;  %v6121_v31 = vld [vmem:[%s7962_s5 + $0xbc] sm:$0x1] }
 0x135   : > { %7168 = vmatmul.mubr.bf16.gmra.mrb[12].mxu0 %v6516_v48  ;;  %v2879_v41 = vrot.slane %v2878_v22, 4  ;;  %v5418_v48 = vrot.slane %v6464_v13, 5  ;;  %v2902_v57 = vor.u32 %v2901_v44, %v2898_v43  ;;  %v2911_v24 = vrot.slane %v2909_v45, 4  ;;  %v6120_v22 = vld [vmem:[%s7962_s5 + $0xb8] sm:$0xf] }
 0x136   : > { %7171 = vmatprep.mubr.bf16.mxu0 %v6517_v17  ;;  %v6466_v17 = vld [vmem:[%s7962_s5 + $0xac] sm:$0xf]  ;;  %v2917_v40 = vrot.slane %v2915_v23, 5  ;;  %v5425_v62 = vrot.slane %v6467_v49, 5  ;;  %v2920_v5 = vshrl.u32 %v6116_v52, 16  ;;  %v2923_v6 = vshll.u32 %v6116_v52, 16 }
 0x137   : > { %6980 = vmatmul.mubr.bf16.vlgmr.msra.gmra.mrb[16].mxu1 %v6150_v53  ;;  %v2884_v42 = vsel %vm7985_vm2, %v2879_v41, %v2883_v15  ;;  %v5419_v51 = vsel %vm8085_vm5, %v5417_v3, %v5418_v48  ;;  %v5422_v61 = vrot.slane %v6466_v17, 5  ;;  %v2903_v1 = vrot.slane %v2902_v57, 4  ;;  %v6471_v34 = vld [vmem:[%s7962_s5 + $0xc0] sm:$0xe]  ;;  %v6472_v3 = vld [vmem:[%s7962_s5 + $0xc4] sm:$0xf] }
 0x138   : > { %6983 = vmatprep.mubr.bf16.mxu1 %v6151_v28  ;;  %v6152_v53 = vcombine.low %v2884_v42, %v2894_v50  ;;  %v6520_v56 = vcombine.low %v8937_v26, %v5419_v51  ;;  %v2912_v2 = vor.u32 %v2911_v24, %v2907_v19  ;;  %v2929_v7 = vshll.u32 %v6117_v36, 16  ;;  %v6473_v44 = vld [vmem:[%s7962_s5 + $0xc8] sm:$0x1]  ;;  %v6123_v57 = vld [vmem:[%s7962_s5 + $0xc4] sm:$0xf] }
 0x139   : > { %v5423_v58 = vsel %vm8085_vm5, %v6489_v59, %v5422_v61  ;;  %v5424_v63 = vrot.slane %v5422_v61, 4  ;;  %v2933_v55 = vshrl.u32 %v6117_v36, 16  ;;  %v2908_v38 = vsel %vm7985_vm2, %v2903_v1, %v2907_v19  ;;  %v6122_v19 = vld [vmem:[%s7962_s5 + $0xc0] sm:$0xf] }
 0x13a   : > { %v2913_v60 = vrot.slane %v2912_v2, 4  ;;  %v2925_v9 = vrot.slane %v2923_v6, 5  ;;  %v2931_v13 = vrot.slane %v2929_v7, 5  ;;  %v2939_v15 = vshll.u32 %v6118_v0, 16  ;;  %v6124_v0 = vld [vmem:[%s7962_s5 + $0xc8] sm:$0x1] }
 0x13b   : > { %v5426_v12 = vsel %vm8085_vm5, %v5424_v63, %v5425_v62  ;;  %v2935_v14 = vrot.slane %v2933_v55, 4  ;;  %v5429_v29 = vrot.slane %v6469_v8, 5  ;;  %v5432_v30 = vrot.slane %v6470_v10, 5  ;;  %v6474_v63 = vld [vmem:[%s7962_s5 + $0xcc] sm:$0xe] }
 0x13c   : > { %v2918_v18 = vsel %vm7985_vm2, %v2913_v60, %v2917_v40  ;;  %v6521_v20 = vcombine.low %v5423_v58, %v5426_v12  ;;  %v2941_v28 = vrot.slane %v2939_v15, 5  ;;  %v2944_v41 = vshrl.u32 %v6119_v16, 16  ;;  %v6475_v60 = vld [vmem:[%s7962_s5 + $0xd0] sm:$0xf] }
 0x13d   : > { %7172 = vmatmul.mubr.bf16.gmra.mrb[16].mxu0 %v6518_v54  ;;  %v2922_v54 = vrot.slane %v2920_v5, 4  ;;  %v6153_v25 = vcombine.low %v2908_v38, %v2918_v18  ;;  %v2936_v27 = vor.u32 %v2935_v14, %v2931_v13  ;;  %v2947_v48 = vshll.u32 %v6119_v16, 16 }
 0x13e   : > { %7175 = vmatprep.mubr.bf16.mxu0 %v6519_v46  ;;  %v6490_v46 = vrot.slane %v6468_v47, 9  ;;  %v5431_v39 = vrot.slane %v5429_v29, 4  ;;  %v2953_v26 = vshll.u32 %v6120_v22, 16  ;;  %v2946_v17 = vrot.slane %v2944_v41, 4 }
 0x13f   : > { %6984 = vmatmul.mubr.bf16.gmra.mrb[20].mxu1 %v6152_v53  ;;  %v2926_v21 = vor.u32 %v2925_v9, %v2922_v54  ;;  %v2937_v35 = vrot.slane %v2936_v27, 4  ;;  %v2949_v42 = vrot.slane %v2947_v48, 5  ;;  %v2957_v43 = vshrl.u32 %v6120_v22, 16 }
 0x140   : > { %6987 = vmatprep.mubr.bf16.mxu1 %v6153_v25  ;;  %v5430_v37 = vsel %vm8085_vm5, %v6490_v46, %v5429_v29  ;;  %v5433_v49 = vsel %vm8085_vm5, %v5431_v39, %v5432_v30  ;;  %v2955_v50 = vrot.slane %v2953_v26, 5  ;;  %v2963_v51 = vshll.u32 %v6121_v31, 16 }
 0x141   : > { %v2927_v32 = vrot.slane %v2926_v21, 4  ;;  %v2942_v45 = vsel %vm7985_vm2, %v2937_v35, %v2941_v28  ;;  %v6522_v52 = vcombine.low %v5430_v37, %v5433_v49  ;;  %v2950_v53 = vor.u32 %v2949_v42, %v2946_v17 }
 0x142   : > { %v2965_v24 = vrot.slane %v2963_v51, 5  ;;  %v6491_v36 = vrot.slane %v6471_v34, 9  ;;  %v5436_v40 = vrot.slane %v6472_v3, 5  ;;  %v5439_v59 = vrot.slane %v6473_v44, 5 }
 0x143   : > { %v2932_v11 = vsel %vm7985_vm2, %v2927_v32, %v2931_v13  ;;  %v2951_v61 = vrot.slane %v2950_v53, 4  ;;  %v2968_v1 = vshrl.u32 %v6122_v19, 16  ;;  %v2971_v2 = vshll.u32 %v6122_v19, 16  ;;  %v6476_v13 = vld [vmem:[%s7962_s5 + $0xd4] sm:$0x1]  ;;  %s161_s5 = sand.u32 1, %s7843_s13  }
 0x144   : > { %v6154_v23 = vcombine.low %v2932_v11, %v2942_v45  ;;  %v5437_v5 = vsel %vm8085_vm5, %v6491_v36, %v5436_v40  ;;  %v5438_v6 = vrot.slane %v5436_v40, 4  ;;  %v2977_v47 = vshll.u32 %v6123_v57, 16  ;;  %v9007_v19 = vld [vmem:[%s9132_s2] ss:$0 sm:$0xff]  ;;  %s5882_s10 = sshll.u32 %s161_s5, 8  ;;  %s9089_s16 = scalar_lea.sflag [#allocation3], %s161_s5 }
 0x145   : > { %7176 = vmatmul.mubr.bf16.gmra.mrb[20].mxu0 %v6520_v56  ;;  %v2959_v56 = vrot.slane %v2957_v43, 4  ;;  %v2981_v58 = vshrl.u32 %v6123_v57, 16  ;;  %v2956_v7 = vsel %vm7985_vm2, %v2951_v61, %v2955_v50  ;;  %v2970_v8 = vrot.slane %v2968_v1, 4  ;;  %s9015_s11 = scalar_lea.vmem [#allocation2], %s5882_s10 }
 0x146   : > { %7179 = vmatprep.mubr.bf16.mxu0 %v6521_v20  ;;  %v2973_v38 = vrot.slane %v2971_v2, 5  ;;  %v5440_v54 = vsel %vm8085_vm5, %v5438_v6, %v5439_v59  ;;  %v2979_v9 = vrot.slane %v2977_v47, 5  ;;  %v2987_v12 = vshll.u32 %v6124_v0, 16  ;;  %s5816_s19 = sshll.u32 %s9015_s11, 4  ;;  %s9082_s19 = int_to_ptr.vmem [resolvable:$true] %s5816_s19 }
 0x147   : > { %6988 = vmatmul.mubr.bf16.gmra.mrb[24].mxu1 %v6154_v23  ;;  %v2960_v62 = vor.u32 %v2959_v56, %v2955_v50  ;;  %v2983_v10 = vrot.slane %v2981_v58, 4  ;;  %v6523_v15 = vcombine.low %v5437_v5, %v5440_v54  ;;  %v6492_v18 = vrot.slane %v6474_v63, 9  ;;  %s7789_s26 = scalar_lea.vmem %s9082_s19, 4096  ;;  %p7796_p0 = scmp.lt.s32.totalorder %s9082_s19, %s7794_s28 }
 0x148   : > { %v2974_v16 = vor.u32 %v2973_v38, %v2970_v8  ;;  %v2989_v46 = vrot.slane %v2987_v12, 5  ;;  %v5443_v22 = vrot.slane %v6475_v60, 5  ;;  %v5446_v27 = vrot.slane %v6476_v13, 5  ;;  %p7790_p11 = scmp.ne.s32.totalorder %s9082_s19, %s7789_s26  ;;  %p7797_p1 = scmp.lt.s32.totalorder %s7795_s29, %s7789_s26 }
 0x149   : > { %v2961_v55 = vrot.slane %v2960_v62, 4  ;;  %v2984_v21 = vor.u32 %v2983_v10, %v2979_v9 }
 0x14a   : > { %v2975_v25 = vrot.slane %v2974_v16, 4  ;;  %v5444_v29 = vsel %vm8085_vm5, %v6492_v18, %v5443_v22  ;;  %v5445_v31 = vrot.slane %v5443_v22, 4  ;;  %p7791_p12 = pnand %p7790_p11, %p7914_p5  ;;  %p7798_p2 = por %p7797_p1, %p7796_p0 }
 0x14b   : > { %v2966_v14 = vsel %vm7985_vm2, %v2961_v55, %v2965_v24  ;;  %v2985_v28 = vrot.slane %v2984_v21, 4 }
 0x14c   : > { %v6155_v20 = vcombine.low %v2956_v7, %v2966_v14  ;;  %v2980_v32 = vsel %vm7985_vm2, %v2975_v25, %v2979_v9  ;;  %v5447_v41 = vsel %vm8085_vm5, %v5445_v31, %v5446_v27  ;;  %p7792_p13 = pneg %p7791_p12 }
 0x14d   : > { %7180 = vmatmul.mubr.bf16.gmra.mrb[24].mxu0 %v6522_v52  ;;  %v2990_v30 = vsel %vm7985_vm2, %v2985_v28, %v2989_v46  ;;  %v6524_v34 = vcombine.low %v5444_v29, %v5447_v41 }
 0x14e   : > { %7183 = vmatprep.mubr.bf16.mxu0 %v6523_v15  ;;  %6991 = vmatprep.mubr.bf16.mxu1 %v6155_v20  ;;  %v6156_v48 = vcombine.low %v2980_v32, %v2990_v30  ;;  %p7799_p3 = pnand %p7798_p2, %p7792_p13 }
 0x150   : > { %6992 = vmatmul.mubr.bf16.gmra.mrb[28].mxu1 %v6156_v48 }
 0x155   : > { %7184 = vmatmul.mubr.bf16.gmra.mrb[28].mxu0 %v6524_v34 }
 0x1ca   : > { %v6917_v35 = vpop.f32.mrb[0].mxu1 }
 0x1cb   : > { %v2336_v37 = vpop.f32.mrb[1].mxu1  ;;  %v7205_v23 = vadd.f32 %v6917_v35, %v9007_v19 }
 0x1cc   : > { %v6918_v39 = vpop.f32.mrb[2].mxu1  ;;  %v7211_v52 = vadd.f32 %v9007_v19, %v2336_v37 }
 0x1cd   : > { %v2339_v26 = vpop.f32.mrb[3].mxu1  ;;  %v7217_v56 = vadd.f32 %v6918_v39, %v9007_v19 }
 0x1ce   : > { %v7223_v36 = vadd.f32 %v9007_v19, %v2339_v26 }
 0x1d2   : > { %v6921_v3 = vpop.f32.mrb[4].mxu1 }
 0x1d3   : > { %v2352_v11 = vpop.f32.mrb[5].mxu1  ;;  %v7229_v1 = vadd.f32 %v6921_v3, %v9007_v19 }
 0x1d4   : > { %v6922_v17 = vpop.f32.mrb[6].mxu1  ;;  %v7235_v2 = vadd.f32 %v9007_v19, %v2352_v11 }
 0x1d5   : > { %v2355_v42 = vpop.f32.mrb[7].mxu1  ;;  %v7241_v6 = vadd.f32 %v6922_v17, %v9007_v19 }
 0x1d6   : > { %v7247_v63 = vadd.f32 %v9007_v19, %v2355_v42 }
 0x1da   : > { %v6925_v43 = vpop.f32.mrb[8].mxu1 }
 0x1db   : > { %v2368_v33 = vpop.f32.mrb[9].mxu1  ;;  %v7253_v54 = vadd.f32 %v6925_v43, %v9007_v19 }
 0x1dc   : > { %v6926_v44 = vpop.f32.mrb[10].mxu1  ;;  %v7259_v9 = vadd.f32 %v9007_v19, %v2368_v33 }
 0x1dd   : > { %v2371_v45 = vpop.f32.mrb[11].mxu1  ;;  %v7265_v12 = vadd.f32 %v6926_v44, %v9007_v19 }
 0x1de   : > { %v7271_v15 = vadd.f32 %v9007_v19, %v2371_v45 }
 0x1e2   : > { %v6929_v4 = vpop.f32.mrb[12].mxu1 }
 0x1e3   : > { %v2384_v49 = vpop.f32.mrb[13].mxu1  ;;  %v7277_v27 = vadd.f32 %v6929_v4, %v9007_v19 }
 0x1e4   : > { %v6930_v50 = vpop.f32.mrb[14].mxu1  ;;  %v7283_v29 = vadd.f32 %v9007_v19, %v2384_v49 }
 0x1e5   : > { %v9001_v51 = vpop.f32.mrb[15].mxu1  ;;  %v7289_v30 = vadd.f32 %v6930_v50, %v9007_v19 }
 0x1e6   : > { %v7295_v34 = vadd.f32 %v9007_v19, %v9001_v51 }
 0x1f0   : > { %v7157_v53 = vpop.f32.mrb[0].mxu0 }
 0x1f1   : > { %v7208_v57 = vadd.f32 %v7205_v23, %v7157_v53  ;;  %v5611_v24 = vpop.f32.mrb[1].mxu0 }
 0x1f2   : > { %v7214_v40 = vadd.f32 %v7211_v52, %v5611_v24  ;;  %v7158_v59 = vpop.f32.mrb[2].mxu0 }
 0x1f3   : > { %5772 = vst [vmem:[%s9015_s11 + $0x10] sm:$0xff] %v7208_v57  ;;  %v7220_v61 = vadd.f32 %v7217_v56, %v7158_v59  ;;  %v5614_v62 = vpop.f32.mrb[3].mxu0 }
 0x1f4   : > { %5770 = vst [vmem:[%s9015_s11] sm:$0xff] %v7214_v40  ;;  %v7226_v0 = vadd.f32 %v7223_v36, %v5614_v62 }
 0x1f5   : > { %5773 = vst [vmem:[%s9015_s11 + $0x18] sm:$0xff] %v7220_v61 }
 0x1f6   : > { %5771 = vst [vmem:[%s9015_s11 + $0x8] sm:$0xff] %v7226_v0 }
 0x1f8   : > { %v7161_v5 = vpop.f32.mrb[4].mxu0 }
 0x1f9   : > { %v7232_v47 = vadd.f32 %v7229_v1, %v7161_v5  ;;  %v5627_v58 = vpop.f32.mrb[5].mxu0 }
 0x1fa   : > { %v7238_v7 = vadd.f32 %v7235_v2, %v5627_v58  ;;  %v7162_v55 = vpop.f32.mrb[6].mxu0 }
 0x1fb   : > { %5776 = vst [vmem:[%s9015_s11 + $0x30] sm:$0xff] %v7232_v47  ;;  %v7244_v8 = vadd.f32 %v7241_v6, %v7162_v55  ;;  %v5630_v38 = vpop.f32.mrb[7].mxu0 }
 0x1fc   : > { %5774 = vst [vmem:[%s9015_s11 + $0x20] sm:$0xff] %v7238_v7  ;;  %v7250_v60 = vadd.f32 %v7247_v63, %v5630_v38 }
 0x1fd   : > { %5777 = vst [vmem:[%s9015_s11 + $0x38] sm:$0xff] %v7244_v8 }
 0x1fe   : > { %5775 = vst [vmem:[%s9015_s11 + $0x28] sm:$0xff] %v7250_v60 }
 0x200   : > { %v7165_v10 = vpop.f32.mrb[8].mxu0 }
 0x201   : > { %v7256_v13 = vadd.f32 %v7253_v54, %v7165_v10  ;;  %v5643_v14 = vpop.f32.mrb[9].mxu0 }
 0x202   : > { %v7262_v16 = vadd.f32 %v7259_v9, %v5643_v14  ;;  %v7166_v18 = vpop.f32.mrb[10].mxu0 }
 0x203   : > { %5780 = vst [vmem:[%s9015_s11 + $0x50] sm:$0xff] %v7256_v13  ;;  %v7268_v20 = vadd.f32 %v7265_v12, %v7166_v18  ;;  %v5646_v21 = vpop.f32.mrb[11].mxu0 }
 0x204   : > { %5778 = vst [vmem:[%s9015_s11 + $0x40] sm:$0xff] %v7262_v16  ;;  %v7274_v46 = vadd.f32 %v7271_v15, %v5646_v21 }
 0x205   : > { %5781 = vst [vmem:[%s9015_s11 + $0x58] sm:$0xff] %v7268_v20 }
 0x206   : > { %5779 = vst [vmem:[%s9015_s11 + $0x48] sm:$0xff] %v7274_v46 }
 0x208   : > { %v7169_v31 = vpop.f32.mrb[12].mxu0 }
 0x209   : > { %v7280_v41 = vadd.f32 %v7277_v27, %v7169_v31  ;;  %v5659_v48 = vpop.f32.mrb[13].mxu0 }
 0x20a   : > { %v6981_v22 = vpop.f32.mrb[16].mxu1  ;;  %v7286_v35 = vadd.f32 %v7283_v29, %v5659_v48  ;;  %v7170_v37 = vpop.f32.mrb[14].mxu0 }
 0x20b   : > { %v3218_v25 = vpop.f32.mrb[17].mxu1  ;;  %5784 = vst [vmem:[%s9015_s11 + $0x70] sm:$0xff] %v7280_v41  ;;  %v7292_v39 = vadd.f32 %v7289_v30, %v7170_v37  ;;  %v5662_v26 = vpop.f32.mrb[15].mxu0  ;;  %v7301_v11 = vadd.f32 %v6981_v22, %v9007_v19 }
 0x20c   : > { %v6982_v28 = vpop.f32.mrb[18].mxu1  ;;  %5782 = vst [vmem:[%s9015_s11 + $0x60] sm:$0xff] %v7286_v35  ;;  %v7298_v3 = vadd.f32 %v7295_v34, %v5662_v26  ;;  %v7307_v17 = vadd.f32 %v9007_v19, %v3218_v25 }
 0x20d   : > { %v3221_v32 = vpop.f32.mrb[19].mxu1  ;;  %5785 = vst [vmem:[%s9015_s11 + $0x78] sm:$0xff] %v7292_v39  ;;  %v7313_v42 = vadd.f32 %v6982_v28, %v9007_v19 }
 0x20e   : > { %5783 = vst [vmem:[%s9015_s11 + $0x68] sm:$0xff] %v7298_v3  ;;  %v7319_v33 = vadd.f32 %v9007_v19, %v3221_v32 }
 0x210   : > { %v7173_v43 = vpop.f32.mrb[16].mxu0 }
 0x211   : > { %v7304_v45 = vadd.f32 %v7301_v11, %v7173_v43  ;;  %v5675_v4 = vpop.f32.mrb[17].mxu0 }
 0x212   : > { %v6985_v44 = vpop.f32.mrb[20].mxu1  ;;  %v7310_v50 = vadd.f32 %v7307_v17, %v5675_v4  ;;  %v7174_v51 = vpop.f32.mrb[18].mxu0 }
 0x213   : > { %v3234_v49 = vpop.f32.mrb[21].mxu1  ;;  %5788 = vst [vmem:[%s9015_s11 + $0x90] sm:$0xff] %v7304_v45  ;;  %v7316_v52 = vadd.f32 %v7313_v42, %v7174_v51  ;;  %v5678_v53 = vpop.f32.mrb[19].mxu0  ;;  %v7325_v24 = vadd.f32 %v6985_v44, %v9007_v19 }
 0x214   : > { %v6986_v23 = vpop.f32.mrb[22].mxu1  ;;  %5786 = vst [vmem:[%s9015_s11 + $0x80] sm:$0xff] %v7310_v50  ;;  %v7322_v57 = vadd.f32 %v7319_v33, %v5678_v53  ;;  %v7331_v36 = vadd.f32 %v9007_v19, %v3234_v49 }
 0x215   : > { %v3237_v56 = vpop.f32.mrb[23].mxu1  ;;  %5789 = vst [vmem:[%s9015_s11 + $0x98] sm:$0xff] %v7316_v52  ;;  %v7337_v40 = vadd.f32 %v6986_v23, %v9007_v19 }
 0x216   : > { %5787 = vst [vmem:[%s9015_s11 + $0x88] sm:$0xff] %v7322_v57  ;;  %v7343_v61 = vadd.f32 %v9007_v19, %v3237_v56 }
 0x218   : > { %v7177_v59 = vpop.f32.mrb[20].mxu0 }
 0x219   : > { %v7328_v62 = vadd.f32 %v7325_v24, %v7177_v59  ;;  %v5691_v0 = vpop.f32.mrb[21].mxu0 }
 0x21a   : > { %v7334_v1 = vadd.f32 %v7331_v36, %v5691_v0  ;;  %v7178_v2 = vpop.f32.mrb[22].mxu0  ;;  %v6989_v58 = vpop.f32.mrb[24].mxu1 }
 0x21b   : > { %5792 = vst [vmem:[%s9015_s11 + $0xb0] sm:$0xff] %v7328_v62  ;;  %v7340_v5 = vadd.f32 %v7337_v40, %v7178_v2  ;;  %v5694_v6 = vpop.f32.mrb[23].mxu0  ;;  %v7349_v63 = vadd.f32 %v6989_v58, %v9007_v19  ;;  %v3250_v7 = vpop.f32.mrb[25].mxu1 }
 0x21c   : > { %5790 = vst [vmem:[%s9015_s11 + $0xa0] sm:$0xff] %v7334_v1  ;;  %v7346_v47 = vadd.f32 %v7343_v61, %v5694_v6  ;;  %v7355_v55 = vadd.f32 %v9007_v19, %v3250_v7  ;;  %v6990_v8 = vpop.f32.mrb[26].mxu1 }
 0x21d   : > { %5793 = vst [vmem:[%s9015_s11 + $0xb8] sm:$0xff] %v7340_v5  ;;  %v7361_v38 = vadd.f32 %v6990_v8, %v9007_v19  ;;  %v3253_v60 = vpop.f32.mrb[27].mxu1 }
 0x21e   : > { %5791 = vst [vmem:[%s9015_s11 + $0xa8] sm:$0xff] %v7346_v47  ;;  %v7367_v9 = vadd.f32 %v9007_v19, %v3253_v60 }
 0x220   : > { %v7181_v54 = vpop.f32.mrb[24].mxu0 }
 0x221   : > { %v7352_v10 = vadd.f32 %v7349_v63, %v7181_v54  ;;  %v5707_v12 = vpop.f32.mrb[25].mxu0 }
 0x222   : > { %v7358_v13 = vadd.f32 %v7355_v55, %v5707_v12  ;;  %v7182_v14 = vpop.f32.mrb[26].mxu0 }
 0x223   : > { %5796 = vst [vmem:[%s9015_s11 + $0xd0] sm:$0xff] %v7352_v10  ;;  %v7364_v15 = vadd.f32 %v7361_v38, %v7182_v14  ;;  %v5710_v16 = vpop.f32.mrb[27].mxu0  ;;  %v6993_v20 = vpop.f32.mrb[28].mxu1 }
 0x224   : > { %5794 = vst [vmem:[%s9015_s11 + $0xc0] sm:$0xff] %v7358_v13  ;;  %v7370_v18 = vadd.f32 %v7367_v9, %v5710_v16  ;;  %v7373_v46 = vadd.f32 %v6993_v20, %v9007_v19  ;;  %v3266_v22 = vpop.f32.mrb[29].mxu1 }
 0x225   : > { %5797 = vst [vmem:[%s9015_s11 + $0xd8] sm:$0xff] %v7364_v15  ;;  %v7379_v27 = vadd.f32 %v9007_v19, %v3266_v22  ;;  %v6994_v28 = vpop.f32.mrb[30].mxu1 }
 0x226   : > { %5795 = vst [vmem:[%s9015_s11 + $0xc8] sm:$0xff] %v7370_v18  ;;  %v7385_v32 = vadd.f32 %v6994_v28, %v9007_v19  ;;  %v3269_v30 = vpop.f32.mrb[31].mxu1 }
 0x227   : > { %v7391_v34 = vadd.f32 %v9007_v19, %v3269_v30 }
 0x228   : > { %v7185_v21 = vpop.f32.mrb[28].mxu0 }
 0x229   : > { %v5723_v25 = vpop.f32.mrb[29].mxu0  ;;  %v7376_v31 = vadd.f32 %v7373_v46, %v7185_v21 }
 0x22a   : > { %v7186_v29 = vpop.f32.mrb[30].mxu0  ;;  %v7382_v48 = vadd.f32 %v7379_v27, %v5723_v25 }
 0x22b   : > { %v5726_v41 = vpop.f32.mrb[31].mxu0  ;;  %5800 = vst [vmem:[%s9015_s11 + $0xf0] sm:$0xff] %v7376_v31  ;;  %v7388_v35 = vadd.f32 %v7385_v32, %v7186_v29 }
 0x22c   : > { %5798 = vst [vmem:[%s9015_s11 + $0xe0] sm:$0xff] %v7382_v48  ;;  %v7394_v37 = vadd.f32 %v7391_v34, %v5726_v41 }
 0x22d   : > { %5801 = vst [vmem:[%s9015_s11 + $0xf8] sm:$0xff] %v7388_v35 }
 0x22e   : > { %5799 = vst [vmem:[%s9015_s11 + $0xe8] sm:$0xff] %v7394_v37 }
 0x22f   : > { %7802 = shalt.err (!%p7799_p3)
}
 0x230   : > { %s7803_s30 = scalar_lea.hbm %s9080_s25, 4096  ;;  %s7807_s7 = scalar_lea.hbm %s9133_s3, 8192 }
 0x231   : > { %p7804_p4 = scmp.ne.s32.totalorder %s9080_s25, %s7803_s30  ;;  %p7808_p9 = scmp.lt.u32.totalorder %s9080_s25, %s9133_s3 }
 0x232   : > { %p7809_p10 = scmp.lt.u32.totalorder %s7807_s7, %s7803_s30  ;;  %p7811_p12 = scmp.lt.u32.totalorder %s7803_s30, %s9080_s25 }
 0x233   : > { %p7805_p7 = pnand %p7804_p4, %p7914_p5 }
 0x234   : > { %p7810_p11 = por %p7809_p10, %p7808_p9 }
 0x235   : > { %p7806_p8 = pneg %p7805_p7 }
 0x236   : > { %p7812_p13 = por %p7811_p12, %p7810_p11 }
 0x238   : > { %p7813_p0 = pnand %p7812_p13, %p7806_p8 }
 0x23a   : > { %7816 = shalt.err (!%p7813_p0)
}
 0x23b   : > { %s7854_s9 = smov 128   ;;  %s7855_s10 = smov 8  }
 0x23c   : > { %7620 = dma.vmem_to_hbm [thread:$0]  (%p7914_p5), %s9082_s19, 4096, %s9080_s25, %s9089_s16, %s7854_s9, %s7854_s9, %s7855_s10  }
 0x23d PF: > { %p7626_p1 = scmp.ge.s32.totalorder %s7851_s15, 2  ;;  %s5831_s11 = sand.u32 1, %s7839_s12  }
 0x23e   : > { %s5832_s17 = scalar_lea.sflag [#allocation3], %s5831_s11 }
 0x23f   : > { %p7623_p2 = pnand %p7626_p1, %p7918_p6 }
 0x241   : > { %7834 = dma.done.wait (!%p7623_p2), %s5832_s17, 4096  }
 0x242   : > { %7836 = vsyncadd (!%p7623_p2), %s5832_s17, 4294963200  ;;  %p13_p3 = scmp.ge.s32.totalorder %s7901_s18, 4   ;;  %s9140_s12 = smov %s7843_s13 }
 0x243   : > { %s9141_s13 = smov %s7847_s14  ;;  %s9142_s14 = smov %s7912_s21 }
 0x244   : > { %s9143_s15 = smov %s7901_s18  ;;  %15 = sbr.rel (!%p13_p3) target bundleno = 3 (0x3), region = 77 }
 0x24b   :  { %5837 = vsyncpa [#allocation3], 1 }
 0x24c   :  { %5839 = vsyncpa [#allocation3 + $0x1], 1 }

</bundles_post_ra>
